<compile_context>
chip_gen: v6e
topology: v6e:2x2x1
jax: 0.10.0
libtpu: 0.0.40
codegen_flags: <defaults>
</compile_context>

<pallas_src>
import jax
import jax.numpy as jnp
from jax import lax
from jax.experimental import pallas as pl
from jax.experimental.pallas import tpu as pltpu

# Keep kernel matmuls and the pure-JAX reference numerically comparable.
jax.config.update("jax_default_matmul_precision", "highest")


def _conv_out_len(length, stride):
    # Conv1d(kernel=3, padding=1): L_out = floor((L + 2 - 3) / s) + 1
    return (length - 1) // stride + 1


def _conv1d_relu(x, w_ref, b_ref, stride):
    """Per-batch Conv1d(k=3, pad=1, stride) + ReLU.

    x: (C_in, L_in) f32 value.  w_ref: (3, C_out, C_in) VMEM ref (tap-major).
    b_ref: (C_out, 1) VMEM ref.
    """
    _, l_in = x.shape
    l_out = _conv_out_len(l_in, stride)
    c_out = w_ref.shape[1]
    acc = jnp.zeros((c_out, l_out), jnp.float32)
    for k in range(3):
        # Sel_k[i, j] = 1 iff real input index i == stride*j + k - 1
        # (out-of-range -> all-zero column, which is exactly the zero padding).
        row = lax.broadcasted_iota(jnp.int32, (l_in, l_out), 0)
        col = lax.broadcasted_iota(jnp.int32, (l_in, l_out), 1)
        sel = (row == stride * col + (k - 1)).astype(jnp.float32)
        xk = jnp.dot(x, sel, preferred_element_type=jnp.float32)        # (C_in, L_out)
        acc = acc + jnp.dot(w_ref[k], xk, preferred_element_type=jnp.float32)
    return jnp.maximum(acc + b_ref[...], 0.0)


def _make_conv_stage_kernel(strides, levels, layers_per_block):
    n_convs = len(strides)

    def kernel(*refs):
        x_ref = refs[0]
        wb_refs = refs[1:1 + 2 * n_convs]          # (w0, b0, w1, b1, ...)
        out_refs = refs[1 + 2 * n_convs:]          # one per hierarchical level
        h = x_ref[...]                             # (feat_dim, seq_len)
        h = _conv1d_relu(h, wb_refs[0], wb_refs[1], strides[0])   # stem
        layer = 1
        for lvl in range(levels):
            for _ in range(layers_per_block):
                h = _conv1d_relu(h, wb_refs[2 * layer], wb_refs[2 * layer + 1],
                                 strides[layer])
                layer += 1
            out_refs[lvl][...] = h                 # (C_lvl, L_lvl)

    return kernel


def _make_dense_head_kernel(levels):
    def kernel(*refs):
        p = 0
        d_refs = refs[p:p + levels]; p += levels
        wm_refs = refs[p:p + 2 * levels]; p += 2 * levels
        wv_refs = refs[p:p + 2 * levels]; p += 2 * levels
        sk_refs = refs[p:p + 2 * (levels - 1)]; p += 2 * (levels - 1)
        eps_refs = refs[p:p + levels]; p += levels
        out_refs = refs[p:]
        zm_out = out_refs[:levels]
        zv_out = out_refs[levels:2 * levels]
        z_out = out_refs[2 * levels:]

        z_prev = None
        for j, i in enumerate(reversed(range(levels))):
            d = d_refs[i][...]                                         # (B, D_i)
            if i != levels - 1:
                d = (d
                     + jnp.dot(z_prev, sk_refs[2 * i][...],
                               preferred_element_type=jnp.float32)
                     + sk_refs[2 * i + 1][...])
            zm = (jnp.dot(d, wm_refs[2 * i][...], preferred_element_type=jnp.float32)
                  + wm_refs[2 * i + 1][...])
            zv = (jnp.dot(d, wv_refs[2 * i][...], preferred_element_type=jnp.float32)
                  + wv_refs[2 * i + 1][...])
            # Sampling(): z = mean + exp(0.5 * log_var) * eps (eps supplied by host).
            z = zm + jnp.exp(0.5 * zv) * eps_refs[j][...]
            zm_out[j][...] = zm
            zv_out[j][...] = zv
            z_out[j][...] = z
            z_prev = z

    return kernel


def h_timevae_encoder_forward(x, params, eps_list, *, layers_per_conv_block,
                              hierarchical_levels, latent_dim):
    """x: (B, seq_len, feat_dim) f32.  params: PyTorch-shaped weight dict.
    eps_list: one (B, latent_dim) noise array per level, coarsest level first.
    Returns (z_means, z_log_vars, z_list) in the PyTorch append order."""
    B, seq_len, feat_dim = x.shape
    levels = hierarchical_levels
    lpcb = layers_per_conv_block

    # ---- conv layer list (stem + all block layers) and static output shapes ----
    conv_ws = [params["stem_w"]] + list(params["block_ws"])
    conv_bs = [params["stem_b"]] + list(params["block_bs"])
    strides = [1] + [2] * (levels * lpcb)

    level_shapes = []                      # (C_i, L_i) of each block output
    L = seq_len                            # unchanged by the stride-1 stem
    layer = 1
    for _lvl in range(levels):
        for _ in range(lpcb):
            L = _conv_out_len(L, 2)
            layer += 1
        level_shapes.append((conv_ws[layer - 1].shape[0], L))

    # ---- stage 1: conv stack, grid over batch ("parallel" -> both TCs on v7x) --
    x_t = jnp.swapaxes(x, 1, 2)            # (B, feat_dim, seq_len)
    conv_inputs = [x_t]
    conv_in_specs = [pl.BlockSpec((None, feat_dim, seq_len), lambda b: (b, 0, 0))]
    for w, bvec in zip(conv_ws, conv_bs):
        w_taps = jnp.transpose(w, (2, 0, 1))        # (3, C_out, C_in), tap-major
        b_col = bvec.reshape(w.shape[0], 1)         # (C_out, 1)
        conv_inputs += [w_taps, b_col]
        conv_in_specs += [pl.BlockSpec(w_taps.shape, lambda b: (0, 0, 0)),
                          pl.BlockSpec(b_col.shape, lambda b: (0, 0))]

    conv_out_shape = tuple(jax.ShapeDtypeStruct((B, C, L), jnp.float32)
                           for (C, L) in level_shapes)
    conv_out_specs = tuple(pl.BlockSpec((None, C, L), lambda b: (b, 0, 0))
                           for (C, L) in level_shapes)

    conv_feats = pl.pallas_call(
        _make_conv_stage_kernel(tuple(strides), levels, lpcb),
        grid=(B,),
        in_specs=conv_in_specs,
        out_specs=conv_out_specs,
        out_shape=conv_out_shape,
        compiler_params=pltpu.CompilerParams(dimension_semantics=("parallel",)),
    )(*conv_inputs)

    # Wrapper-side Flatten: (B, C_i, L_i) -> (B, C_i*L_i) row-major == nn.Flatten.
    d_flat = [f.reshape(B, C * L) for f, (C, L) in zip(conv_feats, level_shapes)]

    # ---- stage 2: hierarchical dense head + sampling (gridless, VMEM-resident) -
    dense_inputs = list(d_flat)
    for w, bvec in zip(params["zmean_ws"], params["zmean_bs"]):
        dense_inputs += [w.T, bvec.reshape(1, -1)]
    for w, bvec in zip(params["zlogvar_ws"], params["zlogvar_bs"]):
        dense_inputs += [w.T, bvec.reshape(1, -1)]
    for w, bvec in zip(params["skip_ws"], params["skip_bs"]):
        dense_inputs += [w.T, bvec.reshape(1, -1)]
    dense_inputs += list(eps_list)

    head_out_shape = tuple(jax.ShapeDtypeStruct((B, latent_dim), jnp.float32)
                           for _ in range(3 * levels))
    outs = pl.pallas_call(
        _make_dense_head_kernel(levels),
        in_specs=[pl.BlockSpec(memory_space=pltpu.VMEM)] * len(dense_inputs),
        out_specs=tuple(pl.BlockSpec(memory_space=pltpu.VMEM)
                        for _ in range(3 * levels)),
        out_shape=head_out_shape,
    )(*dense_inputs)

    z_means = list(outs[:levels])
    z_log_vars = list(outs[levels:2 * levels])
    z_list = list(outs[2 * levels:])
    return z_means, z_log_vars, z_list


def _reference_forward(x, params, eps_list, *, layers_per_conv_block,
                       hierarchical_levels, latent_dim):
    """Pure-JAX reference matching the PyTorch forward exactly."""
    del latent_dim
    levels = hierarchical_levels
    lpcb = layers_per_conv_block
    B = x.shape[0]

    def conv1d_relu(h, w, bvec, stride):
        dn = lax.conv_dimension_numbers(h.shape, w.shape, ("NCH", "OIH", "NCH"))
        y = lax.conv_general_dilated(h, w, (stride,), ((1, 1),),
                                     dimension_numbers=dn,
                                     precision=lax.Precision.HIGHEST)
        return jnp.maximum(y + bvec[None, :, None], 0.0)

    h = jnp.swapaxes(x, 1, 2)
    h = conv1d_relu(h, params["stem_w"], params["stem_b"], 1)
    conv_outputs = []
    layer = 0
    for _lvl in range(levels):
        for _ in range(lpcb):
            h = conv1d_relu(h, params["block_ws"][layer], params["block_bs"][layer], 2)
            layer += 1
        conv_outputs.append(h)

    z_means, z_log_vars, z_list = [], [], []
    for j, i in enumerate(reversed(range(levels))):
        d = conv_outputs[i].reshape(B, -1)
        if i != levels - 1:
            z_prev = z_list[levels - i - 2]
            d = d + z_prev @ params["skip_ws"][i].T + params["skip_bs"][i]
        zm = d @ params["zmean_ws"][i].T + params["zmean_bs"][i]
        zv = d @ params["zlogvar_ws"][i].T + params["zlogvar_bs"][i]
        z = zm + jnp.exp(0.5 * zv) * eps_list[j]
        z_means.append(zm)
        z_log_vars.append(zv)
        z_list.append(z)
    return z_means, z_log_vars, z_list


if __name__ == "__main__":
    # Small, forward-consistent config.
    B = 2
    seq_len = 16
    feat_dim = 4
    hidden_layer_sizes = (16, 32, 32)       # len == levels*layers_per_block + 1
    layers_per_conv_block = 1
    hierarchical_levels = 2
    latent_dim = 8

    key = jax.random.PRNGKey(0)
    keys = iter(jax.random.split(key, 64))

    def nrm(shape, scale):
        return scale * jax.random.normal(next(keys), shape, dtype=jnp.float32)

    x = jax.random.normal(next(keys), (B, seq_len, feat_dim), dtype=jnp.float32)

    params = {
        "stem_w": nrm((hidden_layer_sizes[0], feat_dim, 3), 0.25),
        "stem_b": nrm((hidden_layer_sizes[0],), 0.1),
    }
    block_ws, block_bs = [], []
    for lvl in range(hierarchical_levels):
        start = lvl * layers_per_conv_block
        sizes = hidden_layer_sizes[start:(lvl + 1) * layers_per_conv_block + 1]
        for li in range(len(sizes) - 1):
            block_ws.append(nrm((sizes[li + 1], sizes[li], 3), 0.12))
            block_bs.append(nrm((sizes[li + 1],), 0.1))
    params["block_ws"], params["block_bs"] = block_ws, block_bs

    # encoder_last_dense_dims, computed analytically (PyTorch probes with randn).
    dims = []
    L = seq_len
    w_idx = 0
    for lvl in range(hierarchical_levels):
        for _ in range(layers_per_conv_block):
            L = (L - 1) // 2 + 1
            w_idx += 1
        dims.append(block_ws[w_idx - 1].shape[0] * L)

    params["zmean_ws"] = [nrm((latent_dim, d), 0.08) for d in dims]
    params["zmean_bs"] = [nrm((latent_dim,), 0.1) for _ in dims]
    params["zlogvar_ws"] = [nrm((latent_dim, d), 0.08) for d in dims]
    params["zlogvar_bs"] = [nrm((latent_dim,), 0.1) for _ in dims]
    # Only skip projections 0..levels-2 are ever used by forward().
    params["skip_ws"] = [nrm((dims[i], latent_dim), 0.1)
                         for i in range(hierarchical_levels - 1)]
    params["skip_bs"] = [nrm((dims[i],), 0.1)
                         for i in range(hierarchical_levels - 1)]

    # TODO(synk): Sampling() draws torch.randn in-module; here the reparameterization
    # noise is passed in explicitly (one eps per level, coarsest level first).
    eps_list = [jax.random.normal(next(keys), (B, latent_dim), dtype=jnp.float32)
                for _ in range(hierarchical_levels)]

    cfg = dict(layers_per_conv_block=layers_per_conv_block,
               hierarchical_levels=hierarchical_levels,
               latent_dim=latent_dim)

    z_means, z_log_vars, z_list = h_timevae_encoder_forward(x, params, eps_list, **cfg)
    jax.block_until_ready(z_list)

    rm, rv, rz = _reference_forward(x, params, eps_list, **cfg)
    for got, ref in zip(z_means + z_log_vars + z_list, rm + rv + rz):
        assert got.shape == (B, latent_dim), got.shape
        err = float(jnp.max(jnp.abs(got - ref)))
        assert jnp.allclose(got, ref, atol=1e-3, rtol=1e-3), f"mismatch, max err={err}"

    print("KERNEL_OK")
</pallas_src>

<mosaic_0001>
module attributes {stable_mosaic.version = 11 : i64} {
  func.func @kernel(%arg0: i32, %arg1: memref<1x4x16xf32, #tpu.memory_space<vmem>>, %arg2: memref<3x16x4xf32, #tpu.memory_space<vmem>>, %arg3: memref<16x1xf32, #tpu.memory_space<vmem>>, %arg4: memref<3x32x16xf32, #tpu.memory_space<vmem>>, %arg5: memref<32x1xf32, #tpu.memory_space<vmem>>, %arg6: memref<3x32x32xf32, #tpu.memory_space<vmem>>, %arg7: memref<32x1xf32, #tpu.memory_space<vmem>>, %arg8: memref<1x32x8xf32, #tpu.memory_space<vmem>>, %arg9: memref<1x32x4xf32, #tpu.memory_space<vmem>>) attributes {dimension_semantics = [#tpu.dimension_semantics<parallel>], iteration_bounds = array<i64: 2>, scalar_prefetch = 0 : i64, scratch_operands = 0 : i64, tpu.core_type = #tpu.core_type<tc>, window_params = [{transform_indices = @transform_0, window_bounds = array<i64: 1, 4, 16>}, {pipeline_mode = #tpu.pipeline_mode<synchronous>, transform_indices = @transform_1, window_bounds = array<i64: 3, 16, 4>}, {pipeline_mode = #tpu.pipeline_mode<synchronous>, transform_indices = @transform_2, window_bounds = array<i64: 16, 1>}, {pipeline_mode = #tpu.pipeline_mode<synchronous>, transform_indices = @transform_3, window_bounds = array<i64: 3, 32, 16>}, {pipeline_mode = #tpu.pipeline_mode<synchronous>, transform_indices = @transform_4, window_bounds = array<i64: 32, 1>}, {pipeline_mode = #tpu.pipeline_mode<synchronous>, transform_indices = @transform_5, window_bounds = array<i64: 3, 32, 32>}, {pipeline_mode = #tpu.pipeline_mode<synchronous>, transform_indices = @transform_6, window_bounds = array<i64: 32, 1>}, {transform_indices = @transform_7, window_bounds = array<i64: 1, 32, 8>}, {transform_indices = @transform_8, window_bounds = array<i64: 1, 32, 4>}]} {
    %c0 = arith.constant 0 : index
    %c0_0 = arith.constant 0 : index
    %c0_1 = arith.constant 0 : index
    %0 = vector.load %arg1[%c0, %c0_0, %c0_1] : memref<1x4x16xf32, #tpu.memory_space<vmem>>, vector<1x4x16xf32>
    %1 = vector.shape_cast %0 : vector<1x4x16xf32> to vector<4x16xf32>
    %cst = arith.constant 0.000000e+00 : f32
    %2 = vector.broadcast %cst : f32 to vector<16x16xf32>
    %3 = tpu.iota {dimensions = array<i32: 0>} : vector<16x16xi32>
    %4 = tpu.iota {dimensions = array<i32: 1>} : vector<16x16xi32>
    %c1_i32 = arith.constant 1 : i32
    %5 = vector.broadcast %c1_i32 : i32 to vector<16x16xi32>
    %6 = arith.muli %5, %4 : vector<16x16xi32>
    %c-1_i32 = arith.constant -1 : i32
    %7 = vector.broadcast %c-1_i32 : i32 to vector<16x16xi32>
    %8 = arith.addi %6, %7 : vector<16x16xi32>
    %9 = arith.cmpi eq, %3, %8 : vector<16x16xi32>
    %10 = arith.extui %9 : vector<16x16xi1> to vector<16x16xi32>
    %11 = arith.sitofp %10 : vector<16x16xi32> to vector<16x16xf32>
    %cst_2 = arith.constant dense<0.000000e+00> : vector<4x16xf32>
    %12 = tpu.matmul %1, %11, %cst_2 {dimension_numbers = #tpu.dot_dimension_numbers<[1], [0], [0], [1], [0, 0, 1, 1], [], []>, precision = #tpu.contract_precision<fp32>} : vector<4x16xf32>, vector<16x16xf32>, vector<4x16xf32> -> vector<4x16xf32>
    %c0_3 = arith.constant 0 : index
    %c0_4 = arith.constant 0 : index
    %c0_5 = arith.constant 0 : index
    %13 = vector.load %arg2[%c0_3, %c0_4, %c0_5] : memref<3x16x4xf32, #tpu.memory_space<vmem>>, vector<1x16x4xf32>
    %14 = vector.shape_cast %13 : vector<1x16x4xf32> to vector<16x4xf32>
    %cst_6 = arith.constant dense<0.000000e+00> : vector<16x16xf32>
    %15 = tpu.matmul %14, %12, %cst_6 {dimension_numbers = #tpu.dot_dimension_numbers<[1], [0], [0], [1], [0, 0, 1, 1], [], []>, precision = #tpu.contract_precision<fp32>} : vector<16x4xf32>, vector<4x16xf32>, vector<16x16xf32> -> vector<16x16xf32>
    %16 = arith.addf %2, %15 : vector<16x16xf32>
    %17 = tpu.iota {dimensions = array<i32: 0>} : vector<16x16xi32>
    %18 = tpu.iota {dimensions = array<i32: 1>} : vector<16x16xi32>
    %c1_i32_7 = arith.constant 1 : i32
    %19 = vector.broadcast %c1_i32_7 : i32 to vector<16x16xi32>
    %20 = arith.muli %19, %18 : vector<16x16xi32>
    %c0_i32 = arith.constant 0 : i32
    %21 = vector.broadcast %c0_i32 : i32 to vector<16x16xi32>
    %22 = arith.addi %20, %21 : vector<16x16xi32>
    %23 = arith.cmpi eq, %17, %22 : vector<16x16xi32>
    %24 = arith.extui %23 : vector<16x16xi1> to vector<16x16xi32>
    %25 = arith.sitofp %24 : vector<16x16xi32> to vector<16x16xf32>
    %cst_8 = arith.constant dense<0.000000e+00> : vector<4x16xf32>
    %26 = tpu.matmul %1, %25, %cst_8 {dimension_numbers = #tpu.dot_dimension_numbers<[1], [0], [0], [1], [0, 0, 1, 1], [], []>, precision = #tpu.contract_precision<fp32>} : vector<4x16xf32>, vector<16x16xf32>, vector<4x16xf32> -> vector<4x16xf32>
    %c1 = arith.constant 1 : index
    %c0_9 = arith.constant 0 : index
    %c0_10 = arith.constant 0 : index
    %27 = vector.load %arg2[%c1, %c0_9, %c0_10] : memref<3x16x4xf32, #tpu.memory_space<vmem>>, vector<1x16x4xf32>
    %28 = vector.shape_cast %27 : vector<1x16x4xf32> to vector<16x4xf32>
    %cst_11 = arith.constant dense<0.000000e+00> : vector<16x16xf32>
    %29 = tpu.matmul %28, %26, %cst_11 {dimension_numbers = #tpu.dot_dimension_numbers<[1], [0], [0], [1], [0, 0, 1, 1], [], []>, precision = #tpu.contract_precision<fp32>} : vector<16x4xf32>, vector<4x16xf32>, vector<16x16xf32> -> vector<16x16xf32>
    %30 = arith.addf %16, %29 : vector<16x16xf32>
    %31 = tpu.iota {dimensions = array<i32: 0>} : vector<16x16xi32>
    %32 = tpu.iota {dimensions = array<i32: 1>} : vector<16x16xi32>
    %c1_i32_12 = arith.constant 1 : i32
    %33 = vector.broadcast %c1_i32_12 : i32 to vector<16x16xi32>
    %34 = arith.muli %33, %32 : vector<16x16xi32>
    %c1_i32_13 = arith.constant 1 : i32
    %35 = vector.broadcast %c1_i32_13 : i32 to vector<16x16xi32>
    %36 = arith.addi %34, %35 : vector<16x16xi32>
    %37 = arith.cmpi eq, %31, %36 : vector<16x16xi32>
    %38 = arith.extui %37 : vector<16x16xi1> to vector<16x16xi32>
    %39 = arith.sitofp %38 : vector<16x16xi32> to vector<16x16xf32>
    %cst_14 = arith.constant dense<0.000000e+00> : vector<4x16xf32>
    %40 = tpu.matmul %1, %39, %cst_14 {dimension_numbers = #tpu.dot_dimension_numbers<[1], [0], [0], [1], [0, 0, 1, 1], [], []>, precision = #tpu.contract_precision<fp32>} : vector<4x16xf32>, vector<16x16xf32>, vector<4x16xf32> -> vector<4x16xf32>
    %c2 = arith.constant 2 : index
    %c0_15 = arith.constant 0 : index
    %c0_16 = arith.constant 0 : index
    %41 = vector.load %arg2[%c2, %c0_15, %c0_16] : memref<3x16x4xf32, #tpu.memory_space<vmem>>, vector<1x16x4xf32>
    %42 = vector.shape_cast %41 : vector<1x16x4xf32> to vector<16x4xf32>
    %cst_17 = arith.constant dense<0.000000e+00> : vector<16x16xf32>
    %43 = tpu.matmul %42, %40, %cst_17 {dimension_numbers = #tpu.dot_dimension_numbers<[1], [0], [0], [1], [0, 0, 1, 1], [], []>, precision = #tpu.contract_precision<fp32>} : vector<16x4xf32>, vector<4x16xf32>, vector<16x16xf32> -> vector<16x16xf32>
    %44 = arith.addf %30, %43 : vector<16x16xf32>
    %c0_18 = arith.constant 0 : index
    %c0_19 = arith.constant 0 : index
    %45 = vector.load %arg3[%c0_18, %c0_19] : memref<16x1xf32, #tpu.memory_space<vmem>>, vector<16x1xf32>
    %46 = vector.broadcast %45 : vector<16x1xf32> to vector<16x16xf32>
    %47 = arith.addf %44, %46 : vector<16x16xf32>
    %cst_20 = arith.constant 0.000000e+00 : f32
    %48 = vector.broadcast %cst_20 : f32 to vector<16x16xf32>
    %49 = arith.maximumf %47, %48 : vector<16x16xf32>
    %cst_21 = arith.constant 0.000000e+00 : f32
    %50 = vector.broadcast %cst_21 : f32 to vector<32x8xf32>
    %51 = tpu.iota {dimensions = array<i32: 0>} : vector<16x8xi32>
    %52 = tpu.iota {dimensions = array<i32: 1>} : vector<16x8xi32>
    %c2_i32 = arith.constant 2 : i32
    %53 = vector.broadcast %c2_i32 : i32 to vector<16x8xi32>
    %54 = arith.muli %53, %52 : vector<16x8xi32>
    %c-1_i32_22 = arith.constant -1 : i32
    %55 = vector.broadcast %c-1_i32_22 : i32 to vector<16x8xi32>
    %56 = arith.addi %54, %55 : vector<16x8xi32>
    %57 = arith.cmpi eq, %51, %56 : vector<16x8xi32>
    %58 = arith.extui %57 : vector<16x8xi1> to vector<16x8xi32>
    %59 = arith.sitofp %58 : vector<16x8xi32> to vector<16x8xf32>
    %cst_23 = arith.constant dense<0.000000e+00> : vector<16x8xf32>
    %60 = tpu.matmul %49, %59, %cst_23 {dimension_numbers = #tpu.dot_dimension_numbers<[1], [0], [0], [1], [0, 0, 1, 1], [], []>, precision = #tpu.contract_precision<fp32>} : vector<16x16xf32>, vector<16x8xf32>, vector<16x8xf32> -> vector<16x8xf32>
    %c0_24 = arith.constant 0 : index
    %c0_25 = arith.constant 0 : index
    %c0_26 = arith.constant 0 : index
    %61 = vector.load %arg4[%c0_24, %c0_25, %c0_26] : memref<3x32x16xf32, #tpu.memory_space<vmem>>, vector<1x32x16xf32>
    %62 = vector.shape_cast %61 : vector<1x32x16xf32> to vector<32x16xf32>
    %cst_27 = arith.constant dense<0.000000e+00> : vector<32x8xf32>
    %63 = tpu.matmul %62, %60, %cst_27 {dimension_numbers = #tpu.dot_dimension_numbers<[1], [0], [0], [1], [0, 0, 1, 1], [], []>, precision = #tpu.contract_precision<fp32>} : vector<32x16xf32>, vector<16x8xf32>, vector<32x8xf32> -> vector<32x8xf32>
    %64 = arith.addf %50, %63 : vector<32x8xf32>
    %65 = tpu.iota {dimensions = array<i32: 0>} : vector<16x8xi32>
    %66 = tpu.iota {dimensions = array<i32: 1>} : vector<16x8xi32>
    %c2_i32_28 = arith.constant 2 : i32
    %67 = vector.broadcast %c2_i32_28 : i32 to vector<16x8xi32>
    %68 = arith.muli %67, %66 : vector<16x8xi32>
    %c0_i32_29 = arith.constant 0 : i32
    %69 = vector.broadcast %c0_i32_29 : i32 to vector<16x8xi32>
    %70 = arith.addi %68, %69 : vector<16x8xi32>
    %71 = arith.cmpi eq, %65, %70 : vector<16x8xi32>
    %72 = arith.extui %71 : vector<16x8xi1> to vector<16x8xi32>
    %73 = arith.sitofp %72 : vector<16x8xi32> to vector<16x8xf32>
    %cst_30 = arith.constant dense<0.000000e+00> : vector<16x8xf32>
    %74 = tpu.matmul %49, %73, %cst_30 {dimension_numbers = #tpu.dot_dimension_numbers<[1], [0], [0], [1], [0, 0, 1, 1], [], []>, precision = #tpu.contract_precision<fp32>} : vector<16x16xf32>, vector<16x8xf32>, vector<16x8xf32> -> vector<16x8xf32>
    %c1_31 = arith.constant 1 : index
    %c0_32 = arith.constant 0 : index
    %c0_33 = arith.constant 0 : index
    %75 = vector.load %arg4[%c1_31, %c0_32, %c0_33] : memref<3x32x16xf32, #tpu.memory_space<vmem>>, vector<1x32x16xf32>
    %76 = vector.shape_cast %75 : vector<1x32x16xf32> to vector<32x16xf32>
    %cst_34 = arith.constant dense<0.000000e+00> : vector<32x8xf32>
    %77 = tpu.matmul %76, %74, %cst_34 {dimension_numbers = #tpu.dot_dimension_numbers<[1], [0], [0], [1], [0, 0, 1, 1], [], []>, precision = #tpu.contract_precision<fp32>} : vector<32x16xf32>, vector<16x8xf32>, vector<32x8xf32> -> vector<32x8xf32>
    %78 = arith.addf %64, %77 : vector<32x8xf32>
    %79 = tpu.iota {dimensions = array<i32: 0>} : vector<16x8xi32>
    %80 = tpu.iota {dimensions = array<i32: 1>} : vector<16x8xi32>
    %c2_i32_35 = arith.constant 2 : i32
    %81 = vector.broadcast %c2_i32_35 : i32 to vector<16x8xi32>
    %82 = arith.muli %81, %80 : vector<16x8xi32>
    %c1_i32_36 = arith.constant 1 : i32
    %83 = vector.broadcast %c1_i32_36 : i32 to vector<16x8xi32>
    %84 = arith.addi %82, %83 : vector<16x8xi32>
    %85 = arith.cmpi eq, %79, %84 : vector<16x8xi32>
    %86 = arith.extui %85 : vector<16x8xi1> to vector<16x8xi32>
    %87 = arith.sitofp %86 : vector<16x8xi32> to vector<16x8xf32>
    %cst_37 = arith.constant dense<0.000000e+00> : vector<16x8xf32>
    %88 = tpu.matmul %49, %87, %cst_37 {dimension_numbers = #tpu.dot_dimension_numbers<[1], [0], [0], [1], [0, 0, 1, 1], [], []>, precision = #tpu.contract_precision<fp32>} : vector<16x16xf32>, vector<16x8xf32>, vector<16x8xf32> -> vector<16x8xf32>
    %c2_38 = arith.constant 2 : index
    %c0_39 = arith.constant 0 : index
    %c0_40 = arith.constant 0 : index
    %89 = vector.load %arg4[%c2_38, %c0_39, %c0_40] : memref<3x32x16xf32, #tpu.memory_space<vmem>>, vector<1x32x16xf32>
    %90 = vector.shape_cast %89 : vector<1x32x16xf32> to vector<32x16xf32>
    %cst_41 = arith.constant dense<0.000000e+00> : vector<32x8xf32>
    %91 = tpu.matmul %90, %88, %cst_41 {dimension_numbers = #tpu.dot_dimension_numbers<[1], [0], [0], [1], [0, 0, 1, 1], [], []>, precision = #tpu.contract_precision<fp32>} : vector<32x16xf32>, vector<16x8xf32>, vector<32x8xf32> -> vector<32x8xf32>
    %92 = arith.addf %78, %91 : vector<32x8xf32>
    %c0_42 = arith.constant 0 : index
    %c0_43 = arith.constant 0 : index
    %93 = vector.load %arg5[%c0_42, %c0_43] : memref<32x1xf32, #tpu.memory_space<vmem>>, vector<32x1xf32>
    %94 = vector.broadcast %93 : vector<32x1xf32> to vector<32x8xf32>
    %95 = arith.addf %92, %94 : vector<32x8xf32>
    %cst_44 = arith.constant 0.000000e+00 : f32
    %96 = vector.broadcast %cst_44 : f32 to vector<32x8xf32>
    %97 = arith.maximumf %95, %96 : vector<32x8xf32>
    %c0_45 = arith.constant 0 : index
    %c0_46 = arith.constant 0 : index
    %c0_47 = arith.constant 0 : index
    %98 = vector.load %arg8[%c0_45, %c0_46, %c0_47] : memref<1x32x8xf32, #tpu.memory_space<vmem>>, vector<1x32x8xf32>
    %99 = vector.shape_cast %98 : vector<1x32x8xf32> to vector<32x8xf32>
    %100 = vector.shape_cast %97 : vector<32x8xf32> to vector<1x32x8xf32>
    tpu.vector_store %arg8[%c0_45, %c0_46, %c0_47], %100 {strides = array<i32>} : memref<1x32x8xf32, #tpu.memory_space<vmem>>, vector<1x32x8xf32>,
    %cst_48 = arith.constant 0.000000e+00 : f32
    %101 = vector.broadcast %cst_48 : f32 to vector<32x4xf32>
    %102 = tpu.iota {dimensions = array<i32: 0>} : vector<8x4xi32>
    %103 = tpu.iota {dimensions = array<i32: 1>} : vector<8x4xi32>
    %c2_i32_49 = arith.constant 2 : i32
    %104 = vector.broadcast %c2_i32_49 : i32 to vector<8x4xi32>
    %105 = arith.muli %104, %103 : vector<8x4xi32>
    %c-1_i32_50 = arith.constant -1 : i32
    %106 = vector.broadcast %c-1_i32_50 : i32 to vector<8x4xi32>
    %107 = arith.addi %105, %106 : vector<8x4xi32>
    %108 = arith.cmpi eq, %102, %107 : vector<8x4xi32>
    %109 = arith.extui %108 : vector<8x4xi1> to vector<8x4xi32>
    %110 = arith.sitofp %109 : vector<8x4xi32> to vector<8x4xf32>
    %cst_51 = arith.constant dense<0.000000e+00> : vector<32x4xf32>
    %111 = tpu.matmul %97, %110, %cst_51 {dimension_numbers = #tpu.dot_dimension_numbers<[1], [0], [0], [1], [0, 0, 1, 1], [], []>, precision = #tpu.contract_precision<fp32>} : vector<32x8xf32>, vector<8x4xf32>, vector<32x4xf32> -> vector<32x4xf32>
    %c0_52 = arith.constant 0 : index
    %c0_53 = arith.constant 0 : index
    %c0_54 = arith.constant 0 : index
    %112 = vector.load %arg6[%c0_52, %c0_53, %c0_54] : memref<3x32x32xf32, #tpu.memory_space<vmem>>, vector<1x32x32xf32>
    %113 = vector.shape_cast %112 : vector<1x32x32xf32> to vector<32x32xf32>
    %cst_55 = arith.constant dense<0.000000e+00> : vector<32x4xf32>
    %114 = tpu.matmul %113, %111, %cst_55 {dimension_numbers = #tpu.dot_dimension_numbers<[1], [0], [0], [1], [0, 0, 1, 1], [], []>, precision = #tpu.contract_precision<fp32>} : vector<32x32xf32>, vector<32x4xf32>, vector<32x4xf32> -> vector<32x4xf32>
    %115 = arith.addf %101, %114 : vector<32x4xf32>
    %116 = tpu.iota {dimensions = array<i32: 0>} : vector<8x4xi32>
    %117 = tpu.iota {dimensions = array<i32: 1>} : vector<8x4xi32>
    %c2_i32_56 = arith.constant 2 : i32
    %118 = vector.broadcast %c2_i32_56 : i32 to vector<8x4xi32>
    %119 = arith.muli %118, %117 : vector<8x4xi32>
    %c0_i32_57 = arith.constant 0 : i32
    %120 = vector.broadcast %c0_i32_57 : i32 to vector<8x4xi32>
    %121 = arith.addi %119, %120 : vector<8x4xi32>
    %122 = arith.cmpi eq, %116, %121 : vector<8x4xi32>
    %123 = arith.extui %122 : vector<8x4xi1> to vector<8x4xi32>
    %124 = arith.sitofp %123 : vector<8x4xi32> to vector<8x4xf32>
    %cst_58 = arith.constant dense<0.000000e+00> : vector<32x4xf32>
    %125 = tpu.matmul %97, %124, %cst_58 {dimension_numbers = #tpu.dot_dimension_numbers<[1], [0], [0], [1], [0, 0, 1, 1], [], []>, precision = #tpu.contract_precision<fp32>} : vector<32x8xf32>, vector<8x4xf32>, vector<32x4xf32> -> vector<32x4xf32>
    %c1_59 = arith.constant 1 : index
    %c0_60 = arith.constant 0 : index
    %c0_61 = arith.constant 0 : index
    %126 = vector.load %arg6[%c1_59, %c0_60, %c0_61] : memref<3x32x32xf32, #tpu.memory_space<vmem>>, vector<1x32x32xf32>
    %127 = vector.shape_cast %126 : vector<1x32x32xf32> to vector<32x32xf32>
    %cst_62 = arith.constant dense<0.000000e+00> : vector<32x4xf32>
    %128 = tpu.matmul %127, %125, %cst_62 {dimension_numbers = #tpu.dot_dimension_numbers<[1], [0], [0], [1], [0, 0, 1, 1], [], []>, precision = #tpu.contract_precision<fp32>} : vector<32x32xf32>, vector<32x4xf32>, vector<32x4xf32> -> vector<32x4xf32>
    %129 = arith.addf %115, %128 : vector<32x4xf32>
    %130 = tpu.iota {dimensions = array<i32: 0>} : vector<8x4xi32>
    %131 = tpu.iota {dimensions = array<i32: 1>} : vector<8x4xi32>
    %c2_i32_63 = arith.constant 2 : i32
    %132 = vector.broadcast %c2_i32_63 : i32 to vector<8x4xi32>
    %133 = arith.muli %132, %131 : vector<8x4xi32>
    %c1_i32_64 = arith.constant 1 : i32
    %134 = vector.broadcast %c1_i32_64 : i32 to vector<8x4xi32>
    %135 = arith.addi %133, %134 : vector<8x4xi32>
    %136 = arith.cmpi eq, %130, %135 : vector<8x4xi32>
    %137 = arith.extui %136 : vector<8x4xi1> to vector<8x4xi32>
    %138 = arith.sitofp %137 : vector<8x4xi32> to vector<8x4xf32>
    %cst_65 = arith.constant dense<0.000000e+00> : vector<32x4xf32>
    %139 = tpu.matmul %97, %138, %cst_65 {dimension_numbers = #tpu.dot_dimension_numbers<[1], [0], [0], [1], [0, 0, 1, 1], [], []>, precision = #tpu.contract_precision<fp32>} : vector<32x8xf32>, vector<8x4xf32>, vector<32x4xf32> -> vector<32x4xf32>
    %c2_66 = arith.constant 2 : index
    %c0_67 = arith.constant 0 : index
    %c0_68 = arith.constant 0 : index
    %140 = vector.load %arg6[%c2_66, %c0_67, %c0_68] : memref<3x32x32xf32, #tpu.memory_space<vmem>>, vector<1x32x32xf32>
    %141 = vector.shape_cast %140 : vector<1x32x32xf32> to vector<32x32xf32>
    %cst_69 = arith.constant dense<0.000000e+00> : vector<32x4xf32>
    %142 = tpu.matmul %141, %139, %cst_69 {dimension_numbers = #tpu.dot_dimension_numbers<[1], [0], [0], [1], [0, 0, 1, 1], [], []>, precision = #tpu.contract_precision<fp32>} : vector<32x32xf32>, vector<32x4xf32>, vector<32x4xf32> -> vector<32x4xf32>
    %143 = arith.addf %129, %142 : vector<32x4xf32>
    %c0_70 = arith.constant 0 : index
    %c0_71 = arith.constant 0 : index
    %144 = vector.load %arg7[%c0_70, %c0_71] : memref<32x1xf32, #tpu.memory_space<vmem>>, vector<32x1xf32>
    %145 = vector.broadcast %144 : vector<32x1xf32> to vector<32x4xf32>
    %146 = arith.addf %143, %145 : vector<32x4xf32>
    %cst_72 = arith.constant 0.000000e+00 : f32
    %147 = vector.broadcast %cst_72 : f32 to vector<32x4xf32>
    %148 = arith.maximumf %146, %147 : vector<32x4xf32>
    %c0_73 = arith.constant 0 : index
    %c0_74 = arith.constant 0 : index
    %c0_75 = arith.constant 0 : index
    %149 = vector.load %arg9[%c0_73, %c0_74, %c0_75] : memref<1x32x4xf32, #tpu.memory_space<vmem>>, vector<1x32x4xf32>
    %150 = vector.shape_cast %149 : vector<1x32x4xf32> to vector<32x4xf32>
    %151 = vector.shape_cast %148 : vector<32x4xf32> to vector<1x32x4xf32>
    tpu.vector_store %arg9[%c0_73, %c0_74, %c0_75], %151 {strides = array<i32>} : memref<1x32x4xf32, #tpu.memory_space<vmem>>, vector<1x32x4xf32>,
    return
  }
  func.func @transform_0(%arg0: i32) -> (i32, i32, i32) {
    %c0_i32 = arith.constant 0 : i32
    %c0_i32_0 = arith.constant 0 : i32
    %c0_i32_1 = arith.constant 0 : i32
    return %arg0, %c0_i32, %c0_i32_0 : i32, i32, i32
  }
  func.func @transform_1(%arg0: i32) -> (i32, i32, i32) {
    %c0_i32 = arith.constant 0 : i32
    %c0_i32_0 = arith.constant 0 : i32
    %c0_i32_1 = arith.constant 0 : i32
    %c0_i32_2 = arith.constant 0 : i32
    return %c0_i32, %c0_i32_0, %c0_i32_1 : i32, i32, i32
  }
  func.func @transform_2(%arg0: i32) -> (i32, i32) {
    %c0_i32 = arith.constant 0 : i32
    %c0_i32_0 = arith.constant 0 : i32
    %c0_i32_1 = arith.constant 0 : i32
    return %c0_i32, %c0_i32_0 : i32, i32
  }
  func.func @transform_3(%arg0: i32) -> (i32, i32, i32) {
    %c0_i32 = arith.constant 0 : i32
    %c0_i32_0 = arith.constant 0 : i32
    %c0_i32_1 = arith.constant 0 : i32
    %c0_i32_2 = arith.constant 0 : i32
    return %c0_i32, %c0_i32_0, %c0_i32_1 : i32, i32, i32
  }
  func.func @transform_4(%arg0: i32) -> (i32, i32) {
    %c0_i32 = arith.constant 0 : i32
    %c0_i32_0 = arith.constant 0 : i32
    %c0_i32_1 = arith.constant 0 : i32
    return %c0_i32, %c0_i32_0 : i32, i32
  }
  func.func @transform_5(%arg0: i32) -> (i32, i32, i32) {
    %c0_i32 = arith.constant 0 : i32
    %c0_i32_0 = arith.constant 0 : i32
    %c0_i32_1 = arith.constant 0 : i32
    %c0_i32_2 = arith.constant 0 : i32
    return %c0_i32, %c0_i32_0, %c0_i32_1 : i32, i32, i32
  }
  func.func @transform_6(%arg0: i32) -> (i32, i32) {
    %c0_i32 = arith.constant 0 : i32
    %c0_i32_0 = arith.constant 0 : i32
    %c0_i32_1 = arith.constant 0 : i32
    return %c0_i32, %c0_i32_0 : i32, i32
  }
  func.func @transform_7(%arg0: i32) -> (i32, i32, i32) {
    %c0_i32 = arith.constant 0 : i32
    %c0_i32_0 = arith.constant 0 : i32
    %c0_i32_1 = arith.constant 0 : i32
    return %arg0, %c0_i32, %c0_i32_0 : i32, i32, i32
  }
  func.func @transform_8(%arg0: i32) -> (i32, i32, i32) {
    %c0_i32 = arith.constant 0 : i32
    %c0_i32_0 = arith.constant 0 : i32
    %c0_i32_1 = arith.constant 0 : i32
    return %arg0, %c0_i32, %c0_i32_0 : i32, i32, i32
  }
}

</mosaic_0001>

<bundles_post_ra>
// kernel: tpu_custom_call.1
= control target key start
LH: loop header
LB: loop body
LE: loop exit
PB: predicated region body
PF: predicated region fallthrough
CT: control target
= control target key end

     0   :  { %s11993_s27 = smov 0   ;;  %s13607_s0 = inlined_call_operand.vmem [shape: f32[2,4,16], index: 0, kind: input, shape index: {}]   ;;  %s13608_s1 = inlined_call_operand.vmem [shape: f32[3,16,4], index: 1, kind: input, shape index: {}]   ;;  %s13609_s2 = inlined_call_operand.vmem [shape: f32[16,1], index: 2, kind: input, shape index: {}]   ;;  %s13610_s3 = inlined_call_operand.vmem [shape: f32[3,32,16], index: 3, kind: input, shape index: {}]   ;;  %s13611_s4 = inlined_call_operand.vmem [shape: f32[32,1], index: 4, kind: input, shape index: {}]   ;;  %s13612_s5 = inlined_call_operand.vmem [shape: f32[3,32,32], index: 5, kind: input, shape index: {}]   ;;  %s13613_s6 = inlined_call_operand.vmem [shape: f32[32,1], index: 6, kind: input, shape index: {}]   ;;  %s13614_s7 = inlined_call_operand.vmem [shape: f32[2,32,8], index: 7, kind: output, shape index: {0}]   ;;  %s13615_s8 = inlined_call_operand.vmem [shape: f32[2,32,4], index: 8, kind: output, shape index: {1}]  }
   0x1 LB: > { %s10391_s28 = sadd.s32 4294967295, %s11942_s27   ;;  %p10395_p0 = scmp.ge.s32.totalorder %s11942_s27, 1  ;;  %s11942_s27 = sphi %s11993_s27, %s19_s27  }
   0x2   : > { %p264_p1 = scmp.lt.s32.totalorder %s11942_s27, 3 }
   0x4   : > { %p265_p2 = pnand %p10395_p0, %p264_p1 }
   0x6   : > { %268 = sbr.rel (%p265_p2) target bundleno = 2265 (0x8d9), region = 48 }
   0xb   : > { %v317_v0 = vlaneseq  ;;  %p302_p3 = scmp.lt.s32.totalorder %s10391_s28, 1  ;;  %v11944_v1 = vmov 0.0   ;;  %vm11945_vm0 = vmmov 0   ;;  %vm329_vm1 = vcmask 130048   ;;  %v10417_v34 = vld [vmem:[%s13608_s1 + $0x10] sm:$0xff]  ;;  %v10418_v53 = vld [vmem:[%s13608_s1 + $0x18] sm:$0xff] }
   0xc   : > { %11004 = vmatprep.subr.mxu0 %v11944_v1  ;;  %11011 = vmatprep.subr.mxu1 %v11944_v1  ;;  %v13616_v7 = vmov 1.0   ;;  %vm1262_vm6 = vcmask 31744   ;;  %vm1269_vm7 = vcmask 1043456  }
   0xd   : > { %v12003_v2 = vshrl.u32 %v317_v0, 7  ;;  %v12005_v3 = vand.u32 127, %v317_v0  ;;  %11008 = vmatprep.mubr.msk.f32.mxu0 %vm11945_vm0, %v11944_v1  ;;  %s13648_s28 = smov (!%p302_p3, %s10391_s28), 1  ;;  %11015 = vmatprep.mubr.msk.f32.mxu1 %vm11945_vm0, %v11944_v1  ;;  %v1264_v35 = vsel %vm1262_vm6, %v10417_v34, 0  ;;  %v1267_v56 = vsel %vm1262_vm6, %v10418_v53, 0 }
   0xe   : > { %s10396_s29 = sshll.u32 %s13648_s28, 2  ;;  %v12166_v36 = vand.u32 4294901760, %v1264_v35  ;;  %v12180_v60 = vand.u32 4294901760, %v1267_v56 }
   0xf   : > { %v12014_v4 = vadd.s32 8, %v12003_v2  ;;  %v12017_v5 = vadd.s32 4294967295, %v12005_v3  ;;  %s305_s10 = scalar_lea.vmem %s13607_s0, %s10396_s29  ;;  %vm794_vm5 = vcmp.eq.s32.totalorder %v12003_v2, %v12005_v3  ;;  %s10480_s29 = sshll.u32 %s13648_s28, 5 }
  0x10   : > { %v316_v6 = vld [vmem:[%s305_s10] sm:$0xf]  ;;  %v10409_v25 = vsel %vm794_vm5, 1.0, %v11944_v1  ;;  %v12169_v37 = vsub.f32 %v1264_v35, %v12166_v36  ;;  %s310_s10 = scalar_lea.vmem %s13614_s7, %s10480_s29  ;;  %s315_s18 = scalar_lea.vmem %s13615_s8, %s10480_s29 }
  0x11   : > { %vm324_vm2 = vcmp.eq.s32.totalorder %v12014_v4, %v12017_v5  ;;  %vm323_vm3 = vcmp.eq.s32.totalorder %v12003_v2, %v12017_v5  ;;  %v331_v10 = vsel %vm329_vm1, %v316_v6, 0  ;;  %vm795_vm4 = vcmp.eq.s32.totalorder %v12014_v4, %v12005_v3 }
  0x12   : > { %11005 = vmatpush3.msk.msra.mxu0 %vm324_vm2, %v13616_v7  ;;  %v10402_v8 = vsel %vm324_vm2, 1.0, %v11944_v1  ;;  %v10401_v9 = vsel %vm323_vm3, 1.0, %v11944_v1  ;;  %v12041_v13 = vand.u32 4294901760, %v331_v10  ;;  %v10410_v23 = vsel %vm795_vm4, 1.0, %v11944_v1 }
  0x13   : > { %11006 = vmatprep.subr.mxu0 %v11944_v1  ;;  %v440_v11 = vsub.f32 %v10402_v8, %v10402_v8  ;;  %v447_v12 = vsub.f32 %v10401_v9, %v10401_v9  ;;  %v907_v26 = vsub.f32 %v10410_v23, %v10410_v23  ;;  %v914_v27 = vsub.f32 %v10409_v25, %v10409_v25 }
  0x14   : > { %11007 = vmatpush3.msk.msra.mxu0 %vm323_vm3, %v13616_v7  ;;  %v12048_v15 = vsub.f32 %v331_v10, %v12041_v13  ;;  %v1341_v38 = vand.u32 4294901760, %v12169_v37  ;;  %v12183_v5 = vsub.f32 %v1267_v56, %v12180_v60 }
  0x15   : > { %v441_v14 = vand.u32 4294901760, %v440_v11  ;;  %v448_v16 = vand.u32 4294901760, %v447_v12  ;;  %11018 = vmatprep.subr.mxu0 %v11944_v1  ;;  %v908_v28 = vand.u32 4294901760, %v907_v26  ;;  %v915_v29 = vand.u32 4294901760, %v914_v27 }
  0x16   : > { %v12054_v18 = vand.u32 4294901760, %v12048_v15  ;;  %v1342_v39 = vsub.f32 %v12169_v37, %v1341_v38 }
  0x17   : > { %v442_v17 = vsub.f32 %v440_v11, %v441_v14  ;;  %v449_v19 = vsub.f32 %v447_v12, %v448_v16  ;;  %v909_v30 = vsub.f32 %v907_v26, %v908_v28  ;;  %v916_v31 = vsub.f32 %v914_v27, %v915_v29 }
  0x18   : > { %v403_v21 = vsub.f32 %v12048_v15, %v12054_v18  ;;  %v1343_v40 = vand.u32 4294901760, %v1342_v39 }
  0x19   : > { %v443_v20 = vand.u32 4294901760, %v442_v17  ;;  %v450_v22 = vand.u32 4294901760, %v449_v19  ;;  %v910_v32 = vand.u32 4294901760, %v909_v30  ;;  %v917_v33 = vand.u32 4294901760, %v916_v31 }
  0x1a   : > { %v12064_v24 = vand.u32 4294901760, %v403_v21  ;;  %v1351_v17 = vand.u32 4294901760, %v12183_v5 }
  0x1b   : > { %11012 = vmatpush3.msra.mxu1 %v443_v20 }
  0x1c   : > { %11013 = vmatprep.subr.mxu1 %v11944_v1  ;;  %11009 = vmatmul.mubr.f32.vlgmr.msra.gmra.mxu0 %v12064_v24 }
  0x1d   : > { %11014 = vmatpush3.msra.mxu1 %v450_v22  ;;  %11019 = vmatpush3.msra.mxu0 %v440_v11  ;;  %v792_v11 = vld [vmem:[%s13608_s1] sm:$0xff] }
  0x1e   : > { %11016 = vmatmul.mubr.f32.vlgmr.msra.gmra.mxu1 %v12041_v13  ;;  %11025 = vmatprep.subr.mxu1 %v11944_v1  ;;  %v1763_v20 = vsel %vm1262_vm6, %v792_v11, 0  ;;  %v6598_v11 = vld [vmem:[%s13611_s4 + $0x10] sm:$0xff] }
  0x1f   : > { %11020 = vmatprep.subr.mxu0 %v11944_v1  ;;  %11026 = vmatpush3.msk.msra.mxu1 %vm324_vm2, %v13616_v7 }
  0x20   : > { %11021 = vmatpush3.msra.mxu0 %v447_v12  ;;  %11022 = vmatprep.mubr.msk.f32.mxu0 %vm11945_vm0, %v11944_v1 }
  0x21   : > { %11027 = vmatprep.subr.mxu1 %v11944_v1  ;;  %11023 = vmatmul.mubr.f32.vlgmr.msra.gmra.mxu0 %v12048_v15 }
  0x22   : > { %11028 = vmatpush3.msk.msra.mxu1 %vm323_vm3, %v13616_v7  ;;  %11029 = vmatprep.mubr.msk.f32.mxu1 %vm11945_vm0, %v11944_v1 }
  0x23   : > { %11032 = vmatprep.subr.mxu0 %v11944_v1  ;;  %11030 = vmatmul.mubr.f32.vlgmr.msra.gmra.mxu1 %v12054_v18 }
  0x24   : > { %11033 = vmatpush3.msra.mxu0 %v441_v14  ;;  %11039 = vmatprep.subr.mxu1 %v11944_v1  ;;  %v793_v14 = vld [vmem:[%s13608_s1 + $0x8] sm:$0xff] }
  0x25   : > { %11034 = vmatprep.subr.mxu0 %v11944_v1  ;;  %11040 = vmatpush3.msk.msra.mxu1 %vm324_vm2, %v13616_v7  ;;  %v1766_v22 = vsel %vm1262_vm6, %v793_v14, 0  ;;  %v10269_v14 = vld [vmem:[%s13613_s6 + $0x10] sm:$0xff] }
  0x26   : > { %11035 = vmatpush3.msra.mxu0 %v448_v16  ;;  %11036 = vmatprep.mubr.msk.f32.mxu0 %vm11945_vm0, %v11944_v1  ;;  %v12198_v31 = vand.u32 4294901760, %v1766_v22 }
  0x27   : > { %11041 = vmatprep.subr.mxu1 %v11944_v1  ;;  %11037 = vmatmul.mubr.f32.vlgmr.msra.gmra.mxu0 %v12041_v13 }
  0x28   : > { %11042 = vmatpush3.msk.msra.mxu1 %vm323_vm3, %v13616_v7  ;;  %11043 = vmatprep.mubr.msk.f32.mxu1 %vm11945_vm0, %v11944_v1 }
  0x29   : > { %11046 = vmatprep.subr.mxu0 %v11944_v1  ;;  %11044 = vmatmul.mubr.f32.vlgmr.msra.gmra.mxu1 %v12041_v13 }
  0x2a   : > { %11047 = vmatpush3.msk.msra.mxu0 %vm795_vm4, %v13616_v7  ;;  %11053 = vmatprep.subr.mxu1 %v11944_v1 }
  0x2b   : > { %11048 = vmatprep.subr.mxu0 %v11944_v1  ;;  %11054 = vmatpush3.msra.mxu1 %v910_v32 }
  0x2c   : > { %11049 = vmatpush3.msk.msra.mxu0 %vm794_vm5, %v13616_v7  ;;  %11050 = vmatprep.mubr.msk.f32.mxu0 %vm11945_vm0, %v11944_v1 }
  0x2d   : > { %11055 = vmatprep.subr.mxu1 %v11944_v1  ;;  %11051 = vmatmul.mubr.f32.vlgmr.msra.gmra.mxu0 %v12064_v24 }
  0x2e   : > { %11056 = vmatpush3.msra.mxu1 %v917_v33  ;;  %11057 = vmatprep.mubr.msk.f32.mxu1 %vm11945_vm0, %v11944_v1 }
  0x2f   : > { %11060 = vmatprep.subr.mxu0 %v11944_v1  ;;  %11058 = vmatmul.mubr.f32.vlgmr.msra.gmra.mxu1 %v12041_v13 }
  0x30   : > { %11061 = vmatpush3.msra.mxu0 %v907_v26  ;;  %11067 = vmatprep.subr.mxu1 %v11944_v1 }
  0x31   : > { %11062 = vmatprep.subr.mxu0 %v11944_v1  ;;  %11068 = vmatpush3.msk.msra.mxu1 %vm795_vm4, %v13616_v7 }
  0x32   : > { %11063 = vmatpush3.msra.mxu0 %v914_v27  ;;  %11064 = vmatprep.mubr.msk.f32.mxu0 %vm11945_vm0, %v11944_v1  ;;  %v1352_v27 = vsub.f32 %v12183_v5, %v1351_v17 }
  0x33   : > { %11069 = vmatprep.subr.mxu1 %v11944_v1  ;;  %11065 = vmatmul.mubr.f32.vlgmr.msra.gmra.mxu0 %v12048_v15 }
  0x34   : > { %11070 = vmatpush3.msk.msra.mxu1 %vm794_vm5, %v13616_v7  ;;  %11071 = vmatprep.mubr.msk.f32.mxu1 %vm11945_vm0, %v11944_v1  ;;  %v1353_v39 = vand.u32 4294901760, %v1352_v27 }
  0x35   : > { %11074 = vmatprep.subr.mxu0 %v11944_v1  ;;  %11072 = vmatmul.mubr.f32.vlgmr.msra.gmra.mxu1 %v12054_v18 }
  0x36   : > { %11075 = vmatpush3.msra.mxu0 %v908_v28  ;;  %11081 = vmatprep.subr.mxu1 %v11944_v1  ;;  %v12195_v28 = vand.u32 4294901760, %v1763_v20 }
  0x37   : > { %11076 = vmatprep.subr.mxu0 %v11944_v1  ;;  %11082 = vmatpush3.msk.msra.mxu1 %vm795_vm4, %v13616_v7 }
  0x38   : > { %11077 = vmatpush3.msra.mxu0 %v915_v29  ;;  %11078 = vmatprep.mubr.msk.f32.mxu0 %vm11945_vm0, %v11944_v1 }
  0x39   : > { %11083 = vmatprep.subr.mxu1 %v11944_v1  ;;  %11079 = vmatmul.mubr.f32.vlgmr.msra.gmra.mxu0 %v12041_v13 }
  0x3a   : > { %11084 = vmatpush3.msk.msra.mxu1 %vm794_vm5, %v13616_v7  ;;  %11085 = vmatprep.mubr.msk.f32.mxu1 %vm11945_vm0, %v11944_v1 }
  0x3b   : > { %11086 = vmatmul.mubr.f32.vlgmr.msra.gmra.mxu1 %v12041_v13  ;;  %11090 = vmatprep.mubr.f32.mxu0 %v1343_v40  ;;  %v12204_v40 = vsub.f32 %v1763_v20, %v12195_v28 }
  0x3c   : > { %11095 = vmatprep.mubr.f32.mxu1 %v12166_v36 }
  0xdc   : > { %v406_v41 = vpop.f32.mrf.mxu0 }
  0xde   : > { %v487_v42 = vpop.f32.mrf.mxu1  ;;  %v11010_v43 = vpop.f32.mrf.mxu0 }
  0xdf   : > { %v488_v50 = vadd.f32 %v487_v42, %v406_v41  ;;  %v12207_v41 = vsub.f32 %v1766_v22, %v12198_v31 }
  0xe0   : > { %v11017_v44 = vpop.f32.mrf.mxu1 }
  0xe1   : > { %v563_v45 = vpop.f32.mrf.mxu0 }
  0xe2   : > { %v564_v55 = vadd.f32 %v563_v45, %v488_v50  ;;  %v1839_v45 = vand.u32 4294901760, %v12204_v40 }
  0xe3   : > { %v638_v46 = vpop.f32.mrf.mxu1  ;;  %v11024_v47 = vpop.f32.mrf.mxu0 }
  0xe4   : > { %v639_v61 = vadd.f32 %v638_v46, %v564_v55  ;;  %v1849_v46 = vand.u32 4294901760, %v12207_v41  ;;  %v1840_v50 = vsub.f32 %v12204_v40, %v1839_v45 }
  0xe5   : > { %v11031_v48 = vpop.f32.mrf.mxu1 }
  0xe6   : > { %v12214_v48 = vadd.s32 1, %v12005_v3  ;;  %v1841_v53 = vand.u32 4294901760, %v1840_v50 }
  0xe7   : > { %v715_v49 = vpop.f32.mrf.mxu0 }
  0xe8   : > { %v716_v6 = vadd.f32 %v715_v49, %v639_v61  ;;  %vm2262_vm8 = vcmp.eq.s32.totalorder %v12014_v4, %v12214_v48  ;;  %vm2261_vm9 = vcmp.eq.s32.totalorder %v12003_v2, %v12214_v48 }
  0xe9   : > { %v788_v51 = vpop.f32.mrf.mxu1  ;;  %v11038_v52 = vpop.f32.mrf.mxu0  ;;  %v10420_v56 = vsel %vm2262_vm8, 1.0, %v11944_v1 }
  0xea   : > { %v789_v19 = vadd.f32 %v788_v51, %v716_v6  ;;  %v1850_v52 = vsub.f32 %v12207_v41, %v1849_v46 }
  0xeb   : > { %v11045_v54 = vpop.f32.mrf.mxu1 }
  0xec   : > { %v1769_v29 = vsel %vm1269_vm7, %v789_v19, 0  ;;  %v1851_v55 = vand.u32 4294901760, %v1850_v52 }
  0xed   : > { %v873_v57 = vpop.f32.mrf.mxu0  ;;  %v12201_v34 = vand.u32 4294901760, %v1769_v29 }
  0xef   : > { %v954_v58 = vpop.f32.mrf.mxu1  ;;  %v11052_v59 = vpop.f32.mrf.mxu0  ;;  %v1889_v43 = vsub.f32 %v1769_v29, %v12201_v34 }
  0xf0   : > { %v955_v62 = vadd.f32 %v954_v58, %v873_v57  ;;  %v10419_v58 = vsel %vm2261_vm9, 1.0, %v11944_v1  ;;  %v2374_v59 = vsub.f32 %v10420_v56, %v10420_v56 }
  0xf1   : > { %v11059_v63 = vpop.f32.mrf.mxu1  ;;  %v1890_v51 = vand.u32 4294901760, %v1889_v43  ;;  %v2381_v61 = vsub.f32 %v10419_v58, %v10419_v58 }
  0xf3   : > { %v1030_v0 = vpop.f32.mrf.mxu0  ;;  %v1891_v54 = vsub.f32 %v1889_v43, %v1890_v51 }
  0xf4   : > { %v1031_v8 = vadd.f32 %v1030_v0, %v955_v62 }
  0xf5   : > { %v1105_v9 = vpop.f32.mrf.mxu1  ;;  %v11066_v10 = vpop.f32.mrf.mxu0  ;;  %v1892_v57 = vand.u32 4294901760, %v1891_v54 }
  0xf6   : > { %v1106_v12 = vadd.f32 %v1105_v9, %v1031_v8  ;;  %v3229_v8 = vld [vmem:[%s13609_s2] sm:$0xff]  ;;  %v11947_v9 = vmov 0   ;;  %v3230_v10 = vld [vmem:[%s13609_s2 + $0x8] sm:$0xff] }
  0xf7   : > { %v11073_v16 = vpop.f32.mrf.mxu1  ;;  %11934 = vset.pattern.permute.xlu0 %v11947_v9  ;;  %11935 = vset.pattern.permute.xlu1 %v11947_v9 }
  0xf8   : > { %3233 = vperm.xlu0 %11934, %v3229_v8  }
  0xf9   : > { %v1182_v21 = vpop.f32.mrf.mxu0 }
  0xfa   : > { %v1183_v23 = vadd.f32 %v1182_v21, %v1106_v12  ;;  %v10267_v12 = vld [vmem:[%s13613_s6] sm:$0xff] }
  0xfb   : > { %v1255_v25 = vpop.f32.mrf.mxu1  ;;  %v11080_v26 = vpop.f32.mrf.mxu0 }
  0xfc   : > { %v1256_v30 = vadd.f32 %v1255_v25, %v1183_v23  ;;  %3238 = vperm.xlu0 %11934, %v3230_v10  }
  0xfd   : > { %v11087_v32 = vpop.f32.mrf.mxu1 }
  0xfe   : > { %v1271_v33 = vsel %vm1269_vm7, %v1256_v30, 0 }
  0xff   : > { %v1304_v35 = vand.u32 4294901760, %v1271_v33 }
 0x100   : > { %6612 = vperm.xlu0 %11934, %v6598_v11  }
 0x101   : > { %v1391_v42 = vsub.f32 %v1271_v33, %v1304_v35  ;;  %11088 = vmatprep.subr.mxu0 %v1304_v35 }
 0x102   : > { %11089 = vmatpush3.msra.mxu0 %v1304_v35 }
 0x103   : > { %11091 = vmatmul.mubr.f32.vlgmr.msra.gmra.mxu0 %v1353_v39  ;;  %11098 = vmatprep.subr.mxu0 %v1391_v42  ;;  %v1392_v44 = vand.u32 4294901760, %v1391_v42 }
 0x104   : > { %11099 = vmatpush3.msra.mxu0 %v1391_v42  ;;  %11100 = vmatprep.mubr.f32.mxu0 %v12169_v37  ;;  %v2375_v37 = vand.u32 4294901760, %v2374_v59 }
 0x105   : > { %11108 = vmatprep.subr.mxu0 %v1392_v44  ;;  %v1393_v47 = vsub.f32 %v1391_v42, %v1392_v44  ;;  %10273 = vperm.xlu0 %11934, %v10267_v12  }
 0x107   : > { %11101 = vmatmul.mubr.f32.vlgmr.msra.gmra.mxu0 %v12183_v5  ;;  %v1394_v49 = vand.u32 4294901760, %v1393_v47 }
 0x108   : > { %11109 = vmatpush3.msra.mxu0 %v1392_v44  ;;  %11110 = vmatprep.mubr.f32.mxu0 %v12166_v36 }
 0x109   : > { %11118 = vmatprep.subr.mxu0 %v12201_v34  ;;  %11093 = vmatprep.subr.mxu1 %v1394_v49 }
 0x10a   : > { %11094 = vmatpush3.msra.mxu1 %v1394_v49  ;;  %10283 = vperm.xlu0 %11934, %v10269_v14  }
 0x10b   : > { %11096 = vmatmul.mubr.f32.vlgmr.msra.gmra.mxu1 %v12180_v60  ;;  %11103 = vmatprep.subr.mxu1 %v1304_v35 }
 0x10c   : > { %11111 = vmatmul.mubr.f32.vlgmr.msra.gmra.mxu0 %v12180_v60  ;;  %11104 = vmatpush3.msra.mxu1 %v1304_v35 }
 0x10d   : > { %11119 = vmatpush3.msra.mxu0 %v12201_v34  ;;  %11113 = vmatprep.subr.mxu1 %v1304_v35 }
 0x10e   : > { %11128 = vmatprep.subr.mxu0 %v1889_v43  ;;  %11105 = vmatprep.mubr.f32.mxu1 %v1341_v38  ;;  %v2382_v38 = vand.u32 4294901760, %v2381_v61 }
 0x10f   : > { %11120 = vmatprep.mubr.f32.mxu0 %v1841_v53  ;;  %11106 = vmatmul.mubr.f32.vlgmr.msra.gmra.mxu1 %v1351_v17 }
 0x110   : > { %11114 = vmatpush3.msra.mxu1 %v1304_v35  ;;  %11121 = vmatmul.mubr.f32.vlgmr.msra.gmra.mxu0 %v1851_v55 }
 0x111   : > { %11129 = vmatpush3.msra.mxu0 %v1889_v43  ;;  %11123 = vmatprep.subr.mxu1 %v1892_v57 }
 0x112   : > { %11138 = vmatprep.subr.mxu0 %v1890_v51  ;;  %11115 = vmatprep.mubr.f32.mxu1 %v12166_v36  ;;  %v2376_v36 = vsub.f32 %v2374_v59, %v2375_v37 }
 0x113   : > { %11130 = vmatprep.mubr.f32.mxu0 %v12204_v40  ;;  %11116 = vmatmul.mubr.f32.vlgmr.msra.gmra.mxu1 %v12180_v60  ;;  %v2383_v60 = vsub.f32 %v2381_v61, %v2382_v38 }
 0x114   : > { %11124 = vmatpush3.msra.mxu1 %v1892_v57  ;;  %11131 = vmatmul.mubr.f32.vlgmr.msra.gmra.mxu0 %v12207_v41  ;;  %v2377_v62 = vand.u32 4294901760, %v2376_v36 }
 0x115   : > { %11139 = vmatpush3.msra.mxu0 %v1890_v51  ;;  %11133 = vmatprep.subr.mxu1 %v12201_v34  ;;  %v2384_v63 = vand.u32 4294901760, %v2383_v60  ;;  %v10428_v51 = vld [vmem:[%s13608_s1 + $0x28] sm:$0xff] }
 0x116   : > { %11125 = vmatprep.mubr.f32.mxu1 %v12195_v28  ;;  %11140 = vmatprep.mubr.f32.mxu0 %v12195_v28  ;;  %v2733_v56 = vsel %vm1262_vm6, %v10428_v51, 0 }
 0x117   : > { %11126 = vmatmul.mubr.f32.vlgmr.msra.gmra.mxu1 %v12198_v31  ;;  %11148 = vmatprep.subr.mxu0 %v11944_v1 }
 0x118   : > { %11134 = vmatpush3.msra.mxu1 %v12201_v34  ;;  %11135 = vmatprep.mubr.f32.mxu1 %v1839_v45 }
 0x119   : > { %11143 = vmatprep.subr.mxu1 %v12201_v34  ;;  %11141 = vmatmul.mubr.f32.vlgmr.msra.gmra.mxu0 %v12198_v31 }
 0x11a   : > { %11149 = vmatpush3.msk.msra.mxu0 %vm2262_vm8, %v13616_v7  ;;  %11152 = vmatprep.mubr.msk.f32.mxu0 %vm11945_vm0, %v11944_v1 }
 0x11b   : > { %11136 = vmatmul.mubr.f32.vlgmr.msra.gmra.mxu1 %v1849_v46  ;;  %11150 = vmatprep.subr.mxu0 %v11944_v1 }
 0x11c   : > { %11144 = vmatpush3.msra.mxu1 %v12201_v34  ;;  %11145 = vmatprep.mubr.f32.mxu1 %v12195_v28 }
 0x11d   : > { %11151 = vmatpush3.msk.msra.mxu0 %vm2261_vm9, %v13616_v7  ;;  %11155 = vmatprep.subr.mxu1 %v11944_v1 }
 0x11e   : > { %11153 = vmatmul.mubr.f32.vlgmr.msra.gmra.mxu0 %v12064_v24  ;;  %11162 = vmatprep.subr.mxu0 %v11944_v1 }
 0x11f   : > { %11146 = vmatmul.mubr.f32.vlgmr.msra.gmra.mxu1 %v12198_v31  ;;  %11163 = vmatpush3.msra.mxu0 %v2374_v59 }
 0x120   : > { %11156 = vmatpush3.msra.mxu1 %v2377_v62  ;;  %11164 = vmatprep.subr.mxu0 %v11944_v1 }
 0x121   : > { %11157 = vmatprep.subr.mxu1 %v11944_v1  ;;  %11159 = vmatprep.mubr.msk.f32.mxu1 %vm11945_vm0, %v11944_v1 }
 0x122   : > { %11158 = vmatpush3.msra.mxu1 %v2384_v63  ;;  %11165 = vmatpush3.msra.mxu0 %v2381_v61  ;;  %v2814_v61 = vand.u32 4294901760, %v2733_v56 }
 0x123   : > { %11166 = vmatprep.mubr.msk.f32.mxu0 %vm11945_vm0, %v11944_v1  ;;  %11160 = vmatmul.mubr.f32.vlgmr.msra.gmra.mxu1 %v12041_v13 }
 0x124   : > { %11167 = vmatmul.mubr.f32.vlgmr.msra.gmra.mxu0 %v12048_v15  ;;  %11169 = vmatprep.subr.mxu1 %v11944_v1  ;;  %v10427_v15 = vld [vmem:[%s13608_s1 + $0x20] sm:$0xff] }
 0x125   : > { %11176 = vmatprep.subr.mxu0 %v11944_v1  ;;  %11170 = vmatpush3.msk.msra.mxu1 %vm2262_vm8, %v13616_v7 }
 0x126   : > { %11177 = vmatpush3.msra.mxu0 %v2375_v37  ;;  %11171 = vmatprep.subr.mxu1 %v11944_v1 }
 0x127   : > { %11178 = vmatprep.subr.mxu0 %v11944_v1  ;;  %11172 = vmatpush3.msk.msra.mxu1 %vm2261_vm9, %v13616_v7 }
 0x128   : > { %11173 = vmatprep.mubr.msk.f32.mxu1 %vm11945_vm0, %v11944_v1  ;;  %11179 = vmatpush3.msra.mxu0 %v2382_v38 }
 0x129   : > { %11180 = vmatprep.mubr.msk.f32.mxu0 %vm11945_vm0, %v11944_v1  ;;  %11174 = vmatmul.mubr.f32.vlgmr.msra.gmra.mxu1 %v12054_v18  ;;  %v2730_v18 = vsel %vm1262_vm6, %v10427_v15, 0  ;;  %v2815_v15 = vsub.f32 %v2733_v56, %v2814_v61 }
 0x12a   : > { %11181 = vmatmul.mubr.f32.vlgmr.msra.gmra.mxu0 %v12041_v13  ;;  %11183 = vmatprep.subr.mxu1 %v11944_v1  ;;  %v12310_v24 = vand.u32 4294901760, %v2730_v18 }
 0x12b   : > { %11184 = vmatpush3.msk.msra.mxu1 %vm2262_vm8, %v13616_v7  ;;  %11187 = vmatprep.mubr.msk.f32.mxu1 %vm11945_vm0, %v11944_v1  ;;  %v2816_v8 = vand.u32 4294901760, %v2815_v15  ;;  %vm6628_vm0 = vcmask 64512  }
 0x12c   : > { %11185 = vmatprep.subr.mxu1 %v11944_v1  ;;  %v12313_v0 = vsub.f32 %v2730_v18, %v12310_v24 }
 0x12d   : > { %11186 = vmatpush3.msk.msra.mxu1 %vm2261_vm9, %v13616_v7  ;;  %v2817_v14 = vsub.f32 %v2815_v15, %v2816_v8 }
 0x12e   : > { %11188 = vmatmul.mubr.f32.vlgmr.msra.gmra.mxu1 %v12041_v13  ;;  %v2806_v5 = vand.u32 4294901760, %v12313_v0 }
 0x12f   : > { %11197 = vmatprep.mubr.f32.mxu1 %v12310_v24 }
 0x130   : > { %v2807_v6 = vsub.f32 %v12313_v0, %v2806_v5 }
 0x132   : > { %v2808_v13 = vand.u32 4294901760, %v2807_v6 }
 0x134   : > { %11192 = vmatprep.mubr.f32.mxu0 %v2808_v13 }
 0x1c3   : > { %v11092_v16 = vpop.f32.mrf.mxu0 }
 0x1c5   : > { %v12335_v17 = vpop.f32.mrf.mxu0 }
 0x1c7   : > { %v11102_v19 = vpop.f32.mrf.mxu0 }
 0x1c9   : > { %v12337_v20 = vpop.f32.mrf.mxu0 }
 0x1cb   : > { %v11097_v21 = vpop.f32.mrf.mxu1 }
 0x1cc   : > { %v1438_v22 = vadd.f32 %v11097_v21, %v11092_v16  ;;  %v11112_v23 = vpop.f32.mrf.mxu0 }
 0x1cd   : > { %v12339_v25 = vpop.f32.mrf.mxu1 }
 0x1ce   : > { %v1519_v26 = vadd.f32 %v11102_v19, %v1438_v22  ;;  %v12341_v27 = vpop.f32.mrf.mxu0 }
 0x1cf   : > { %v11107_v28 = vpop.f32.mrf.mxu1 }
 0x1d0   : > { %v1601_v29 = vadd.f32 %v11107_v28, %v1519_v26  ;;  %v11122_v30 = vpop.f32.mrf.mxu0 }
 0x1d1   : > { %v12343_v31 = vpop.f32.mrf.mxu1 }
 0x1d2   : > { %v1681_v32 = vadd.f32 %v11112_v23, %v1601_v29  ;;  %v12345_v33 = vpop.f32.mrf.mxu0  ;;  %v2818_v23 = vand.u32 4294901760, %v2817_v14 }
 0x1d3   : > { %v11117_v34 = vpop.f32.mrf.mxu1 }
 0x1d4   : > { %v1759_v35 = vadd.f32 %v11117_v34, %v1681_v32  ;;  %v11132_v39 = vpop.f32.mrf.mxu0  ;;  %v12372_v32 = vmul.u32 2, %v12005_v3 }
 0x1d5   : > { %v12347_v40 = vpop.f32.mrf.mxu1 }
 0x1d6   : > { %v1854_v41 = vadd.f32 %v11122_v30, %v1759_v35  ;;  %v12349_v42 = vpop.f32.mrf.mxu0  ;;  %v3246_v34 = vadd.s32 4294967295, %v12372_v32  ;;  %vm12438_vm12 = vcmp.eq.s32.totalorder %v12014_v4, %v12372_v32  ;;  %vm12446_vm13 = vcmp.eq.s32.totalorder %v12003_v2, %v12372_v32 }
 0x1d7   : > { %v11127_v43 = vpop.f32.mrf.mxu1 }
 0x1d8   : > { %v1936_v44 = vadd.f32 %v11127_v43, %v1854_v41  ;;  %vm12376_vm10 = vcmp.eq.s32.totalorder %v12014_v4, %v3246_v34  ;;  %vm12387_vm11 = vcmp.eq.s32.totalorder %v12003_v2, %v3246_v34 }
 0x1d9   : > { %v12351_v45 = vpop.f32.mrf.mxu1  ;;  %v11142_v46 = vpop.f32.mrf.mxu0 }
 0x1da   : > { %v2017_v47 = vadd.f32 %v11132_v39, %v1936_v44 }
 0x1db   : > { %v11137_v48 = vpop.f32.mrf.mxu1  ;;  %v12353_v49 = vpop.f32.mrf.mxu0 }
 0x1dc   : > { %v2099_v50 = vadd.f32 %v11137_v48, %v2017_v47 }
 0x1dd   : > { %v12358_v52 = vpop.f32.mrf.mxu1 }
 0x1de   : > { %v2179_v53 = vadd.f32 %v11142_v46, %v2099_v50  ;;  %v2340_v54 = vpop.f32.mrf.mxu0  ;;  %v1432_v50 = vadd.f32 %v12339_v25, %v12335_v17 }
 0x1df   : > { %v11147_v55 = vpop.f32.mrf.mxu1 }
 0x1e0   : > { %v12361_v57 = vadd.f32 %v11147_v55, %v2179_v53  ;;  %v11154_v58 = vpop.f32.mrf.mxu0  ;;  %v1512_v51 = vadd.f32 %v12337_v20, %v1432_v50 }
 0x1e1   : > { %v12363_v59 = vpop.f32.mrf.mxu1 }
 0x1e2   : > { %v1593_v53 = vadd.f32 %v12343_v31, %v1512_v51 }
 0x1e3   : > { %v2421_v37 = vpop.f32.mrf.mxu1 }
 0x1e4   : > { %v2422_v38 = vadd.f32 %v2421_v37, %v2340_v54  ;;  %v2497_v36 = vpop.f32.mrf.mxu0  ;;  %v1675_v54 = vadd.f32 %v12341_v27, %v1593_v53 }
 0x1e5   : > { %v11161_v60 = vpop.f32.mrf.mxu1 }
 0x1e6   : > { %v2498_v62 = vadd.f32 %v2497_v36, %v2422_v38  ;;  %v11168_v63 = vpop.f32.mrf.mxu0  ;;  %v1753_v55 = vadd.f32 %v12347_v40, %v1675_v54 }
 0x1e8   : > { %v1844_v56 = vadd.f32 %v12345_v33, %v1753_v55  ;;  %v3234_v33 = vpop.permute.xlu0 %3233 }
 0x1e9   : > { %v2572_v18 = vpop.f32.mrf.mxu1 }
 0x1ea   : > { %v2573_v6 = vadd.f32 %v2572_v18, %v2498_v62  ;;  %v2649_v13 = vpop.f32.mrf.mxu0  ;;  %v1930_v37 = vadd.f32 %v12351_v45, %v1844_v56 }
 0x1eb   : > { %v11175_v9 = vpop.f32.mrf.mxu1 }
 0x1ec   : > { %v2650_v10 = vadd.f32 %v2649_v13, %v2573_v6  ;;  %v11182_v11 = vpop.f32.mrf.mxu0  ;;  %v2010_v36 = vadd.f32 %v12349_v42, %v1930_v37 }
 0x1ee   : > { %v2722_v12 = vpop.f32.mrf.mxu1  ;;  %v2091_v20 = vadd.f32 %v12358_v52, %v2010_v36 }
 0x1ef   : > { %v2723_v16 = vadd.f32 %v2722_v12, %v2650_v10 }
 0x1f0   : > { %v11189_v19 = vpop.f32.mrf.mxu1  ;;  %v2173_v13 = vadd.f32 %v12353_v49, %v2091_v20 }
 0x1f1   : > { %v2736_v21 = vsel %vm1269_vm7, %v2723_v16, 0 }
 0x1f2   : > { %v2769_v22 = vand.u32 4294901760, %v2736_v21  ;;  %v2251_v14 = vadd.f32 %v12363_v59, %v2173_v13 }
 0x1f4   : > { %v2856_v26 = vsub.f32 %v2736_v21, %v2769_v22  ;;  %11190 = vmatprep.subr.mxu0 %v2769_v22  ;;  %v3239_v21 = vpop.permute.xlu0 %3238 }
 0x1f5   : > { %11191 = vmatpush3.msra.mxu0 %v2769_v22 }
 0x1f6   : > { %11193 = vmatmul.mubr.f32.vlgmr.msra.gmra.mxu0 %v2818_v23  ;;  %11200 = vmatprep.subr.mxu0 %v2856_v26  ;;  %v2857_v28 = vand.u32 4294901760, %v2856_v26 }
 0x1f7   : > { %11201 = vmatpush3.msra.mxu0 %v2856_v26  ;;  %11202 = vmatprep.mubr.f32.mxu0 %v12313_v0  ;;  %v10430_v0 = vsel %vm12376_vm10, 1.0, %v11944_v1 }
 0x1f8   : > { %11210 = vmatprep.subr.mxu0 %v2857_v28  ;;  %v2858_v29 = vsub.f32 %v2856_v26, %v2857_v28  ;;  %v12391_v3 = vsub.f32 %v10430_v0, %v10430_v0  ;;  %v10438_v26 = vsel %vm12438_vm12, 1.0, %v11944_v1 }
 0x1fa   : > { %11203 = vmatmul.mubr.f32.vlgmr.msra.gmra.mxu0 %v2815_v15  ;;  %v2859_v30 = vand.u32 4294901760, %v2858_v29  ;;  %v12403_v39 = vand.u32 4294901760, %v12391_v3 }
 0x1fb   : > { %11211 = vmatpush3.msra.mxu0 %v2857_v28  ;;  %11212 = vmatprep.mubr.f32.mxu0 %v12310_v24 }
 0x1fc   : > { %11195 = vmatprep.subr.mxu1 %v2859_v30  ;;  %11220 = vmatprep.subr.msk.mxu0 %vm12376_vm10, %v13616_v7  ;;  %v3378_v43 = vsub.f32 %v12391_v3, %v12403_v39 }
 0x1fd   : > { %11196 = vmatpush3.msra.mxu1 %v2859_v30  ;;  %v12453_v30 = vsub.f32 %v10438_v26, %v10438_v26 }
 0x1fe   : > { %11198 = vmatmul.mubr.f32.vlgmr.msra.gmra.mxu1 %v2814_v61  ;;  %11205 = vmatprep.subr.mxu1 %v2769_v22  ;;  %v3379_v46 = vand.u32 4294901760, %v3378_v43 }
 0x1ff   : > { %11206 = vmatpush3.msra.mxu1 %v2769_v22  ;;  %11207 = vmatprep.mubr.f32.mxu1 %v2806_v5  ;;  %v10429_v5 = vsel %vm12387_vm11, 1.0, %v11944_v1  ;;  %v12470_v50 = vand.u32 4294901760, %v12453_v30 }
 0x200   : > { %11215 = vmatprep.subr.mxu1 %v2769_v22  ;;  %11213 = vmatmul.mubr.f32.vlgmr.msra.gmra.mxu0 %v2814_v61  ;;  %v12405_v41 = vsub.f32 %v10429_v5, %v10429_v5 }
 0x201   : > { %11221 = vmatpush3.msk.msra.mxu0 %vm12376_vm10, %v13616_v7  ;;  %v3890_v56 = vsub.f32 %v12453_v30, %v12470_v50 }
 0x202   : > { %11208 = vmatmul.mubr.f32.vlgmr.msra.gmra.mxu1 %v2816_v8  ;;  %11222 = vmatprep.subr.msk.mxu0 %vm12387_vm11, %v13616_v7  ;;  %v12414_v44 = vand.u32 4294901760, %v12405_v41 }
 0x203   : > { %11216 = vmatpush3.msra.mxu1 %v2769_v22  ;;  %11217 = vmatprep.mubr.f32.mxu1 %v12310_v24  ;;  %v3891_v36 = vand.u32 4294901760, %v3890_v56  ;;  %v10467_v24 = vld [vmem:[%s13612_s5 + $0x20] sm:$0xff] }
 0x204   : > { %11223 = vmatpush3.msk.msra.mxu0 %vm12387_vm11, %v13616_v7  ;;  %v3385_v47 = vsub.f32 %v12405_v41, %v12414_v44  ;;  %11227 = vmatprep.subr.mxu1 %v3379_v46 }
 0x205   : > { %11234 = vmatprep.subr.mxu0 %v12391_v3 }
 0x206   : > { %11218 = vmatmul.mubr.f32.vlgmr.msra.gmra.mxu1 %v2814_v61  ;;  %v12418_v48 = vand.u32 4294901760, %v3385_v47 }
 0x207   : > { %11228 = vmatpush3.msra.mxu1 %v3379_v46 }
 0x208   : > { %11229 = vmatprep.subr.mxu1 %v12418_v48 }
 0x209   : > { %11230 = vmatpush3.msra.mxu1 %v12418_v48 }
 0x20a   : > { %11241 = vmatprep.subr.msk.mxu1 %vm12376_vm10, %v13616_v7 }
 0x2b6   : > { %v11194_v58 = vpop.f32.mrf.mxu0 }
 0x2b8   : > { %v2810_v61 = vpop.f32.mrf.mxu0 }
 0x2ba   : > { %v11204_v38 = vpop.f32.mrf.mxu0 }
 0x2bc   : > { %v2976_v62 = vpop.f32.mrf.mxu0 }
 0x2be   : > { %v11199_v60 = vpop.f32.mrf.mxu1 }
 0x2bf   : > { %v2903_v17 = vadd.f32 %v11199_v60, %v11194_v58 }
 0x2c0   : > { %v2896_v25 = vpop.f32.mrf.mxu1  ;;  %v11214_v15 = vpop.f32.mrf.mxu0 }
 0x2c1   : > { %v2897_v31 = vadd.f32 %v2896_v25, %v2810_v61  ;;  %v2984_v63 = vadd.f32 %v11204_v38, %v2903_v17 }
 0x2c2   : > { %v11209_v27 = vpop.f32.mrf.mxu1  ;;  %v3139_v9 = vpop.f32.mrf.mxu0 }
 0x2c3   : > { %v2977_v40 = vadd.f32 %v2976_v62, %v2897_v31  ;;  %v3066_v18 = vadd.f32 %v11209_v27, %v2984_v63 }
 0x2c4   : > { %v3057_v6 = vpop.f32.mrf.mxu1 }
 0x2c5   : > { %v3058_v45 = vadd.f32 %v3057_v6, %v2977_v40  ;;  %v3146_v8 = vadd.f32 %v11214_v15, %v3066_v18 }
 0x2c6   : > { %v11219_v42 = vpop.f32.mrf.mxu1 }
 0x2c7   : > { %v3140_v10 = vadd.f32 %v3139_v9, %v3058_v45  ;;  %v3224_v11 = vadd.f32 %v11219_v42, %v3146_v8  ;;  %v10446_v42 = vld [vmem:[%s13610_s3 + $0x28] sm:$0xff] }
 0x2c8   : > { %v3217_v12 = vpop.f32.mrf.mxu1  ;;  %v4282_v52 = vsel %vm329_vm1, %v10446_v42, 0 }
 0x2c9   : > { %v3228_v16 = vadd.f32 %v3224_v11, %v12361_v57  ;;  %v3218_v19 = vadd.f32 %v3217_v12, %v3140_v10  ;;  %v10437_v57 = vsel %vm12446_vm13, 1.0, %v11944_v1  ;;  %v10447_v11 = vld [vmem:[%s13610_s3 + $0x30] sm:$0xff] }
 0x2ca   : > { %v12462_v43 = vsub.f32 %v10437_v57, %v10437_v57 }
 0x2cb   : > { %v3242_v22 = vadd.f32 %v3239_v21, %v3228_v16  ;;  %v3227_v23 = vadd.f32 %v3218_v19, %v2251_v14  ;;  %v4285_v16 = vsel %vm329_vm1, %v10447_v11, 0  ;;  %v10448_v19 = vld [vmem:[%s13610_s3 + $0x38] sm:$0xff]  ;;  %v12629_v21 = vand.u32 4294901760, %v4282_v52 }
 0x2cc   : > { %v12481_v54 = vand.u32 4294901760, %v12462_v43  ;;  %v12631_v26 = vand.u32 4294901760, %v4285_v16 }
 0x2cd   : > { %v3244_v28 = vmax.f32 %v3242_v22, 0.0  ;;  %v3241_v29 = vadd.f32 %v3234_v33, %v3227_v23 }
 0x2ce   : > { %v3897_v37 = vsub.f32 %v12462_v43, %v12481_v54 }
 0x2cf   : > { %v3257_v59 = vsel %vm329_vm1, %v3244_v28, 0  ;;  %v3243_v34 = vmax.f32 %v3241_v29, 0.0  ;;  %v4288_v28 = vsel %vm329_vm1, %v10448_v19, 0 }
 0x2d0   : > { %v12459_v0 = vand.u32 4294901760, %v3257_v59  ;;  %v12525_v35 = vand.u32 4294901760, %v3897_v37 }
 0x2d1   : > { %v3254_v5 = vsel %vm329_vm1, %v3243_v34, 0 }
 0x2d2   : > { %v12465_v46 = vsub.f32 %v3257_v59, %v12459_v0  ;;  %v12467_v47 = vand.u32 4294901760, %v3254_v5  ;;  %v12637_v59 = vand.u32 4294901760, %v4288_v28 }
 0x2d4   : > { %v12473_v51 = vsub.f32 %v3254_v5, %v12467_v47  ;;  %11231 = vmatprep.mubr.f32.mxu1 %v12467_v47  ;;  %v12477_v53 = vand.u32 4294901760, %v12465_v46 }
 0x2d5   : > { %11232 = vmatmul.mubr.f32.vlgmr.msra.gmra.mxu1 %v12459_v0 }
 0x2d6   : > { %11242 = vmatpush3.msk.msra.mxu1 %vm12376_vm10, %v13616_v7  ;;  %v12487_v55 = vand.u32 4294901760, %v12473_v51  ;;  %v3339_v58 = vsub.f32 %v12465_v46, %v12477_v53 }
 0x2d7   : > { %11243 = vmatprep.subr.msk.mxu1 %vm12387_vm11, %v13616_v7 }
 0x2d8   : > { %11244 = vmatpush3.msk.msra.mxu1 %vm12387_vm11, %v13616_v7  ;;  %11245 = vmatprep.mubr.f32.mxu1 %v12487_v55  ;;  %v3329_v61 = vsub.f32 %v12473_v51, %v12487_v55  ;;  %v12517_v60 = vand.u32 4294901760, %v3339_v58 }
 0x2d9   : > { %11246 = vmatmul.mubr.f32.vlgmr.msra.gmra.mxu1 %v12477_v53  ;;  %11255 = vmatprep.subr.msk.mxu1 %vm12376_vm10, %v13616_v7 }
 0x2da   : > { %11256 = vmatpush3.msk.msra.mxu1 %vm12376_vm10, %v13616_v7  ;;  %11259 = vmatprep.mubr.f32.mxu1 %v12467_v47  ;;  %v12512_v38 = vand.u32 4294901760, %v3329_v61 }
 0x2db   : > { %11257 = vmatprep.subr.msk.mxu1 %vm12387_vm11, %v13616_v7 }
 0x2dc   : > { %11224 = vmatprep.mubr.f32.mxu0 %v12512_v38  ;;  %11258 = vmatpush3.msk.msra.mxu1 %vm12387_vm11, %v13616_v7 }
 0x2dd   : > { %11225 = vmatmul.mubr.f32.vlgmr.msra.gmra.mxu0 %v12517_v60  ;;  %11260 = vmatmul.mubr.f32.vlgmr.msra.gmra.mxu1 %v12459_v0 }
 0x2de   : > { %11269 = vmatprep.subr.mxu1 %v3891_v36  ;;  %11235 = vmatpush3.msra.mxu0 %v12391_v3  ;;  %v10445_v3 = vld [vmem:[%s13610_s3 + $0x20] sm:$0xff] }
 0x2df   : > { %11238 = vmatprep.mubr.f32.mxu0 %v12473_v51  ;;  %11270 = vmatpush3.msra.mxu1 %v3891_v36 }
 0x2e0   : > { %11273 = vmatprep.mubr.f32.mxu1 %v12467_v47  ;;  %11236 = vmatprep.subr.mxu0 %v12405_v41 }
 0x2e1   : > { %11271 = vmatprep.subr.mxu1 %v12525_v35  ;;  %11237 = vmatpush3.msra.mxu0 %v12405_v41 }
 0x2e2   : > { %11272 = vmatpush3.msra.mxu1 %v12525_v35  ;;  %11239 = vmatmul.mubr.f32.vlgmr.msra.gmra.mxu0 %v12465_v46 }
 0x2e3   : > { %11248 = vmatprep.subr.mxu0 %v12403_v39  ;;  %11274 = vmatmul.mubr.f32.vlgmr.msra.gmra.mxu1 %v12459_v0 }
 0x2e4   : > { %11283 = vmatprep.subr.msk.mxu1 %vm12438_vm12, %v13616_v7  ;;  %11249 = vmatpush3.msra.mxu0 %v12403_v39  ;;  %v4279_v39 = vsel %vm329_vm1, %v10445_v3, 0 }
 0x2e5   : > { %11252 = vmatprep.mubr.f32.mxu0 %v12467_v47  ;;  %11284 = vmatpush3.msk.msra.mxu1 %vm12438_vm12, %v13616_v7  ;;  %v12600_v62 = vand.u32 4294901760, %v4279_v39 }
 0x2e6   : > { %11287 = vmatprep.mubr.f32.mxu1 %v12487_v55  ;;  %11250 = vmatprep.subr.mxu0 %v12414_v44 }
 0x2e7   : > { %11285 = vmatprep.subr.msk.mxu1 %vm12446_vm13, %v13616_v7  ;;  %11251 = vmatpush3.msra.mxu0 %v12414_v44  ;;  %v12603_v17 = vsub.f32 %v4279_v39, %v12600_v62 }
 0x2e8   : > { %11286 = vmatpush3.msk.msra.mxu1 %vm12446_vm13, %v13616_v7  ;;  %11253 = vmatmul.mubr.f32.vlgmr.msra.gmra.mxu0 %v12459_v0 }
 0x2e9   : > { %11262 = vmatprep.subr.msk.mxu0 %vm12438_vm12, %v13616_v7  ;;  %11288 = vmatmul.mubr.f32.vlgmr.msra.gmra.mxu1 %v12477_v53  ;;  %v4359_v25 = vand.u32 4294901760, %v12603_v17 }
 0x2ea   : > { %11297 = vmatprep.subr.msk.mxu1 %vm12438_vm12, %v13616_v7  ;;  %11263 = vmatpush3.msk.msra.mxu0 %vm12438_vm12, %v13616_v7 }
 0x2eb   : > { %11266 = vmatprep.mubr.f32.mxu0 %v12512_v38  ;;  %11298 = vmatpush3.msk.msra.mxu1 %vm12438_vm12, %v13616_v7  ;;  %v4360_v20 = vsub.f32 %v12603_v17, %v4359_v25 }
 0x2ec   : > { %11301 = vmatprep.mubr.f32.mxu1 %v12467_v47  ;;  %11264 = vmatprep.subr.msk.mxu0 %vm12446_vm13, %v13616_v7 }
 0x2ed   : > { %11299 = vmatprep.subr.msk.mxu1 %vm12446_vm13, %v13616_v7  ;;  %11265 = vmatpush3.msk.msra.mxu0 %vm12446_vm13, %v13616_v7  ;;  %v4361_v31 = vand.u32 4294901760, %v4360_v20  ;;  %v12644_v20 = vsub.f32 %v4288_v28, %v12637_v59 }
 0x2ee   : > { %11300 = vmatpush3.msk.msra.mxu1 %vm12446_vm13, %v13616_v7  ;;  %11267 = vmatmul.mubr.f32.vlgmr.msra.gmra.mxu0 %v12517_v60 }
 0x2ef   : > { %11276 = vmatprep.subr.mxu0 %v12453_v30  ;;  %11302 = vmatmul.mubr.f32.vlgmr.msra.gmra.mxu1 %v12459_v0 }
 0x2f0   : > { %11277 = vmatpush3.msra.mxu0 %v12453_v30  ;;  %11280 = vmatprep.mubr.f32.mxu0 %v12473_v51  ;;  %v12635_v30 = vsub.f32 %v4282_v52, %v12629_v21 }
 0x2f1   : > { %11278 = vmatprep.subr.mxu0 %v12462_v43  ;;  %11318 = vmatprep.mubr.f32.mxu1 %v12600_v62 }
 0x2f2   : > { %11279 = vmatpush3.msra.mxu0 %v12462_v43  ;;  %v4369_v36 = vand.u32 4294901760, %v12635_v30 }
 0x2f3   : > { %11281 = vmatmul.mubr.f32.vlgmr.msra.gmra.mxu0 %v12465_v46  ;;  %11290 = vmatprep.subr.mxu0 %v12470_v50 }
 0x2f4   : > { %11291 = vmatpush3.msra.mxu0 %v12470_v50  ;;  %11294 = vmatprep.mubr.f32.mxu0 %v12467_v47  ;;  %v12640_v50 = vsub.f32 %v4285_v16, %v12631_v26 }
 0x2f5   : > { %11292 = vmatprep.subr.mxu0 %v12481_v54 }
 0x2f6   : > { %11293 = vmatpush3.msra.mxu0 %v12481_v54  ;;  %v4379_v11 = vand.u32 4294901760, %v12640_v50 }
 0x2f7   : > { %11295 = vmatmul.mubr.f32.vlgmr.msra.gmra.mxu0 %v12459_v0 }
 0x2f8   : > { %11308 = vmatprep.mubr.f32.mxu0 %v4361_v31 }
 0x395   : > { %v11233_v63 = vpop.f32.mrf.mxu1 }
 0x397   : > { %v3423_v27 = vpop.f32.mrf.mxu1 }
 0x399   : > { %v11247_v15 = vpop.f32.mrf.mxu1 }
 0x39b   : > { %v12610_v40 = vpop.f32.mrf.mxu1 }
 0x39d   : > { %v11226_v18 = vpop.f32.mrf.mxu0  ;;  %v12612_v33 = vpop.f32.mrf.mxu1 }
 0x39e   : > { %v3430_v61 = vadd.f32 %v11233_v63, %v11226_v18  ;;  %v4370_v63 = vsub.f32 %v12635_v30, %v4369_v36 }
 0x39f   : > { %v3332_v6 = vpop.f32.mrf.mxu0  ;;  %v12614_v45 = vpop.f32.mrf.mxu1 }
 0x3a0   : > { %v3424_v28 = vadd.f32 %v3423_v27, %v3332_v6 }
 0x3a2   : > { %v11240_v13 = vpop.f32.mrf.mxu0 }
 0x3a3   : > { %v11275_v9 = vpop.f32.mrf.mxu1  ;;  %v3513_v31 = vadd.f32 %v11240_v13, %v3430_v61  ;;  %v4380_v13 = vsub.f32 %v12640_v50, %v4379_v11 }
 0x3a4   : > { %v3505_v8 = vpop.f32.mrf.mxu0 }
 0x3a5   : > { %v3935_v14 = vpop.f32.mrf.mxu1 }
 0x3a8   : > { %v11254_v10 = vpop.f32.mrf.mxu0 }
 0x3a9   : > { %v11289_v23 = vpop.f32.mrf.mxu1 }
 0x3aa   : > { %v12622_v12 = vpop.f32.mrf.mxu0 }
 0x3ab   : > { %v4099_v34 = vpop.f32.mrf.mxu1 }
 0x3ae   : > { %v11268_v22 = vpop.f32.mrf.mxu0 }
 0x3af   : > { %v3942_v57 = vadd.f32 %v11275_v9, %v11268_v22  ;;  %v11303_v9 = vpop.f32.mrf.mxu1  ;;  %v4389_v22 = vand.u32 4294901760, %v12644_v20 }
 0x3b0   : > { %v3844_v29 = vpop.f32.mrf.mxu0 }
 0x3b1   : > { %v3936_v56 = vadd.f32 %v3935_v14, %v3844_v29  ;;  %v4263_v29 = vpop.f32.mrf.mxu1 }
 0x3b3   : > { %v11282_v5 = vpop.f32.mrf.mxu0 }
 0x3b4   : > { %v4025_v58 = vadd.f32 %v11282_v5, %v3942_v57 }
 0x3b5   : > { %v4017_v37 = vpop.f32.mrf.mxu0 }
 0x3b6   : > { %v4018_v3 = vadd.f32 %v4017_v37, %v3936_v56  ;;  %v4108_v39 = vadd.f32 %v11289_v23, %v4025_v58  ;;  %v3596_v23 = vadd.f32 %v11247_v15, %v3513_v31  ;;  %v3506_v56 = vadd.f32 %v3505_v8, %v3424_v28  ;;  %v3761_v8 = vld [vmem:[%s13610_s3] sm:$0xff]  ;;  %v3764_v28 = vld [vmem:[%s13610_s3 + $0x18] sm:$0xff] }
 0x3b7   : > { %v11296_v42 = vpop.f32.mrf.mxu0  ;;  %v4390_v15 = vsub.f32 %v12644_v20, %v4389_v22 }
 0x3b8   : > { %v4191_v52 = vadd.f32 %v11296_v42, %v4108_v39  ;;  %v4100_v19 = vadd.f32 %v4099_v34, %v4018_v3  ;;  %v4371_v34 = vand.u32 4294901760, %v4370_v63  ;;  %v3679_v37 = vadd.f32 %v11254_v10, %v3596_v23  ;;  %v3762_v63 = vld [vmem:[%s13610_s3 + $0x8] sm:$0xff] }
 0x3b9   : > { %v4184_v16 = vpop.f32.mrf.mxu0  ;;  %v4381_v3 = vand.u32 4294901760, %v4380_v13  ;;  %v3588_v39 = vadd.f32 %v12610_v40, %v3506_v56  ;;  %v4391_v31 = vand.u32 4294901760, %v4390_v15  ;;  %v4882_v23 = vsel %vm329_vm1, %v3762_v63, 0 }
 0x3ba   : > { %v4270_v18 = vadd.f32 %v11303_v9, %v4191_v52  ;;  %v4185_v14 = vadd.f32 %v4184_v16, %v4100_v19  ;;  %v3758_v42 = vadd.f32 %v12612_v33, %v3679_v37  ;;  %v4879_v16 = vsel %vm329_vm1, %v3761_v8, 0 }
 0x3bb   : > { %v3673_v40 = vadd.f32 %v12622_v12, %v3588_v39  ;;  %v12679_v33 = vand.u32 4294901760, %v4879_v16  ;;  %v12689_v13 = vand.u32 4294901760, %v4882_v23  ;;  %v4888_v56 = vsel %vm329_vm1, %v3764_v28, 0 }
 0x3bc   : > { %v12654_v57 = vand.u32 4294901760, %v4270_v18  ;;  %v4264_v5 = vadd.f32 %v4263_v29, %v4185_v14  ;;  %v12677_v14 = vand.u32 4294901760, %v3758_v42  ;;  %v3763_v29 = vld [vmem:[%s13610_s3 + $0x10] sm:$0xff] }
 0x3bd   : > { %v3752_v12 = vadd.f32 %v12614_v45, %v3673_v40  ;;  %v4885_v45 = vsel %vm329_vm1, %v3763_v29, 0  ;;  %v12708_v15 = vsub.f32 %v4882_v23, %v12689_v13  ;;  %v6597_v23 = vld [vmem:[%s13611_s4 + $0x8] sm:$0xff]  ;;  %v6599_v29 = vld [vmem:[%s13611_s4 + $0x18] sm:$0xff] }
 0x3be   : > { %v4427_v58 = vsub.f32 %v4270_v18, %v12654_v57  ;;  %v12657_v61 = vand.u32 4294901760, %v4264_v5  ;;  %11304 = vmatprep.subr.mxu0 %v12654_v57  ;;  %v12710_v37 = vand.u32 4294901760, %v4885_v45 }
 0x3bf   : > { %11305 = vmatpush3.msra.mxu0 %v12654_v57  ;;  %v4969_v39 = vand.u32 4294901760, %v12708_v15 }
 0x3c0   : > { %v4434_v27 = vsub.f32 %v4264_v5, %v12657_v61  ;;  %11306 = vmatprep.subr.mxu0 %v12657_v61  ;;  %v4428_v6 = vand.u32 4294901760, %v4427_v58  ;;  %v5027_v5 = vsub.f32 %v3758_v42, %v12677_v14 }
 0x3c1   : > { %11307 = vmatpush3.msra.mxu0 %v12657_v61 }
 0x3c2   : > { %11309 = vmatmul.mubr.f32.vlgmr.msra.gmra.mxu0 %v4371_v34  ;;  %11324 = vmatprep.subr.mxu0 %v4427_v58  ;;  %v4429_v10 = vsub.f32 %v4427_v58, %v4428_v6  ;;  %v4435_v9 = vand.u32 4294901760, %v4434_v27  ;;  %v12697_v34 = vsub.f32 %v4879_v16, %v12679_v33 }
 0x3c3   : > { %11325 = vmatpush3.msra.mxu0 %v4427_v58  ;;  %11311 = vmatprep.mubr.f32.mxu0 %v4381_v3  ;;  %v12703_v58 = vand.u32 4294901760, %v3752_v12  ;;  %v12714_v3 = vand.u32 4294901760, %v5027_v5 }
 0x3c4   : > { %11326 = vmatprep.subr.mxu0 %v4434_v27  ;;  %v4430_v52 = vand.u32 4294901760, %v4429_v10  ;;  %v4436_v19 = vsub.f32 %v4434_v27, %v4435_v9 }
 0x3c5   : > { %11327 = vmatpush3.msra.mxu0 %v4434_v27  ;;  %v4959_v27 = vand.u32 4294901760, %v12697_v34  ;;  %v5034_v8 = vsub.f32 %v3752_v12, %v12703_v58  ;;  %v5029_v10 = vsub.f32 %v5027_v5, %v12714_v3  ;;  %v10268_v12 = vld [vmem:[%s13613_s6 + $0x8] sm:$0xff] }
 0x3c6   : > { %11312 = vmatmul.mubr.f32.gmra.mxu0 %v4391_v31  ;;  %11314 = vmatprep.subr.mxu1 %v4430_v52  ;;  %v4437_v18 = vand.u32 4294901760, %v4436_v19  ;;  %v12728_v31 = vsub.f32 %v4885_v45, %v12710_v37 }
 0x3c7   : > { %11344 = vmatprep.subr.mxu0 %v4428_v6  ;;  %11315 = vmatpush3.msra.mxu1 %v4430_v52  ;;  %v5035_v42 = vand.u32 4294901760, %v5034_v8 }
 0x3c8   : > { %11316 = vmatprep.subr.mxu1 %v4437_v18  ;;  %11328 = vmatprep.mubr.f32.mxu0 %v12603_v17 }
 0x3c9   : > { %11317 = vmatpush3.msra.mxu1 %v4437_v18 }
 0x3ca   : > { %11319 = vmatmul.mubr.f32.vlgmr.msra.gmra.mxu1 %v12629_v21  ;;  %11329 = vmatmul.mubr.f32.vlgmr.msra.gmra.mxu0 %v12635_v30  ;;  %v4979_v30 = vand.u32 4294901760, %v12728_v31 }
 0x3cb   : > { %11334 = vmatprep.subr.mxu1 %v12654_v57  ;;  %11345 = vmatpush3.msra.mxu0 %v4428_v6  ;;  %v12719_v6 = vand.u32 4294901760, %v4888_v56 }
 0x3cc   : > { %11335 = vmatpush3.msra.mxu1 %v12654_v57  ;;  %11346 = vmatprep.subr.mxu0 %v4435_v9  ;;  %v4980_v16 = vsub.f32 %v12728_v31, %v4979_v30 }
 0x3cd   : > { %11336 = vmatprep.subr.mxu1 %v12657_v61  ;;  %11347 = vmatpush3.msra.mxu0 %v4435_v9  ;;  %v4960_v9 = vsub.f32 %v12697_v34, %v4959_v27  ;;  %v12738_v17 = vsub.f32 %v4888_v56, %v12719_v6 }
 0x3ce   : > { %11321 = vmatprep.mubr.f32.mxu1 %v12631_v26  ;;  %11331 = vmatprep.mubr.f32.mxu0 %v12640_v50 }
 0x3cf   : > { %11337 = vmatpush3.msra.mxu1 %v12657_v61  ;;  %11364 = vmatprep.subr.mxu0 %v12677_v14  ;;  %v4961_v52 = vand.u32 4294901760, %v4960_v9 }
 0x3d0   : > { %11322 = vmatmul.mubr.f32.gmra.mxu1 %v12637_v59  ;;  %11332 = vmatmul.mubr.f32.gmra.mxu0 %v12644_v20 }
 0x3d1   : > { %11354 = vmatprep.subr.mxu1 %v12654_v57  ;;  %11338 = vmatprep.mubr.f32.mxu1 %v4359_v25  ;;  %v4970_v25 = vsub.f32 %v12708_v15, %v4969_v39 }
 0x3d2   : > { %11348 = vmatprep.mubr.f32.mxu0 %v12600_v62 }
 0x3d3   : > { %v4971_v19 = vand.u32 4294901760, %v4970_v25 }
 0x3d4   : > { %11339 = vmatmul.mubr.f32.vlgmr.msra.gmra.mxu1 %v4369_v36  ;;  %11349 = vmatmul.mubr.f32.vlgmr.msra.gmra.mxu0 %v12629_v21  ;;  %v5030_v36 = vand.u32 4294901760, %v5029_v10 }
 0x3d5   : > { %11355 = vmatpush3.msra.mxu1 %v12654_v57  ;;  %11365 = vmatpush3.msra.mxu0 %v12677_v14  ;;  %v4989_v57 = vand.u32 4294901760, %v12738_v17 }
 0x3d6   : > { %11356 = vmatprep.subr.mxu1 %v12657_v61  ;;  %11366 = vmatprep.subr.mxu0 %v12703_v58 }
 0x3d7   : > { %11357 = vmatpush3.msra.mxu1 %v12657_v61  ;;  %11367 = vmatpush3.msra.mxu0 %v12703_v58  ;;  %v5036_v61 = vsub.f32 %v5034_v8, %v5035_v42  ;;  %v4990_v50 = vsub.f32 %v12738_v17, %v4989_v57 }
 0x3d8   : > { %11341 = vmatprep.mubr.f32.mxu1 %v4379_v11  ;;  %11351 = vmatprep.mubr.f32.mxu0 %v12631_v26  ;;  %v4981_v11 = vand.u32 4294901760, %v4980_v16 }
 0x3d9   : > { %11374 = vmatprep.subr.mxu1 %v5030_v36  ;;  %11384 = vmatprep.subr.mxu0 %v5027_v5  ;;  %v5037_v20 = vand.u32 4294901760, %v5036_v61  ;;  %v4991_v63 = vand.u32 4294901760, %v4990_v50 }
 0x3da   : > { %11342 = vmatmul.mubr.f32.gmra.mxu1 %v4389_v22  ;;  %11352 = vmatmul.mubr.f32.gmra.mxu0 %v12637_v59  ;;  %v5478_v22 = vadd.s32 1, %v12372_v32 }
 0x3db   : > { %11358 = vmatprep.mubr.f32.mxu1 %v12600_v62  ;;  %11368 = vmatprep.mubr.f32.mxu0 %v4961_v52 }
 0x3dc   : > { %vm12768_vm14 = vcmp.eq.s32.totalorder %v12014_v4, %v5478_v22  ;;  %vm12786_vm15 = vcmp.eq.s32.totalorder %v12003_v2, %v5478_v22 }
 0x3dd   : > { %v10450_v32 = vsel %vm12768_vm14, 1.0, %v11944_v1 }
 0x3de   : > { %11359 = vmatmul.mubr.f32.vlgmr.msra.gmra.mxu1 %v12629_v21  ;;  %11369 = vmatmul.mubr.f32.vlgmr.msra.gmra.mxu0 %v4971_v19  ;;  %v5602_v4 = vsub.f32 %v10450_v32, %v10450_v32 }
 0x3df   : > { %11375 = vmatpush3.msra.mxu1 %v5030_v36  ;;  %11385 = vmatpush3.msra.mxu0 %v5027_v5 }
 0x3e0   : > { %11376 = vmatprep.subr.mxu1 %v5037_v20  ;;  %11386 = vmatprep.subr.mxu0 %v5034_v8 }
 0x3e1   : > { %11377 = vmatpush3.msra.mxu1 %v5037_v20  ;;  %11387 = vmatpush3.msra.mxu0 %v5034_v8 }
 0x3e2   : > { %11361 = vmatprep.mubr.f32.mxu1 %v12631_v26  ;;  %11371 = vmatprep.mubr.f32.mxu0 %v4981_v11  ;;  %v5603_v26 = vand.u32 4294901760, %v5602_v4 }
 0x3e3   : > { %11394 = vmatprep.subr.mxu1 %v12677_v14  ;;  %11404 = vmatprep.subr.mxu0 %v12714_v3 }
 0x3e4   : > { %11362 = vmatmul.mubr.f32.gmra.mxu1 %v12637_v59  ;;  %11372 = vmatmul.mubr.f32.gmra.mxu0 %v4991_v63  ;;  %v10449_v59 = vsel %vm12786_vm15, 1.0, %v11944_v1  ;;  %v5604_v2 = vsub.f32 %v5602_v4, %v5603_v26 }
 0x3e5   : > { %11378 = vmatprep.mubr.f32.mxu1 %v12679_v33  ;;  %11388 = vmatprep.mubr.f32.mxu0 %v12697_v34  ;;  %v12805_v40 = vsub.f32 %v10449_v59, %v10449_v59 }
 0x3e6   : > { %v5605_v1 = vand.u32 4294901760, %v5604_v2 }
 0x3e7   : > { %v12817_v18 = vand.u32 4294901760, %v12805_v40 }
 0x3e8   : > { %11379 = vmatmul.mubr.f32.vlgmr.msra.gmra.mxu1 %v12689_v13  ;;  %11389 = vmatmul.mubr.f32.vlgmr.msra.gmra.mxu0 %v12708_v15 }
 0x3e9   : > { %11395 = vmatpush3.msra.mxu1 %v12677_v14  ;;  %11405 = vmatpush3.msra.mxu0 %v12714_v3 }
 0x3ea   : > { %11396 = vmatprep.subr.mxu1 %v12703_v58  ;;  %11406 = vmatprep.subr.mxu0 %v5035_v42 }
 0x3eb   : > { %11397 = vmatpush3.msra.mxu1 %v12703_v58  ;;  %11407 = vmatpush3.msra.mxu0 %v5035_v42 }
 0x3ec   : > { %11381 = vmatprep.mubr.f32.mxu1 %v12710_v37  ;;  %11391 = vmatprep.mubr.f32.mxu0 %v12728_v31 }
 0x3ed   : > { %11414 = vmatprep.subr.mxu1 %v12677_v14  ;;  %11382 = vmatmul.mubr.f32.gmra.mxu1 %v12719_v6 }
 0x3ee   : > { %11392 = vmatmul.mubr.f32.gmra.mxu0 %v12738_v17  ;;  %11398 = vmatprep.mubr.f32.mxu1 %v4959_v27 }
 0x3ef   : > { %11408 = vmatprep.mubr.f32.mxu0 %v12679_v33  ;;  %11424 = vmatprep.subr.msk.mxu0 %vm12768_vm14, %v13616_v7 }
 0x3f1   : > { %11399 = vmatmul.mubr.f32.vlgmr.msra.gmra.mxu1 %v4969_v39 }
 0x3f2   : > { %11409 = vmatmul.mubr.f32.vlgmr.msra.gmra.mxu0 %v12689_v13  ;;  %11415 = vmatpush3.msra.mxu1 %v12677_v14  ;;  %v5611_v14 = vsub.f32 %v12805_v40, %v12817_v18 }
 0x3f3   : > { %11416 = vmatprep.subr.mxu1 %v12703_v58  ;;  %11401 = vmatprep.mubr.f32.mxu1 %v4979_v30 }
 0x3f4   : > { %11417 = vmatpush3.msra.mxu1 %v12703_v58  ;;  %11411 = vmatprep.mubr.f32.mxu0 %v12710_v37 }
 0x3f5   : > { %11402 = vmatmul.mubr.f32.gmra.mxu1 %v4989_v57  ;;  %11425 = vmatpush3.msk.msra.mxu0 %vm12768_vm14, %v13616_v7 }
 0x3f6   : > { %11412 = vmatmul.mubr.f32.gmra.mxu0 %v12719_v6  ;;  %11426 = vmatprep.subr.msk.mxu0 %vm12786_vm15, %v13616_v7 }
 0x3f7   : > { %11428 = vmatprep.mubr.f32.mxu0 %v12512_v38  ;;  %11418 = vmatprep.mubr.f32.mxu1 %v12679_v33  ;;  %v12840_v38 = vand.u32 4294901760, %v5611_v14  ;;  %v6596_v33 = vld [vmem:[%s13611_s4] sm:$0xff] }
 0x3f8   : > { %11427 = vmatpush3.msk.msra.mxu0 %vm12786_vm15, %v13616_v7  ;;  %11431 = vmatprep.subr.mxu1 %v5605_v1 }
 0x3f9   : > { %11419 = vmatmul.mubr.f32.vlgmr.msra.gmra.mxu1 %v12689_v13  ;;  %11438 = vmatprep.subr.mxu0 %v5602_v4  ;;  %v10270_v13 = vld [vmem:[%s13613_s6 + $0x18] sm:$0xff] }
 0x3fa   : > { %11429 = vmatmul.mubr.f32.vlgmr.msra.gmra.mxu0 %v12517_v60  ;;  %11421 = vmatprep.mubr.f32.mxu1 %v12710_v37 }
 0x3fb   : > { %11439 = vmatpush3.msra.mxu0 %v5602_v4  ;;  %11442 = vmatprep.mubr.f32.mxu0 %v12473_v51 }
 0x3fc   : > { %11440 = vmatprep.subr.mxu0 %v12805_v40  ;;  %11432 = vmatpush3.msra.mxu1 %v5605_v1 }
 0x3fd   : > { %11441 = vmatpush3.msra.mxu0 %v12805_v40  ;;  %11422 = vmatmul.mubr.f32.gmra.mxu1 %v12719_v6 }
 0x3fe   : > { %11443 = vmatmul.mubr.f32.vlgmr.msra.gmra.mxu0 %v12465_v46  ;;  %11452 = vmatprep.subr.mxu0 %v5603_v26  ;;  %v10457_v46 = vld [vmem:[%s13610_s3 + $0x40] sm:$0xff] }
 0x3ff   : > { %11435 = vmatprep.mubr.f32.mxu1 %v12467_v47  ;;  %11453 = vmatpush3.msra.mxu0 %v5603_v26  ;;  %v5993_v51 = vsel %vm329_vm1, %v10457_v46, 0 }
 0x400   : > { %11456 = vmatprep.mubr.f32.mxu0 %v12467_v47  ;;  %11433 = vmatprep.subr.mxu1 %v12840_v38 }
 0x401   : > { %11454 = vmatprep.subr.mxu0 %v12817_v18  ;;  %11434 = vmatpush3.msra.mxu1 %v12840_v38 }
 0x402   : > { %11455 = vmatpush3.msra.mxu0 %v12817_v18  ;;  %11436 = vmatmul.mubr.f32.vlgmr.msra.gmra.mxu1 %v12459_v0 }
 0x403   : > { %11445 = vmatprep.subr.msk.mxu1 %vm12768_vm14, %v13616_v7  ;;  %11457 = vmatmul.mubr.f32.vlgmr.msra.gmra.mxu0 %v12459_v0 }
 0x404   : > { %11446 = vmatpush3.msk.msra.mxu1 %vm12768_vm14, %v13616_v7  ;;  %11449 = vmatprep.mubr.f32.mxu1 %v12487_v55 }
 0x405   : > { %11447 = vmatprep.subr.msk.mxu1 %vm12786_vm15, %v13616_v7  ;;  %6602 = vperm.xlu1 %11935, %v6596_v33  }
 0x406   : > { %11448 = vmatpush3.msk.msra.mxu1 %vm12786_vm15, %v13616_v7 }
 0x407   : > { %11450 = vmatmul.mubr.f32.vlgmr.msra.gmra.mxu1 %v12477_v53  ;;  %11459 = vmatprep.subr.msk.mxu1 %vm12768_vm14, %v13616_v7  ;;  %v12885_v53 = vand.u32 4294901760, %v5993_v51 }
 0x408   : > { %11460 = vmatpush3.msk.msra.mxu1 %vm12768_vm14, %v13616_v7  ;;  %11463 = vmatprep.mubr.f32.mxu1 %v12467_v47 }
 0x409   : > { %11461 = vmatprep.subr.msk.mxu1 %vm12786_vm15, %v13616_v7  ;;  %v12888_v47 = vsub.f32 %v5993_v51, %v12885_v53  ;;  %6607 = vperm.xlu1 %11935, %v6597_v23  }
 0x40a   : > { %11462 = vmatpush3.msk.msra.mxu1 %vm12786_vm15, %v13616_v7 }
 0x40b   : > { %11464 = vmatmul.mubr.f32.vlgmr.msra.gmra.mxu1 %v12459_v0  ;;  %v6073_v55 = vand.u32 4294901760, %v12888_v47 }
 0x40c   : > { %11480 = vmatprep.mubr.f32.mxu1 %v12885_v53 }
 0x40d   : > { %v6074_v60 = vsub.f32 %v12888_v47, %v6073_v55  ;;  %6617 = vperm.xlu1 %11935, %v6599_v29  }
 0x40f   : > { %v6075_v0 = vand.u32 4294901760, %v6074_v60 }
 0x411   : > { %11470 = vmatprep.mubr.f32.mxu0 %v6075_v0  ;;  %10278 = vperm.xlu1 %11935, %v10268_v12  }
 0x415   : > { %10288 = vperm.xlu1 %11935, %v10270_v13  }
 0x482   : > { %v11310_v28 = vpop.f32.mrf.mxu0 }
 0x484   : > { %v4363_v5 = vpop.f32.mrf.mxu0 }
 0x486   : > { %v11313_v34 = vpop.f32.mrf.mxu0 }
 0x488   : > { %v4383_v45 = vpop.f32.mrf.mxu0 }
 0x48a   : > { %v11320_v56 = vpop.f32.mrf.mxu1  ;;  %v11330_v58 = vpop.f32.mrf.mxu0 }
 0x48b   : > { %v4481_v15 = vadd.f32 %v11320_v56, %v11310_v28 }
 0x48c   : > { %v4474_v37 = vpop.f32.mrf.mxu1  ;;  %v4568_v3 = vpop.f32.mrf.mxu0 }
 0x48d   : > { %v4576_v27 = vadd.f32 %v11330_v58, %v4481_v15  ;;  %v4475_v39 = vadd.f32 %v4474_v37, %v4363_v5 }
 0x48f   : > { %v4569_v36 = vadd.f32 %v4568_v3, %v4475_v39 }
 0x490   : > { %v11323_v6 = vpop.f32.mrf.mxu1  ;;  %v11333_v8 = vpop.f32.mrf.mxu0 }
 0x491   : > { %v4493_v31 = vadd.f32 %v11323_v6, %v11313_v34 }
 0x492   : > { %v4486_v10 = vpop.f32.mrf.mxu1  ;;  %v4582_v9 = vpop.f32.mrf.mxu0 }
 0x493   : > { %v4590_v17 = vadd.f32 %v11333_v8, %v4493_v31  ;;  %v4487_v25 = vadd.f32 %v4486_v10, %v4383_v45 }
 0x494   : > { %v11340_v42 = vpop.f32.mrf.mxu1  ;;  %v11350_v30 = vpop.f32.mrf.mxu0 }
 0x495   : > { %v4583_v52 = vadd.f32 %v4582_v9, %v4487_v25  ;;  %v4673_v57 = vadd.f32 %v11340_v42, %v4576_v27 }
 0x496   : > { %v4664_v19 = vpop.f32.mrf.mxu1  ;;  %v4765_v61 = vpop.f32.mrf.mxu0 }
 0x497   : > { %v4772_v16 = vadd.f32 %v11350_v30, %v4673_v57  ;;  %v4665_v50 = vadd.f32 %v4664_v19, %v4569_v36 }
 0x499   : > { %v4766_v20 = vadd.f32 %v4765_v61, %v4665_v50 }
 0x49a   : > { %v11343_v11 = vpop.f32.mrf.mxu1  ;;  %v11353_v22 = vpop.f32.mrf.mxu0 }
 0x49b   : > { %v4689_v63 = vadd.f32 %v11343_v11, %v4590_v17 }
 0x49c   : > { %v4680_v62 = vpop.f32.mrf.mxu1  ;;  %v4777_v32 = vpop.f32.mrf.mxu0 }
 0x49d   : > { %v4784_v4 = vadd.f32 %v11353_v22, %v4689_v63  ;;  %v4681_v26 = vadd.f32 %v4680_v62, %v4583_v52 }
 0x49e   : > { %v11360_v59 = vpop.f32.mrf.mxu1  ;;  %v11370_v2 = vpop.f32.mrf.mxu0 }
 0x49f   : > { %v4778_v1 = vadd.f32 %v4777_v32, %v4681_v26  ;;  %v4863_v14 = vadd.f32 %v11360_v59, %v4772_v16 }
 0x4a0   : > { %v4856_v46 = vpop.f32.mrf.mxu1  ;;  %v4963_v51 = vpop.f32.mrf.mxu0 }
 0x4a1   : > { %v4974_v60 = vadd.f32 %v11370_v2, %v4863_v14  ;;  %v4857_v0 = vadd.f32 %v4856_v46, %v4766_v20  ;;  %v10458_v46 = vld [vmem:[%s13610_s3 + $0x48] sm:$0xff] }
 0x4a3   : > { %v4964_v33 = vadd.f32 %v4963_v51, %v4857_v0 }
 0x4a4   : > { %v11363_v23 = vpop.f32.mrf.mxu1  ;;  %v11373_v29 = vpop.f32.mrf.mxu0 }
 0x4a5   : > { %v4875_v12 = vadd.f32 %v11363_v23, %v4784_v4 }
 0x4a6   : > { %v4868_v13 = vpop.f32.mrf.mxu1  ;;  %v4983_v28 = vpop.f32.mrf.mxu0 }
 0x4a7   : > { %v4994_v5 = vadd.f32 %v11373_v29, %v4875_v12  ;;  %v4869_v34 = vadd.f32 %v4868_v13, %v4778_v1  ;;  %v5996_v29 = vsel %vm329_vm1, %v10458_v46, 0 }
 0x4a8   : > { %v11380_v45 = vpop.f32.mrf.mxu1  ;;  %v11390_v56 = vpop.f32.mrf.mxu0 }
 0x4a9   : > { %v4984_v58 = vadd.f32 %v4983_v28, %v4869_v34  ;;  %v5081_v15 = vadd.f32 %v11380_v45, %v4974_v60  ;;  %v10459_v60 = vld [vmem:[%s13610_s3 + $0x50] sm:$0xff]  ;;  %v10460_v28 = vld [vmem:[%s13610_s3 + $0x58] sm:$0xff] }
 0x4aa   : > { %v5074_v37 = vpop.f32.mrf.mxu1  ;;  %v5168_v3 = vpop.f32.mrf.mxu0  ;;  %v5999_v13 = vsel %vm329_vm1, %v10459_v60, 0 }
 0x4ab   : > { %v5176_v27 = vadd.f32 %v11390_v56, %v5081_v15  ;;  %v5075_v6 = vadd.f32 %v5074_v37, %v4964_v33  ;;  %v12929_v56 = vand.u32 4294901760, %v5996_v29  ;;  %v6002_v15 = vsel %vm329_vm1, %v10460_v28, 0 }
 0x4ac   : > { %vm7804_vm1 = vcmask 261120  }
 0x4ad   : > { %v5169_v8 = vadd.f32 %v5168_v3, %v5075_v6  ;;  %v11383_v39 = vpop.f32.mrf.mxu1 }
 0x4ae   : > { %v5093_v31 = vadd.f32 %v11383_v39, %v4994_v5  ;;  %v11393_v10 = vpop.f32.mrf.mxu0  ;;  %v12937_v39 = vand.u32 4294901760, %v6002_v15 }
 0x4af   : > { %v5086_v9 = vpop.f32.mrf.mxu1 }
 0x4b0   : > { %v5190_v17 = vadd.f32 %v11393_v10, %v5093_v31  ;;  %v5087_v25 = vadd.f32 %v5086_v9, %v4984_v58  ;;  %v5182_v42 = vpop.f32.mrf.mxu0  ;;  %v12931_v58 = vand.u32 4294901760, %v5999_v13 }
 0x4b1   : > { %v11400_v30 = vpop.f32.mrf.mxu1 }
 0x4b2   : > { %v5183_v36 = vadd.f32 %v5182_v42, %v5087_v25  ;;  %v5273_v52 = vadd.f32 %v11400_v30, %v5176_v27  ;;  %v11410_v57 = vpop.f32.mrf.mxu0  ;;  %v12940_v9 = vsub.f32 %v5999_v13, %v12931_v58 }
 0x4b3   : > { %v5264_v19 = vpop.f32.mrf.mxu1 }
 0x4b4   : > { %v5372_v61 = vadd.f32 %v11410_v57, %v5273_v52  ;;  %v5265_v16 = vadd.f32 %v5264_v19, %v5169_v8  ;;  %v5365_v50 = vpop.f32.mrf.mxu0  ;;  %v12935_v8 = vsub.f32 %v5996_v29, %v12929_v56  ;;  %v12944_v52 = vsub.f32 %v6002_v15, %v12937_v39 }
 0x4b5   : > { %v11403_v20 = vpop.f32.mrf.mxu1  ;;  %v6093_v19 = vand.u32 4294901760, %v12940_v9 }
 0x4b6   : > { %v5366_v11 = vadd.f32 %v5365_v50, %v5265_v16  ;;  %v5289_v22 = vadd.f32 %v11403_v20, %v5190_v17  ;;  %v11413_v63 = vpop.f32.mrf.mxu0 }
 0x4b7   : > { %v5280_v62 = vpop.f32.mrf.mxu1 }
 0x4b8   : > { %v5384_v32 = vadd.f32 %v11413_v63, %v5289_v22  ;;  %v5281_v4 = vadd.f32 %v5280_v62, %v5183_v36  ;;  %v5377_v26 = vpop.f32.mrf.mxu0  ;;  %v6083_v36 = vand.u32 4294901760, %v12935_v8  ;;  %v6103_v62 = vand.u32 4294901760, %v12944_v52 }
 0x4b9   : > { %v11420_v59 = vpop.f32.mrf.mxu1 }
 0x4ba   : > { %v5378_v2 = vadd.f32 %v5377_v26, %v5281_v4  ;;  %v12910_v1 = vadd.f32 %v11420_v59, %v5372_v61  ;;  %v11430_v14 = vpop.f32.mrf.mxu0  ;;  %v6084_v63 = vsub.f32 %v12935_v8, %v6083_v36  ;;  %v6094_v4 = vsub.f32 %v12940_v9, %v6093_v19 }
 0x4bb   : > { %v5456_v51 = vpop.f32.mrf.mxu1 }
 0x4bc   : > { %v12918_v0 = vadd.f32 %v5456_v51, %v5366_v11  ;;  %v5558_v33 = vpop.f32.mrf.mxu0  ;;  %v6085_v46 = vand.u32 4294901760, %v6084_v63  ;;  %v6104_v51 = vsub.f32 %v12944_v52, %v6103_v62  ;;  %v6095_v60 = vand.u32 4294901760, %v6094_v4 }
 0x4bd   : > { %v11423_v23 = vpop.f32.mrf.mxu1 }
 0x4be   : > { %v12921_v12 = vadd.f32 %v11423_v23, %v5384_v32  ;;  %v11444_v5 = vpop.f32.mrf.mxu0  ;;  %v6105_v29 = vand.u32 4294901760, %v6104_v51 }
 0x4bf   : > { %v5468_v34 = vpop.f32.mrf.mxu1 }
 0x4c0   : > { %v12927_v45 = vadd.f32 %v5468_v34, %v5378_v2  ;;  %v5731_v3 = vpop.f32.mrf.mxu0 }
 0x4c2   : > { %v11437_v37 = vpop.f32.mrf.mxu1 }
 0x4c3   : > { %v5656_v27 = vadd.f32 %v11437_v37, %v11430_v14  ;;  %v11458_v17 = vpop.f32.mrf.mxu0 }
 0x4c4   : > { %v5649_v6 = vpop.f32.mrf.mxu1 }
 0x4c5   : > { %v5650_v31 = vadd.f32 %v5649_v6, %v5558_v33  ;;  %v5739_v10 = vadd.f32 %v11444_v5, %v5656_v27  ;;  %v5898_v50 = vpop.f32.mrf.mxu0 }
 0x4c7   : > { %v11451_v25 = vpop.f32.mrf.mxu1  ;;  %v5732_v42 = vadd.f32 %v5731_v3, %v5650_v31 }
 0x4c8   : > { %v5822_v30 = vadd.f32 %v11451_v25, %v5739_v10 }
 0x4c9   : > { %v5813_v57 = vpop.f32.mrf.mxu1 }
 0x4ca   : > { %v5814_v61 = vadd.f32 %v5813_v57, %v5732_v42  ;;  %v5905_v16 = vadd.f32 %v11458_v17, %v5822_v30 }
 0x4cb   : > { %v11465_v20 = vpop.f32.mrf.mxu1 }
 0x4cc   : > { %v5984_v11 = vadd.f32 %v11465_v20, %v5905_v16  ;;  %v5899_v22 = vadd.f32 %v5898_v50, %v5814_v61 }
 0x4cd   : > { %v5977_v32 = vpop.f32.mrf.mxu1 }
 0x4ce   : > { %v6033_v26 = vand.u32 4294901760, %v5984_v11  ;;  %v5978_v59 = vadd.f32 %v5977_v32, %v5899_v22 }
 0x4d0   : > { %v6141_v2 = vsub.f32 %v5984_v11, %v6033_v26  ;;  %v6036_v14 = vand.u32 4294901760, %v5978_v59  ;;  %11466 = vmatprep.subr.mxu0 %v6033_v26 }
 0x4d1   : > { %11467 = vmatpush3.msra.mxu0 %v6033_v26 }
 0x4d2   : > { %v6148_v33 = vsub.f32 %v5978_v59, %v6036_v14  ;;  %11468 = vmatprep.subr.mxu0 %v6036_v14  ;;  %v6142_v23 = vand.u32 4294901760, %v6141_v2 }
 0x4d3   : > { %11469 = vmatpush3.msra.mxu0 %v6036_v14 }
 0x4d4   : > { %11471 = vmatmul.mubr.f32.vlgmr.msra.gmra.mxu0 %v6085_v46  ;;  %11486 = vmatprep.subr.mxu0 %v6141_v2  ;;  %v6143_v13 = vsub.f32 %v6141_v2, %v6142_v23  ;;  %v6149_v28 = vand.u32 4294901760, %v6148_v33 }
 0x4d5   : > { %11487 = vmatpush3.msra.mxu0 %v6141_v2  ;;  %11473 = vmatprep.mubr.f32.mxu0 %v6095_v60 }
 0x4d6   : > { %11488 = vmatprep.subr.mxu0 %v6148_v33  ;;  %v6144_v5 = vand.u32 4294901760, %v6143_v13  ;;  %v6150_v34 = vsub.f32 %v6148_v33, %v6149_v28 }
 0x4d7   : > { %11489 = vmatpush3.msra.mxu0 %v6148_v33 }
 0x4d8   : > { %11474 = vmatmul.mubr.f32.gmra.mxu0 %v6105_v29  ;;  %11476 = vmatprep.subr.mxu1 %v6144_v5  ;;  %v6151_v15 = vand.u32 4294901760, %v6150_v34 }
 0x4d9   : > { %11506 = vmatprep.subr.mxu0 %v6142_v23  ;;  %11477 = vmatpush3.msra.mxu1 %v6144_v5 }
 0x4da   : > { %11478 = vmatprep.subr.mxu1 %v6151_v15  ;;  %11490 = vmatprep.mubr.f32.mxu0 %v12888_v47 }
 0x4db   : > { %11479 = vmatpush3.msra.mxu1 %v6151_v15 }
 0x4dc   : > { %11481 = vmatmul.mubr.f32.vlgmr.msra.gmra.mxu1 %v12929_v56  ;;  %11491 = vmatmul.mubr.f32.vlgmr.msra.gmra.mxu0 %v12935_v8 }
 0x4dd   : > { %11496 = vmatprep.subr.mxu1 %v6033_v26  ;;  %11507 = vmatpush3.msra.mxu0 %v6142_v23 }
 0x4de   : > { %11497 = vmatpush3.msra.mxu1 %v6033_v26  ;;  %11508 = vmatprep.subr.mxu0 %v6149_v28 }
 0x4df   : > { %11498 = vmatprep.subr.mxu1 %v6036_v14  ;;  %11509 = vmatpush3.msra.mxu0 %v6149_v28 }
 0x4e0   : > { %11483 = vmatprep.mubr.f32.mxu1 %v12931_v58  ;;  %11499 = vmatpush3.msra.mxu1 %v6036_v14 }
 0x4e1   : > { %11484 = vmatmul.mubr.f32.gmra.mxu1 %v12937_v39  ;;  %11516 = vmatprep.subr.mxu1 %v6033_v26 }
 0x4e2   : > { %11493 = vmatprep.mubr.f32.mxu0 %v12940_v9  ;;  %11500 = vmatprep.mubr.f32.mxu1 %v6073_v55 }
 0x4e3   : > { %11494 = vmatmul.mubr.f32.gmra.mxu0 %v12944_v52  ;;  %11526 = vmatprep.subr.msk.mxu0 %vm12387_vm11, %v13616_v7  ;;  %v6603_v52 = vpop.permute.xlu1 %6602 }
 0x4e4   : > { %11510 = vmatprep.mubr.f32.mxu0 %v12885_v53 }
 0x4e5   : > { %11501 = vmatmul.mubr.f32.vlgmr.msra.gmra.mxu1 %v6083_v36 }
 0x4e6   : > { %11517 = vmatpush3.msra.mxu1 %v6033_v26  ;;  %11503 = vmatprep.mubr.f32.mxu1 %v6093_v19 }
 0x4e7   : > { %11518 = vmatprep.subr.mxu1 %v6036_v14  ;;  %11511 = vmatmul.mubr.f32.vlgmr.msra.gmra.mxu0 %v12929_v56  ;;  %v6608_v26 = vpop.permute.xlu1 %6607 }
 0x4e8   : > { %11519 = vmatpush3.msra.mxu1 %v6036_v14  ;;  %11513 = vmatprep.mubr.f32.mxu0 %v12931_v58 }
 0x4e9   : > { %11504 = vmatmul.mubr.f32.gmra.mxu1 %v6103_v62  ;;  %11534 = vmatprep.subr.mxu1 %v12418_v48 }
 0x4ea   : > { %11520 = vmatprep.mubr.f32.mxu1 %v12885_v53  ;;  %11527 = vmatpush3.msk.msra.mxu0 %vm12387_vm11, %v13616_v7 }
 0x4eb   : > { %11514 = vmatmul.mubr.f32.gmra.mxu0 %v12937_v39  ;;  %11542 = vmatprep.subr.mxu0 %v12405_v41 }
 0x4ed   : > { %11521 = vmatmul.mubr.f32.vlgmr.msra.gmra.mxu1 %v12929_v56 }
 0x4ee   : > { %11523 = vmatprep.mubr.f32.mxu1 %v12931_v58  ;;  %11535 = vmatpush3.msra.mxu1 %v12418_v48 }
 0x4ef   : > { %11550 = vmatprep.subr.msk.mxu1 %vm12387_vm11, %v13616_v7 }
 0x4f1   : > { %11524 = vmatmul.mubr.f32.gmra.mxu1 %v12937_v39 }
 0x594   : > { %v11472_v53 = vpop.f32.mrf.mxu0 }
 0x596   : > { %v6077_v47 = vpop.f32.mrf.mxu0 }
 0x598   : > { %v11475_v55 = vpop.f32.mrf.mxu0 }
 0x59a   : > { %v6097_v37 = vpop.f32.mrf.mxu0 }
 0x59c   : > { %v11482_v3 = vpop.f32.mrf.mxu1  ;;  %v11492_v27 = vpop.f32.mrf.mxu0 }
 0x59d   : > { %v6195_v56 = vadd.f32 %v11482_v3, %v11472_v53 }
 0x59e   : > { %v6188_v6 = vpop.f32.mrf.mxu1  ;;  %v6282_v8 = vpop.f32.mrf.mxu0 }
 0x59f   : > { %v6189_v9 = vadd.f32 %v6188_v6, %v6077_v47  ;;  %v6290_v25 = vadd.f32 %v11492_v27, %v6195_v56 }
 0x5a1   : > { %v11485_v31 = vpop.f32.mrf.mxu1  ;;  %v6283_v39 = vadd.f32 %v6282_v8, %v6189_v9  ;;  %v6613_v8 = vpop.permute.xlu0 %6612 }
 0x5a2   : > { %v6207_v42 = vadd.f32 %v11485_v31, %v11475_v55 }
 0x5a3   : > { %v6200_v10 = vpop.f32.mrf.mxu1  ;;  %v11495_v58 = vpop.f32.mrf.mxu0 }
 0x5a4   : > { %v6201_v57 = vadd.f32 %v6200_v10, %v6097_v37  ;;  %v6304_v50 = vadd.f32 %v11495_v58, %v6207_v42 }
 0x5a5   : > { %v6296_v48 = vpop.f32.mrf.mxu0  ;;  %v11502_v17 = vpop.f32.mrf.mxu1 }
 0x5a6   : > { %v6387_v19 = vadd.f32 %v11502_v17, %v6290_v25  ;;  %v6297_v63 = vadd.f32 %v6296_v48, %v6201_v57 }
 0x5a7   : > { %v6378_v30 = vpop.f32.mrf.mxu1  ;;  %v11512_v36 = vpop.f32.mrf.mxu0 }
 0x5a8   : > { %v6379_v20 = vadd.f32 %v6378_v30, %v6283_v39  ;;  %v6486_v62 = vadd.f32 %v11512_v36, %v6387_v19 }
 0x5a9   : > { %v11505_v61 = vpop.f32.mrf.mxu1  ;;  %v6479_v16 = vpop.f32.mrf.mxu0 }
 0x5aa   : > { %v6403_v32 = vadd.f32 %v11505_v61, %v6304_v50  ;;  %v6480_v59 = vadd.f32 %v6479_v16, %v6379_v20 }
 0x5ab   : > { %v6394_v11 = vpop.f32.mrf.mxu1  ;;  %v11515_v22 = vpop.f32.mrf.mxu0 }
 0x5ac   : > { %v6395_v2 = vadd.f32 %v6394_v11, %v6297_v63  ;;  %v6498_v60 = vadd.f32 %v11515_v22, %v6403_v32 }
 0x5ad   : > { %v11522_v4 = vpop.f32.mrf.mxu1  ;;  %v6491_v46 = vpop.f32.mrf.mxu0 }
 0x5ae   : > { %v6577_v14 = vadd.f32 %v11522_v4, %v6486_v62  ;;  %v6492_v13 = vadd.f32 %v6491_v46, %v6395_v2 }
 0x5af   : > { %v6570_v51 = vpop.f32.mrf.mxu1 }
 0x5b0   : > { %v6593_v33 = vadd.f32 %v6577_v14, %v12910_v1  ;;  %v6571_v23 = vadd.f32 %v6570_v51, %v6480_v59  ;;  %v6618_v1 = vpop.permute.xlu1 %6617 }
 0x5b1   : > { %v11525_v29 = vpop.f32.mrf.mxu1 }
 0x5b2   : > { %v6621_v28 = vadd.f32 %v6608_v26, %v6593_v33  ;;  %v6592_v5 = vadd.f32 %v6571_v23, %v12918_v0  ;;  %v6589_v34 = vadd.f32 %v11525_v29, %v6498_v60 }
 0x5b3   : > { %v6582_v15 = vpop.f32.mrf.mxu1 }
 0x5b4   : > { %v6625_v53 = vmax.f32 %v6621_v28, 0.0  ;;  %v6620_v47 = vadd.f32 %v6603_v52, %v6592_v5  ;;  %v6595_v55 = vadd.f32 %v6589_v34, %v12921_v12  ;;  %v6583_v37 = vadd.f32 %v6582_v15, %v6492_v13 }
 0x5b6   : > { %6630 = vst.msk [vmem:[%s310_s10 + $0x8] sm:$0xff] %vm6628_vm0, %v6625_v53  ;;  %v6637_v3 = vsel %vm6628_vm0, %v6625_v53, 0  ;;  %v6624_v27 = vmax.f32 %v6620_v47, 0.0  ;;  %v6623_v0 = vadd.f32 %v6618_v1, %v6595_v55  ;;  %v6594_v6 = vadd.f32 %v6583_v37, %v12927_v45 }
 0x5b7   : > { %v12992_v31 = vand.u32 4294901760, %v6637_v3 }
 0x5b8   : > { %6629 = vst.msk [vmem:[%s310_s10] sm:$0xff] %vm6628_vm0, %v6624_v27  ;;  %v6634_v56 = vsel %vm6628_vm0, %v6624_v27, 0  ;;  %v6627_v10 = vmax.f32 %v6623_v0, 0.0  ;;  %v6622_v58 = vadd.f32 %v6613_v8, %v6594_v6 }
 0x5b9   : > { %v12997_v12 = vsub.f32 %v6637_v3, %v12992_v31  ;;  %v12999_v9 = vand.u32 4294901760, %v6634_v56 }
 0x5ba   : > { %6632 = vst.msk [vmem:[%s310_s10 + $0x18] sm:$0xff] %vm6628_vm0, %v6627_v10  ;;  %v6643_v48 = vsel %vm6628_vm0, %v6627_v10, 0  ;;  %v6626_v17 = vmax.f32 %v6622_v58, 0.0 }
 0x5bb   : > { %v13004_v45 = vsub.f32 %v6634_v56, %v12999_v9  ;;  %v13006_v25 = vand.u32 4294901760, %v6643_v48  ;;  %11536 = vmatprep.mubr.f32.mxu1 %v12999_v9  ;;  %v13010_v42 = vand.u32 4294901760, %v12997_v12 }
 0x5bc   : > { %6631 = vst.msk [vmem:[%s310_s10 + $0x10] sm:$0xff] %vm6628_vm0, %v6626_v17  ;;  %v6640_v30 = vsel %vm6628_vm0, %v6626_v17, 0  ;;  %11537 = vmatmul.mubr.f32.vlgmr.msra.gmra.mxu1 %v12992_v31 }
 0x5bd   : > { %13636 = vst [vmem:[#allocation2_spill] sm:$0xff] %v13010_v42  ;;  %v13016_v36 = vsub.f32 %v6643_v48, %v13006_v25  ;;  %v13018_v39 = vand.u32 4294901760, %v6640_v30  ;;  %v13021_v52 = vand.u32 4294901760, %v13004_v45  ;;  %11551 = vmatpush3.msk.msra.mxu1 %vm12387_vm11, %v13616_v7  ;;  %v6724_v57 = vsub.f32 %v12997_v12, %v13010_v42 }
 0x5be   : > { %11566 = vmatprep.subr.msk.mxu1 %vm12387_vm11, %v13616_v7 }
 0x5bf   : > { %13637 = vst [vmem:[#allocation3_spill] sm:$0xff] %v13021_v52  ;;  %v13032_v19 = vsub.f32 %v6640_v30, %v13018_v39  ;;  %11539 = vmatprep.mubr.f32.mxu1 %v13018_v39  ;;  %v6714_v61 = vsub.f32 %v13004_v45, %v13021_v52  ;;  %v13038_v16 = vand.u32 4294901760, %v13016_v36  ;;  %v13047_v11 = vand.u32 4294901760, %v6724_v57 }
 0x5c0   : > { %11540 = vmatmul.mubr.f32.gmra.mxu1 %v13006_v25 }
 0x5c1   : > { %13638 = vst [vmem:[#allocation4_spill] sm:$0xff] %v13038_v16  ;;  %11552 = vmatprep.mubr.f32.mxu1 %v13021_v52  ;;  %v13042_v50 = vand.u32 4294901760, %v6714_v61  ;;  %v13045_v20 = vand.u32 4294901760, %v13032_v19  ;;  %v6744_v22 = vsub.f32 %v13016_v36, %v13038_v16 }
 0x5c3   : > { %13639 = vst [vmem:[#allocation5_spill] sm:$0xff] %v13045_v20  ;;  %11528 = vmatprep.mubr.f32.mxu0 %v13042_v50  ;;  %v6734_v63 = vsub.f32 %v13032_v19, %v13045_v20  ;;  %v13060_v32 = vand.u32 4294901760, %v6744_v22 }
 0x5c4   : > { %11529 = vmatmul.mubr.f32.vlgmr.msra.gmra.mxu0 %v13047_v11  ;;  %11553 = vmatmul.mubr.f32.vlgmr.msra.gmra.mxu1 %v13010_v42 }
 0x5c5   : > { %11555 = vmatprep.mubr.f32.mxu1 %v13045_v20  ;;  %v13057_v62 = vand.u32 4294901760, %v6734_v63  ;;  %11543 = vmatpush3.msra.mxu0 %v12405_v41  ;;  %v7806_v41 = vsel %vm7804_vm1, %v10467_v24, 0 }
 0x5c6   : > { %11567 = vmatpush3.msk.msra.mxu1 %vm12387_vm11, %v13616_v7  ;;  %11558 = vmatprep.subr.mxu0 %v12414_v44 }
 0x5c7   : > { %11531 = vmatprep.mubr.f32.mxu0 %v13057_v62  ;;  %11582 = vmatprep.subr.mxu1 %v12525_v35 }
 0x5c8   : > { %11532 = vmatmul.mubr.f32.gmra.mxu0 %v13060_v32  ;;  %11556 = vmatmul.mubr.f32.gmra.mxu1 %v13038_v16 }
 0x5c9   : > { %11544 = vmatprep.mubr.f32.mxu0 %v13004_v45  ;;  %11568 = vmatprep.mubr.f32.mxu1 %v12999_v9 }
 0x5cc   : > { %11545 = vmatmul.mubr.f32.vlgmr.msra.gmra.mxu0 %v12997_v12  ;;  %11569 = vmatmul.mubr.f32.vlgmr.msra.gmra.mxu1 %v12992_v31 }
 0x5cd   : > { %11547 = vmatprep.mubr.f32.mxu0 %v13032_v19  ;;  %11571 = vmatprep.mubr.f32.mxu1 %v13018_v39 }
 0x5ce   : > { %11559 = vmatpush3.msra.mxu0 %v12414_v44  ;;  %11583 = vmatpush3.msra.mxu1 %v12525_v35  ;;  %v13134_v44 = vand.u32 4294901760, %v7806_v41 }
 0x5cf   : > { %11574 = vmatprep.subr.msk.mxu0 %vm12446_vm13, %v13616_v7  ;;  %11598 = vmatprep.subr.msk.mxu1 %vm12446_vm13, %v13616_v7 }
 0x5d0   : > { %11548 = vmatmul.mubr.f32.gmra.mxu0 %v13016_v36  ;;  %11572 = vmatmul.mubr.f32.gmra.mxu1 %v13006_v25  ;;  %v13137_v49 = vsub.f32 %v7806_v41, %v13134_v44 }
 0x5d1   : > { %11560 = vmatprep.mubr.f32.mxu0 %v12999_v9  ;;  %11584 = vmatprep.mubr.f32.mxu1 %v12999_v9 }
 0x5d4   : > { %11561 = vmatmul.mubr.f32.vlgmr.msra.gmra.mxu0 %v12992_v31  ;;  %11585 = vmatmul.mubr.f32.vlgmr.msra.gmra.mxu1 %v12992_v31 }
 0x5d5   : > { %11563 = vmatprep.mubr.f32.mxu0 %v13018_v39  ;;  %11587 = vmatprep.mubr.f32.mxu1 %v13018_v39 }
 0x5d6   : > { %11575 = vmatpush3.msk.msra.mxu0 %vm12446_vm13, %v13616_v7  ;;  %11599 = vmatpush3.msk.msra.mxu1 %vm12446_vm13, %v13616_v7 }
 0x5d7   : > { %11590 = vmatprep.subr.mxu0 %v12462_v43  ;;  %11614 = vmatprep.subr.msk.mxu1 %vm12446_vm13, %v13616_v7 }
 0x5d8   : > { %11564 = vmatmul.mubr.f32.gmra.mxu0 %v13006_v25  ;;  %11588 = vmatmul.mubr.f32.gmra.mxu1 %v13006_v25 }
 0x5d9   : > { %11576 = vmatprep.mubr.f32.mxu0 %v13042_v50  ;;  %11600 = vmatprep.mubr.f32.mxu1 %v13021_v52 }
 0x5dc   : > { %11577 = vmatmul.mubr.f32.vlgmr.msra.gmra.mxu0 %v13047_v11  ;;  %11601 = vmatmul.mubr.f32.vlgmr.msra.gmra.mxu1 %v13010_v42 }
 0x5dd   : > { %11579 = vmatprep.mubr.f32.mxu0 %v13057_v62  ;;  %11603 = vmatprep.mubr.f32.mxu1 %v13045_v20 }
 0x5de   : > { %11591 = vmatpush3.msra.mxu0 %v12462_v43  ;;  %11615 = vmatpush3.msk.msra.mxu1 %vm12446_vm13, %v13616_v7  ;;  %v13618_v43 = vand.u32 4294901760, %v13137_v49 }
 0x5df   : > { %11606 = vmatprep.subr.mxu0 %v12481_v54 }
 0x5e0   : > { %11580 = vmatmul.mubr.f32.gmra.mxu0 %v13060_v32  ;;  %11604 = vmatmul.mubr.f32.gmra.mxu1 %v13038_v16 }
 0x5e1   : > { %11592 = vmatprep.mubr.f32.mxu0 %v13004_v45  ;;  %11616 = vmatprep.mubr.f32.mxu1 %v12999_v9 }
 0x5e4   : > { %11593 = vmatmul.mubr.f32.vlgmr.msra.gmra.mxu0 %v12997_v12  ;;  %11617 = vmatmul.mubr.f32.vlgmr.msra.gmra.mxu1 %v12992_v31 }
 0x5e5   : > { %11595 = vmatprep.mubr.f32.mxu0 %v13032_v19  ;;  %11619 = vmatprep.mubr.f32.mxu1 %v13018_v39 }
 0x5e6   : > { %11607 = vmatpush3.msra.mxu0 %v12481_v54  ;;  %v7889_v54 = vsub.f32 %v13137_v49, %v13618_v43 }
 0x5e8   : > { %11596 = vmatmul.mubr.f32.gmra.mxu0 %v13016_v36  ;;  %11620 = vmatmul.mubr.f32.gmra.mxu1 %v13006_v25  ;;  %v7890_v35 = vand.u32 4294901760, %v7889_v54 }
 0x5e9   : > { %11608 = vmatprep.mubr.f32.mxu0 %v12999_v9  ;;  %11644 = vmatprep.mubr.f32.mxu1 %v13134_v44 }
 0x5ec   : > { %11609 = vmatmul.mubr.f32.vlgmr.msra.gmra.mxu0 %v12992_v31 }
 0x5ed   : > { %11611 = vmatprep.mubr.f32.mxu0 %v13018_v39 }
 0x5f0   : > { %11612 = vmatmul.mubr.f32.gmra.mxu0 %v13006_v25 }
 0x5f1   : > { %11630 = vmatprep.mubr.f32.mxu0 %v7890_v35 }
 0x67c   : > { %v11538_v4 = vpop.f32.mrf.mxu1 }
 0x67e   : > { %v6823_v26 = vpop.f32.mrf.mxu1 }
 0x680   : > { %v13144_v59 = vpop.f32.mrf.mxu1 }
 0x682   : > { %v13146_v2 = vpop.f32.mrf.mxu1 }
 0x684   : > { %v11530_v14 = vpop.f32.mrf.mxu0  ;;  %v11554_v46 = vpop.f32.mrf.mxu1 }
 0x685   : > { %v6830_v51 = vadd.f32 %v11538_v4, %v11530_v14 }
 0x686   : > { %v6717_v60 = vpop.f32.mrf.mxu0  ;;  %v7010_v33 = vpop.f32.mrf.mxu1 }
 0x687   : > { %v6824_v23 = vadd.f32 %v6823_v26, %v6717_v60 }
 0x688   : > { %v13148_v29 = vpop.f32.mrf.mxu0  ;;  %v13150_v13 = vpop.f32.mrf.mxu1 }
 0x68a   : > { %v13152_v28 = vpop.f32.mrf.mxu0  ;;  %v13154_v5 = vpop.f32.mrf.mxu1 }
 0x68c   : > { %v11546_v34 = vpop.f32.mrf.mxu0  ;;  %v11570_v15 = vpop.f32.mrf.mxu1 }
 0x68d   : > { %v6923_v53 = vadd.f32 %v11546_v34, %v6830_v51 }
 0x68e   : > { %v6915_v47 = vpop.f32.mrf.mxu0  ;;  %v7198_v55 = vpop.f32.mrf.mxu1 }
 0x68f   : > { %v6916_v37 = vadd.f32 %v6915_v47, %v6824_v23  ;;  %v7019_v1 = vadd.f32 %v11554_v46, %v6923_v53  ;;  %v10468_v23 = vld [vmem:[%s13612_s5 + $0x28] sm:$0xff] }
 0x690   : > { %v13156_v3 = vpop.f32.mrf.mxu0  ;;  %v13158_v27 = vpop.f32.mrf.mxu1 }
 0x691   : > { %v7011_v0 = vadd.f32 %v7010_v33, %v6916_v37 }
 0x692   : > { %v13160_v6 = vpop.f32.mrf.mxu0  ;;  %v13162_v8 = vpop.f32.mrf.mxu1 }
 0x694   : > { %v11562_v56 = vpop.f32.mrf.mxu0  ;;  %v11586_v10 = vpop.f32.mrf.mxu1 }
 0x695   : > { %v7115_v58 = vadd.f32 %v11562_v56, %v7019_v1 }
 0x696   : > { %v7108_v48 = vpop.f32.mrf.mxu0  ;;  %v7402_v17 = vpop.f32.mrf.mxu1 }
 0x697   : > { %v13164_v30 = vadd.f32 %v11570_v15, %v7115_v58  ;;  %v7109_v57 = vadd.f32 %v7108_v48, %v7011_v0  ;;  %v10469_v0 = vld [vmem:[%s13612_s5 + $0x30] sm:$0xff] }
 0x698   : > { %v13166_v61 = vpop.f32.mrf.mxu0  ;;  %v11589_v22 = vpop.f32.mrf.mxu1 }
 0x699   : > { %v13168_v63 = vadd.f32 %v7198_v55, %v7109_v57  ;;  %v7809_v55 = vsel %vm7804_vm1, %v10468_v23, 0 }
 0x69a   : > { %v13170_v24 = vpop.f32.mrf.mxu0  ;;  %v7414_v41 = vpop.f32.mrf.mxu1  ;;  %v13179_v57 = vand.u32 4294901760, %v7809_v55 }
 0x69c   : > { %v11578_v54 = vpop.f32.mrf.mxu0  ;;  %v11602_v35 = vpop.f32.mrf.mxu1  ;;  %v13189_v52 = vsub.f32 %v7809_v55, %v13179_v57 }
 0x69d   : > { %v7409_v34 = vadd.f32 %v11586_v10, %v11578_v54  ;;  %v10470_v10 = vld [vmem:[%s13612_s5 + $0x38] sm:$0xff] }
 0x69e   : > { %v7296_v4 = vpop.f32.mrf.mxu0  ;;  %v7589_v26 = vpop.f32.mrf.mxu1 }
 0x69f   : > { %v7403_v53 = vadd.f32 %v7402_v17, %v7296_v4 }
 0x6a0   : > { %v11581_v14 = vpop.f32.mrf.mxu0  ;;  %v11605_v46 = vpop.f32.mrf.mxu1 }
 0x6a1   : > { %v7421_v56 = vadd.f32 %v11589_v22, %v11581_v14  ;;  %v7815_v22 = vsel %vm7804_vm1, %v10470_v10, 0 }
 0x6a2   : > { %v7316_v51 = vpop.f32.mrf.mxu0  ;;  %v7605_v60 = vpop.f32.mrf.mxu1 }
 0x6a3   : > { %v7415_v54 = vadd.f32 %v7414_v41, %v7316_v51  ;;  %v13191_v51 = vand.u32 4294901760, %v7815_v22 }
 0x6a4   : > { %v11594_v33 = vpop.f32.mrf.mxu0  ;;  %v11618_v37 = vpop.f32.mrf.mxu1 }
 0x6a5   : > { %v7502_v47 = vadd.f32 %v11594_v33, %v7409_v34  ;;  %v7812_v33 = vsel %vm7804_vm1, %v10469_v0, 0 }
 0x6a6   : > { %v7494_v15 = vpop.f32.mrf.mxu0  ;;  %v7777_v23 = vpop.f32.mrf.mxu1 }
 0x6a7   : > { %v7495_v58 = vadd.f32 %v7494_v15, %v7403_v53  ;;  %v7598_v4 = vadd.f32 %v11602_v35, %v7502_v47  ;;  %v13186_v15 = vand.u32 4294901760, %v7812_v33 }
 0x6a8   : > { %v11597_v1 = vpop.f32.mrf.mxu0  ;;  %v11621_v41 = vpop.f32.mrf.mxu1 }
 0x6a9   : > { %v7516_v17 = vadd.f32 %v11597_v1, %v7421_v56  ;;  %v7590_v16 = vadd.f32 %v7589_v26, %v7495_v58  ;;  %v13196_v58 = vsub.f32 %v7812_v33, %v13186_v15 }
 0x6aa   : > { %v7508_v48 = vpop.f32.mrf.mxu0 }
 0x6ab   : > { %v7509_v7 = vadd.f32 %v7508_v48, %v7415_v54  ;;  %v7614_v42 = vadd.f32 %v11605_v46, %v7516_v17  ;;  %v7789_v46 = vpop.f32.mrf.mxu1 }
 0x6ac   : > { %v11610_v34 = vpop.f32.mrf.mxu0 }
 0x6ad   : > { %v7694_v43 = vadd.f32 %v11610_v34, %v7598_v4  ;;  %v7606_v0 = vadd.f32 %v7605_v60, %v7509_v7 }
 0x6ae   : > { %v7687_v14 = vpop.f32.mrf.mxu0 }
 0x6af   : > { %v7784_v53 = vadd.f32 %v11618_v37, %v7694_v43  ;;  %v7688_v20 = vadd.f32 %v7687_v14, %v7590_v16  ;;  %v7898_v16 = vand.u32 4294901760, %v13189_v52  ;;  %v13202_v37 = vsub.f32 %v7815_v22, %v13191_v51 }
 0x6b0   : > { %v11613_v35 = vpop.f32.mrf.mxu0 }
 0x6b1   : > { %v7778_v47 = vadd.f32 %v7777_v23, %v7688_v20  ;;  %v7706_v1 = vadd.f32 %v11613_v35, %v7614_v42  ;;  %v13193_v56 = vand.u32 4294901760, %v7784_v53  ;;  %v7908_v20 = vand.u32 4294901760, %v13196_v58 }
 0x6b2   : > { %v7699_v26 = vpop.f32.mrf.mxu0  ;;  %v7899_v17 = vsub.f32 %v13189_v52, %v7898_v16  ;;  %v13623_v33 = vand.u32 4294901760, %v13202_v37 }
 0x6b3   : > { %v7796_v48 = vadd.f32 %v11621_v41, %v7706_v1  ;;  %v7700_v43 = vadd.f32 %v7699_v26, %v7606_v0  ;;  %v13199_v55 = vand.u32 4294901760, %v7778_v47  ;;  %v7966_v7 = vsub.f32 %v7784_v53, %v13193_v56 }
 0x6b4   : > { %v7909_v22 = vsub.f32 %v13196_v58, %v7908_v20  ;;  %v7900_v53 = vand.u32 4294901760, %v7899_v17 }
 0x6b5   : > { %v13204_v10 = vand.u32 4294901760, %v7796_v48  ;;  %v7790_v42 = vadd.f32 %v7789_v46, %v7700_v43  ;;  %v7973_v4 = vsub.f32 %v7778_v47, %v13199_v55  ;;  %v13224_v14 = vand.u32 4294901760, %v7966_v7 }
 0x6b6   : > { %v7919_v47 = vsub.f32 %v13202_v37, %v13623_v33 }
 0x6b7   : > { %v7952_v60 = vsub.f32 %v7796_v48, %v13204_v10  ;;  %v13209_v54 = vand.u32 4294901760, %v7790_v42  ;;  %11622 = vmatprep.subr.mxu0 %v13204_v10  ;;  %v13233_v1 = vand.u32 4294901760, %v7973_v4  ;;  %v7910_v48 = vand.u32 4294901760, %v7909_v22 }
 0x6b8   : > { %11623 = vmatpush3.msra.mxu0 %v13204_v10  ;;  %v7968_v43 = vsub.f32 %v7966_v7, %v13224_v14  ;;  %v7920_v17 = vand.u32 4294901760, %v7919_v47 }
 0x6b9   : > { %v7959_v23 = vsub.f32 %v7790_v42, %v13209_v54  ;;  %11624 = vmatprep.subr.mxu0 %v13209_v54  ;;  %v7953_v34 = vand.u32 4294901760, %v7952_v60  ;;  %v6842_v42 = vadd.f32 %v13144_v59, %v13148_v29  ;;  %v7975_v33 = vsub.f32 %v7973_v4, %v13233_v1 }
 0x6ba   : > { %11625 = vmatpush3.msra.mxu0 %v13209_v54 }
 0x6bb   : > { %11626 = vmatprep.subr.mxu0 %v13193_v56  ;;  %v7954_v41 = vsub.f32 %v7952_v60, %v7953_v34  ;;  %v13227_v35 = vand.u32 4294901760, %v7959_v23  ;;  %v6937_v22 = vadd.f32 %v13156_v3, %v6842_v42  ;;  %v7976_v59 = vand.u32 4294901760, %v7975_v33  ;;  %v7223_v33 = vld [vmem:[%s13612_s5 + $0x18] sm:$0xff] }
 0x6bc   : > { %11627 = vmatpush3.msra.mxu0 %v13193_v56 }
 0x6bd   : > { %11628 = vmatprep.subr.mxu0 %v13199_v55  ;;  %v7955_v0 = vand.u32 4294901760, %v7954_v41  ;;  %v7961_v26 = vsub.f32 %v7959_v23, %v13227_v35  ;;  %v6836_v41 = vadd.f32 %v13146_v2, %v13152_v28  ;;  %v7035_v29 = vadd.f32 %v13150_v13, %v6937_v22  ;;  %v7220_v2 = vld [vmem:[%s13612_s5] sm:$0xff]  ;;  %v7221_v28 = vld [vmem:[%s13612_s5 + $0x8] sm:$0xff] }
 0x6be   : > { %11629 = vmatpush3.msra.mxu0 %v13199_v55  ;;  %v8432_v13 = vsel %vm7804_vm1, %v7220_v2, 0 }
 0x6bf   : > { %11631 = vmatmul.mubr.f32.vlgmr.msra.gmra.mxu0 %v7900_v53  ;;  %11636 = vmatprep.subr.mxu1 %v7955_v0  ;;  %v7962_v46 = vand.u32 4294901760, %v7961_v26  ;;  %v7969_v53 = vand.u32 4294901760, %v7968_v43  ;;  %v6930_v26 = vadd.f32 %v13160_v6, %v6836_v41  ;;  %v7127_v3 = vadd.f32 %v13166_v61, %v7035_v29 }
 0x6c0   : > { %11650 = vmatprep.subr.mxu0 %v7952_v60  ;;  %11637 = vmatpush3.msra.mxu1 %v7955_v0  ;;  %v13640_v43 = vand.u32 4294901760, %v13137_v49  ;;  %v13320_v41 = vand.u32 4294901760, %v13164_v30 }
 0x6c1   : > { %11651 = vmatpush3.msra.mxu0 %v7952_v60  ;;  %11638 = vmatprep.subr.mxu1 %v7962_v46  ;;  %v7027_v6 = vadd.f32 %v13154_v5, %v6930_v26  ;;  %v8435_v60 = vsel %vm7804_vm1, %v7221_v28, 0  ;;  %v7222_v5 = vld [vmem:[%s13612_s5 + $0x10] sm:$0xff]  ;;  %v7217_v61 = vadd.f32 %v13158_v27, %v7127_v3 }
 0x6c2   : > { %11652 = vmatprep.subr.mxu0 %v7959_v23  ;;  %11633 = vmatprep.mubr.f32.mxu0 %v7910_v48  ;;  %v8438_v27 = vsel %vm7804_vm1, %v7222_v5, 0 }
 0x6c3   : > { %11639 = vmatpush3.msra.mxu1 %v7962_v46  ;;  %11653 = vmatpush3.msra.mxu0 %v7959_v23  ;;  %v13297_v0 = vand.u32 4294901760, %v8438_v27 }
 0x6c4   : > { %11634 = vmatmul.mubr.f32.gmra.mxu0 %v7920_v17  ;;  %11640 = vmatprep.subr.mxu1 %v7969_v53 }
 0x6c5   : > { %11654 = vmatprep.subr.mxu0 %v7966_v7  ;;  %11641 = vmatpush3.msra.mxu1 %v7969_v53 }
 0x6c6   : > { %11655 = vmatpush3.msra.mxu0 %v7966_v7  ;;  %11642 = vmatprep.subr.mxu1 %v7976_v59  ;;  %v7121_v7 = vadd.f32 %v13170_v24, %v7027_v6  ;;  %v13273_v24 = vand.u32 4294901760, %v8435_v60 }
 0x6c7   : > { %11656 = vmatprep.subr.mxu0 %v7973_v4  ;;  %11643 = vmatpush3.msra.mxu1 %v7976_v59  ;;  %v8592_v59 = vsub.f32 %v13164_v30, %v13320_v41 }
 0x6c8   : > { %11657 = vmatpush3.msra.mxu0 %v7973_v4  ;;  %11658 = vmatprep.mubr.f32.mxu0 %v13137_v49  ;;  %v13269_v4 = vand.u32 4294901760, %v8432_v13  ;;  %v7211_v23 = vadd.f32 %v13162_v8, %v7121_v7  ;;  %v8441_v8 = vsel %vm7804_vm1, %v7223_v33, 0  ;;  %v13317_v49 = vsub.f32 %v8438_v27, %v13297_v0 }
 0x6c9   : > { %11645 = vmatmul.mubr.f32.vlgmr.msra.gmra.mxu1 %v13179_v57  ;;  %11659 = vmatmul.mubr.f32.vlgmr.msra.gmra.mxu0 %v13189_v52  ;;  %v13306_v46 = vand.u32 4294901760, %v8441_v8  ;;  %v8593_v3 = vand.u32 4294901760, %v8592_v59 }
 0x6ca   : > { %11664 = vmatprep.subr.mxu1 %v13204_v10  ;;  %11678 = vmatprep.subr.mxu0 %v7953_v34  ;;  %v13289_v47 = vsub.f32 %v8432_v13, %v13269_v4  ;;  %v13299_v48 = vand.u32 4294901760, %v7211_v23  ;;  %v8534_v26 = vand.u32 4294901760, %v13317_v49 }
 0x6cb   : > { %11665 = vmatpush3.msra.mxu1 %v13204_v10  ;;  %11679 = vmatpush3.msra.mxu0 %v7953_v34  ;;  %v13284_v34 = vand.u32 4294901760, %v7217_v61  ;;  %v13328_v52 = vsub.f32 %v8441_v8, %v13306_v46  ;;  %v8594_v5 = vsub.f32 %v8592_v59, %v8593_v3 }
 0x6cc   : > { %11666 = vmatprep.subr.mxu1 %v13209_v54  ;;  %11680 = vmatprep.subr.mxu0 %v13227_v35  ;;  %v8514_v42 = vand.u32 4294901760, %v13289_v47  ;;  %v8585_v22 = vsub.f32 %v7211_v23, %v13299_v48  ;;  %v8535_v28 = vsub.f32 %v13317_v49, %v8534_v26 }
 0x6cd   : > { %11647 = vmatprep.mubr.f32.mxu1 %v13186_v15  ;;  %11661 = vmatprep.mubr.f32.mxu0 %v13196_v58  ;;  %v13641_v58 = vand.u32 4294901760, %v13202_v37 }
 0x6ce   : > { %11667 = vmatpush3.msra.mxu1 %v13209_v54  ;;  %11681 = vmatpush3.msra.mxu0 %v13227_v35  ;;  %v13295_v35 = vsub.f32 %v8435_v60, %v13273_v24  ;;  %v13351_v29 = vand.u32 4294901760, %v8585_v22  ;;  %v8536_v7 = vand.u32 4294901760, %v8535_v28 }
 0x6cf   : > { %11648 = vmatmul.mubr.f32.gmra.mxu1 %v13191_v51  ;;  %11662 = vmatmul.mubr.f32.gmra.mxu0 %v13202_v37 }
 0x6d0   : > { %11668 = vmatprep.subr.mxu1 %v13193_v56  ;;  %11682 = vmatprep.subr.mxu0 %v13224_v14  ;;  %v8524_v17 = vand.u32 4294901760, %v13295_v35 }
 0x6d1   : > { %11669 = vmatpush3.msra.mxu1 %v13193_v56  ;;  %11683 = vmatpush3.msra.mxu0 %v13224_v14  ;;  %v8578_v14 = vsub.f32 %v7217_v61, %v13284_v34  ;;  %v8595_v61 = vand.u32 4294901760, %v8594_v5 }
 0x6d2   : > { %11670 = vmatprep.subr.mxu1 %v13199_v55  ;;  %11684 = vmatprep.subr.mxu0 %v13233_v1 }
 0x6d3   : > { %11671 = vmatpush3.msra.mxu1 %v13199_v55  ;;  %11672 = vmatprep.mubr.f32.mxu1 %v13640_v43  ;;  %v13338_v53 = vand.u32 4294901760, %v8578_v14 }
 0x6d4   : > { %11685 = vmatpush3.msra.mxu0 %v13233_v1  ;;  %11686 = vmatprep.mubr.f32.mxu0 %v13134_v44  ;;  %v8515_v1 = vsub.f32 %v13289_v47, %v8514_v42 }
 0x6d5   : > { %11673 = vmatmul.mubr.f32.vlgmr.msra.gmra.mxu1 %v7898_v16  ;;  %11687 = vmatmul.mubr.f32.vlgmr.msra.gmra.mxu0 %v13179_v57  ;;  %v13331_v16 = vand.u32 4294901760, %v13168_v63 }
 0x6d6   : > { %11692 = vmatprep.subr.mxu1 %v13204_v10  ;;  %11706 = vmatprep.subr.mxu0 %v13284_v34  ;;  %v8516_v30 = vand.u32 4294901760, %v8515_v1 }
 0x6d7   : > { %11693 = vmatpush3.msra.mxu1 %v13204_v10  ;;  %11707 = vmatpush3.msra.mxu0 %v13284_v34  ;;  %v8525_v10 = vsub.f32 %v13295_v35, %v8524_v17  ;;  %v8599_v2 = vsub.f32 %v13168_v63, %v13331_v16  ;;  %v8587_v63 = vsub.f32 %v8585_v22, %v13351_v29 }
 0x6d8   : > { %11694 = vmatprep.subr.mxu1 %v13209_v54  ;;  %11708 = vmatprep.subr.mxu0 %v13299_v48 }
 0x6d9   : > { %11675 = vmatprep.mubr.f32.mxu1 %v7908_v20  ;;  %11689 = vmatprep.mubr.f32.mxu0 %v13186_v15  ;;  %v8544_v20 = vand.u32 4294901760, %v13328_v52  ;;  %v8526_v37 = vand.u32 4294901760, %v8525_v10  ;;  %v8600_v13 = vand.u32 4294901760, %v8599_v2  ;;  %v8588_v60 = vand.u32 4294901760, %v8587_v63 }
 0x6da   : > { %11695 = vmatpush3.msra.mxu1 %v13209_v54  ;;  %11709 = vmatpush3.msra.mxu0 %v13299_v48  ;;  %v8580_v54 = vsub.f32 %v8578_v14, %v13338_v53 }
 0x6db   : > { %11676 = vmatmul.mubr.f32.gmra.mxu1 %v13641_v58  ;;  %11690 = vmatmul.mubr.f32.gmra.mxu0 %v13191_v51 }
 0x6dc   : > { %11696 = vmatprep.subr.mxu1 %v13193_v56  ;;  %11710 = vmatprep.subr.mxu0 %v13320_v41  ;;  %v8581_v6 = vand.u32 4294901760, %v8580_v54 }
 0x6dd   : > { %11697 = vmatpush3.msra.mxu1 %v13193_v56  ;;  %11711 = vmatpush3.msra.mxu0 %v13320_v41  ;;  %v8545_v56 = vsub.f32 %v13328_v52, %v8544_v20 }
 0x6de   : > { %11698 = vmatprep.subr.mxu1 %v13199_v55  ;;  %11712 = vmatprep.subr.mxu0 %v13331_v16 }
 0x6df   : > { %11699 = vmatpush3.msra.mxu1 %v13199_v55  ;;  %11700 = vmatprep.mubr.f32.mxu1 %v13134_v44  ;;  %v8546_v44 = vand.u32 4294901760, %v8545_v56  ;;  %v8601_v55 = vsub.f32 %v8599_v2, %v8600_v13 }
 0x6e0   : > { %11713 = vmatpush3.msra.mxu0 %v13331_v16  ;;  %11714 = vmatprep.mubr.f32.mxu0 %v8516_v30 }
 0x6e1   : > { %11701 = vmatmul.mubr.f32.vlgmr.msra.gmra.mxu1 %v13179_v57  ;;  %11715 = vmatmul.mubr.f32.vlgmr.msra.gmra.mxu0 %v8526_v37  ;;  %v8602_v57 = vand.u32 4294901760, %v8601_v55 }
 0x6e2   : > { %11720 = vmatprep.subr.mxu1 %v8581_v6  ;;  %11734 = vmatprep.subr.mxu0 %v8578_v14 }
 0x6e3   : > { %11721 = vmatpush3.msra.mxu1 %v8581_v6  ;;  %11735 = vmatpush3.msra.mxu0 %v8578_v14 }
 0x6e4   : > { %11722 = vmatprep.subr.mxu1 %v8588_v60  ;;  %11736 = vmatprep.subr.mxu0 %v8585_v22 }
 0x6e5   : > { %11703 = vmatprep.mubr.f32.mxu1 %v13186_v15  ;;  %11717 = vmatprep.mubr.f32.mxu0 %v8536_v7  ;;  %v13642_v15 = vmov 1.0  }
 0x6e6   : > { %11723 = vmatpush3.msra.mxu1 %v8588_v60  ;;  %11737 = vmatpush3.msra.mxu0 %v8585_v22 }
 0x6e7   : > { %11704 = vmatmul.mubr.f32.gmra.mxu1 %v13191_v51  ;;  %11718 = vmatmul.mubr.f32.gmra.mxu0 %v8546_v44 }
 0x6e8   : > { %11724 = vmatprep.subr.mxu1 %v8595_v61  ;;  %11738 = vmatprep.subr.mxu0 %v8592_v59 }
 0x6e9   : > { %11725 = vmatpush3.msra.mxu1 %v8595_v61  ;;  %11739 = vmatpush3.msra.mxu0 %v8592_v59 }
 0x6ea   : > { %11726 = vmatprep.subr.mxu1 %v8602_v57  ;;  %11740 = vmatprep.subr.mxu0 %v8599_v2 }
 0x6eb   : > { %11727 = vmatpush3.msra.mxu1 %v8602_v57  ;;  %11728 = vmatprep.mubr.f32.mxu1 %v13269_v4 }
 0x6ec   : > { %11741 = vmatpush3.msra.mxu0 %v8599_v2  ;;  %11742 = vmatprep.mubr.f32.mxu0 %v13289_v47 }
 0x6ed   : > { %11729 = vmatmul.mubr.f32.vlgmr.msra.gmra.mxu1 %v13273_v24  ;;  %11743 = vmatmul.mubr.f32.vlgmr.msra.gmra.mxu0 %v13295_v35 }
 0x6ee   : > { %11748 = vmatprep.subr.mxu1 %v13284_v34  ;;  %11762 = vmatprep.subr.mxu0 %v13338_v53 }
 0x6ef   : > { %11749 = vmatpush3.msra.mxu1 %v13284_v34  ;;  %11763 = vmatpush3.msra.mxu0 %v13338_v53 }
 0x6f0   : > { %11750 = vmatprep.subr.mxu1 %v13299_v48  ;;  %11764 = vmatprep.subr.mxu0 %v13351_v29 }
 0x6f1   : > { %11731 = vmatprep.mubr.f32.mxu1 %v13297_v0  ;;  %11745 = vmatprep.mubr.f32.mxu0 %v13317_v49 }
 0x6f2   : > { %11751 = vmatpush3.msra.mxu1 %v13299_v48  ;;  %11765 = vmatpush3.msra.mxu0 %v13351_v29 }
 0x6f3   : > { %11732 = vmatmul.mubr.f32.gmra.mxu1 %v13306_v46  ;;  %11746 = vmatmul.mubr.f32.gmra.mxu0 %v13328_v52 }
 0x6f4   : > { %11752 = vmatprep.subr.mxu1 %v13320_v41  ;;  %11766 = vmatprep.subr.mxu0 %v8593_v3 }
 0x6f5   : > { %11753 = vmatpush3.msra.mxu1 %v13320_v41  ;;  %11767 = vmatpush3.msra.mxu0 %v8593_v3 }
 0x6f6   : > { %11754 = vmatprep.subr.mxu1 %v13331_v16  ;;  %11768 = vmatprep.subr.mxu0 %v8600_v13 }
 0x6f7   : > { %11755 = vmatpush3.msra.mxu1 %v13331_v16  ;;  %11756 = vmatprep.mubr.f32.mxu1 %v8514_v42 }
 0x6f8   : > { %11769 = vmatpush3.msra.mxu0 %v8600_v13  ;;  %11770 = vmatprep.mubr.f32.mxu0 %v13269_v4 }
 0x6f9   : > { %11757 = vmatmul.mubr.f32.vlgmr.msra.gmra.mxu1 %v8524_v17  ;;  %11771 = vmatmul.mubr.f32.vlgmr.msra.gmra.mxu0 %v13273_v24 }
 0x6fa   : > { %11776 = vmatprep.subr.mxu1 %v13284_v34  ;;  %11759 = vmatprep.mubr.f32.mxu1 %v8534_v26 }
 0x6fb   : > { %11777 = vmatpush3.msra.mxu1 %v13284_v34  ;;  %11773 = vmatprep.mubr.f32.mxu0 %v13297_v0 }
 0x6fc   : > { %11778 = vmatprep.subr.mxu1 %v13299_v48  ;;  %11790 = vmatprep.subr.msk.mxu0 %vm12786_vm15, %v13642_v15 }
 0x6fd   : > { %11779 = vmatpush3.msra.mxu1 %v13299_v48  ;;  %11774 = vmatmul.mubr.f32.gmra.mxu0 %v13306_v46 }
 0x6fe   : > { %11760 = vmatmul.mubr.f32.gmra.mxu1 %v8544_v20  ;;  %11780 = vmatprep.subr.mxu1 %v13320_v41 }
 0x6ff   : > { %11781 = vmatpush3.msra.mxu1 %v13320_v41  ;;  %11792 = vmatprep.mubr.f32.mxu0 %v13042_v50 }
 0x700   : > { %11782 = vmatprep.subr.mxu1 %v13331_v16  ;;  %11784 = vmatprep.mubr.f32.mxu1 %v13269_v4 }
 0x701   : > { %11783 = vmatpush3.msra.mxu1 %v13331_v16  ;;  %11791 = vmatpush3.msk.msra.mxu0 %vm12786_vm15, %v13642_v15 }
 0x702   : > { %11785 = vmatmul.mubr.f32.vlgmr.msra.gmra.mxu1 %v13273_v24  ;;  %11793 = vmatmul.mubr.f32.vlgmr.msra.gmra.mxu0 %v13047_v11 }
 0x703   : > { %11795 = vmatprep.mubr.f32.mxu0 %v13057_v62  ;;  %11798 = vmatprep.subr.mxu1 %v12840_v38 }
 0x704   : > { %11787 = vmatprep.mubr.f32.mxu1 %v13297_v0  ;;  %11799 = vmatpush3.msra.mxu1 %v12840_v38  ;;  %v13644_v38 = vld [vmem:[#allocation2_spill] sm:$0xff] }
 0x705   : > { %11806 = vmatprep.subr.mxu0 %v12805_v40  ;;  %11814 = vmatprep.subr.msk.mxu1 %vm12786_vm15, %v13642_v15 }
 0x706   : > { %11788 = vmatmul.mubr.f32.gmra.mxu1 %v13306_v46  ;;  %11796 = vmatmul.mubr.f32.gmra.mxu0 %v13060_v32 }
 0x707   : > { %11800 = vmatprep.mubr.f32.mxu1 %v12999_v9  ;;  %11808 = vmatprep.mubr.f32.mxu0 %v13004_v45  ;;  %v10474_v45 = vld [vmem:[%s13612_s5 + $0x40] sm:$0xff] }
 0x708   : > { %11807 = vmatpush3.msra.mxu0 %v12805_v40  ;;  %v13643_v40 = vld [vmem:[#allocation3_spill] sm:$0xff] }
 0x709   : > { %11822 = vmatprep.subr.mxu0 %v12817_v18 }
 0x70a   : > { %11801 = vmatmul.mubr.f32.vlgmr.msra.gmra.mxu1 %v12992_v31  ;;  %11809 = vmatmul.mubr.f32.vlgmr.msra.gmra.mxu0 %v12997_v12  ;;  %v13645_v12 = vld [vmem:[#allocation5_spill] sm:$0xff] }
 0x70b   : > { %11803 = vmatprep.mubr.f32.mxu1 %v13018_v39  ;;  %11811 = vmatprep.mubr.f32.mxu0 %v13032_v19 }
 0x70c   : > { %11815 = vmatpush3.msk.msra.mxu1 %vm12786_vm15, %v13642_v15  ;;  %11823 = vmatpush3.msra.mxu0 %v12817_v18  ;;  %v13646_v18 = vld [vmem:[#allocation4_spill] sm:$0xff] }
 0x70d   : > { %11830 = vmatprep.subr.msk.mxu1 %vm12786_vm15, %v13642_v15 }
 0x70e   : > { %11804 = vmatmul.mubr.f32.gmra.mxu1 %v13006_v25  ;;  %11812 = vmatmul.mubr.f32.gmra.mxu0 %v13016_v36  ;;  %v9638_v36 = vsel %vm7804_vm1, %v10474_v45, 0 }
 0x70f   : > { %11816 = vmatprep.mubr.f32.mxu1 %v13643_v40  ;;  %11824 = vmatprep.mubr.f32.mxu0 %v12999_v9  ;;  %v13475_v21 = vand.u32 4294901760, %v9638_v36 }
 0x711   : > { %v13478_v19 = vsub.f32 %v9638_v36, %v13475_v21 }
 0x712   : > { %11817 = vmatmul.mubr.f32.vlgmr.msra.gmra.mxu1 %v13644_v38  ;;  %11825 = vmatmul.mubr.f32.vlgmr.msra.gmra.mxu0 %v12992_v31 }
 0x713   : > { %11819 = vmatprep.mubr.f32.mxu1 %v13645_v12  ;;  %11827 = vmatprep.mubr.f32.mxu0 %v13018_v39 }
 0x714   : > { %11831 = vmatpush3.msk.msra.mxu1 %vm12786_vm15, %v13642_v15 }
 0x716   : > { %11820 = vmatmul.mubr.f32.gmra.mxu1 %v13646_v18  ;;  %11828 = vmatmul.mubr.f32.gmra.mxu0 %v13006_v25 }
 0x717   : > { %11832 = vmatprep.mubr.f32.mxu1 %v12999_v9  ;;  %v9720_v9 = vand.u32 4294901760, %v13478_v19 }
 0x71a   : > { %11833 = vmatmul.mubr.f32.vlgmr.msra.gmra.mxu1 %v12992_v31  ;;  %v9721_v31 = vsub.f32 %v13478_v19, %v9720_v9 }
 0x71b   : > { %11835 = vmatprep.mubr.f32.mxu1 %v13018_v39 }
 0x71e   : > { %11836 = vmatmul.mubr.f32.gmra.mxu1 %v13006_v25  ;;  %v9722_v25 = vand.u32 4294901760, %v9721_v31 }
 0x71f   : > { %11860 = vmatprep.mubr.f32.mxu1 %v13475_v21 }
 0x720   : > { %11846 = vmatprep.mubr.f32.mxu0 %v9722_v25 }
 0x77f   : > { %v11632_v39 = vpop.f32.mrf.mxu0 }
 0x781   : > { %v7892_v50 = vpop.f32.mrf.mxu0 }
 0x784   : > { %v11635_v11 = vpop.f32.mrf.mxu0 }
 0x786   : > { %v7912_v62 = vpop.f32.mrf.mxu0 }
 0x789   : > { %v11646_v32 = vpop.f32.mrf.mxu1  ;;  %v11660_v51 = vpop.f32.mrf.mxu0 }
 0x78a   : > { %v8020_v4 = vadd.f32 %v11646_v32, %v11632_v39 }
 0x78b   : > { %v8013_v24 = vpop.f32.mrf.mxu1  ;;  %v8111_v33 = vpop.f32.mrf.mxu0 }
 0x78c   : > { %v8119_v23 = vadd.f32 %v11660_v51, %v8020_v4  ;;  %v8014_v27 = vadd.f32 %v8013_v24, %v7892_v50 }
 0x78e   : > { %v8112_v34 = vadd.f32 %v8111_v33, %v8014_v27 }
 0x78f   : > { %v11649_v47 = vpop.f32.mrf.mxu1  ;;  %v11663_v8 = vpop.f32.mrf.mxu0 }
 0x790   : > { %v8032_v35 = vadd.f32 %v11649_v47, %v11635_v11 }
 0x791   : > { %v8025_v0 = vpop.f32.mrf.mxu1  ;;  %v8125_v48 = vpop.f32.mrf.mxu0 }
 0x792   : > { %v8133_v43 = vadd.f32 %v11663_v8, %v8032_v35  ;;  %v8026_v46 = vadd.f32 %v8025_v0, %v7912_v62 }
 0x794   : > { %v8126_v14 = vadd.f32 %v8125_v48, %v8026_v46 }
 0x795   : > { %v11674_v42 = vpop.f32.mrf.mxu1  ;;  %v11688_v17 = vpop.f32.mrf.mxu0 }
 0x796   : > { %v8218_v49 = vadd.f32 %v11674_v42, %v8119_v23 }
 0x797   : > { %v8209_v41 = vpop.f32.mrf.mxu1  ;;  %v8316_v22 = vpop.f32.mrf.mxu0 }
 0x798   : > { %v8323_v52 = vadd.f32 %v11688_v17, %v8218_v49  ;;  %v8210_v16 = vadd.f32 %v8209_v41, %v8112_v34 }
 0x79a   : > { %v8317_v1 = vadd.f32 %v8316_v22, %v8210_v16 }
 0x79b   : > { %v11677_v53 = vpop.f32.mrf.mxu1  ;;  %v11691_v10 = vpop.f32.mrf.mxu0 }
 0x79c   : > { %v8234_v26 = vadd.f32 %v11677_v53, %v8133_v43 }
 0x79d   : > { %v8225_v59 = vpop.f32.mrf.mxu1  ;;  %v8328_v29 = vpop.f32.mrf.mxu0 }
 0x79e   : > { %v8335_v58 = vadd.f32 %v11691_v10, %v8234_v26  ;;  %v8226_v20 = vadd.f32 %v8225_v59, %v8126_v14 }
 0x7a0   : > { %v8329_v2 = vadd.f32 %v8328_v29, %v8226_v20 }
 0x7a1   : > { %v11702_v30 = vpop.f32.mrf.mxu1  ;;  %v11716_v54 = vpop.f32.mrf.mxu0 }
 0x7a2   : > { %v8416_v37 = vadd.f32 %v11702_v30, %v8323_v52 }
 0x7a3   : > { %v8409_v28 = vpop.f32.mrf.mxu1  ;;  %v8518_v63 = vpop.f32.mrf.mxu0 }
 0x7a4   : > { %v8529_v3 = vadd.f32 %v11716_v54, %v8416_v37  ;;  %v8410_v56 = vadd.f32 %v8409_v28, %v8317_v1 }
 0x7a6   : > { %v8519_v6 = vadd.f32 %v8518_v63, %v8410_v56 }
 0x7a7   : > { %v11705_v13 = vpop.f32.mrf.mxu1  ;;  %v11719_v7 = vpop.f32.mrf.mxu0 }
 0x7a8   : > { %v8428_v60 = vadd.f32 %v11705_v13, %v8335_v58 }
 0x7a9   : > { %v8421_v5 = vpop.f32.mrf.mxu1  ;;  %v8538_v44 = vpop.f32.mrf.mxu0 }
 0x7aa   : > { %v8549_v55 = vadd.f32 %v11719_v7, %v8428_v60  ;;  %v8422_v61 = vadd.f32 %v8421_v5, %v8329_v2  ;;  %v10475_v5 = vld [vmem:[%s13612_s5 + $0x48] sm:$0xff] }
 0x7ac   : > { %v8539_v57 = vadd.f32 %v8538_v44, %v8422_v61 }
 0x7ad   : > { %v11730_v15 = vpop.f32.mrf.mxu1  ;;  %v11744_v40 = vpop.f32.mrf.mxu0 }
 0x7ae   : > { %v8646_v38 = vadd.f32 %v11730_v15, %v8529_v3 }
 0x7af   : > { %v8639_v12 = vpop.f32.mrf.mxu1  ;;  %v8737_v18 = vpop.f32.mrf.mxu0 }
 0x7b0   : > { %v8745_v45 = vadd.f32 %v11744_v40, %v8646_v38  ;;  %v8640_v36 = vadd.f32 %v8639_v12, %v8519_v6  ;;  %v9641_v38 = vsel %vm7804_vm1, %v10475_v5, 0  ;;  %v10476_v12 = vld [vmem:[%s13612_s5 + $0x50] sm:$0xff] }
 0x7b2   : > { %v8738_v31 = vadd.f32 %v8737_v18, %v8640_v36 }
 0x7b3   : > { %v11733_v25 = vpop.f32.mrf.mxu1  ;;  %v11747_v39 = vpop.f32.mrf.mxu0 }
 0x7b4   : > { %v8658_v50 = vadd.f32 %v11733_v25, %v8549_v55  ;;  %v10477_v25 = vld [vmem:[%s13612_s5 + $0x58] sm:$0xff] }
 0x7b5   : > { %v8651_v11 = vpop.f32.mrf.mxu1  ;;  %v8751_v62 = vpop.f32.mrf.mxu0 }
 0x7b6   : > { %v8759_v32 = vadd.f32 %v11747_v39, %v8658_v50  ;;  %v8652_v51 = vadd.f32 %v8651_v11, %v8539_v57  ;;  %v13503_v50 = vand.u32 4294901760, %v9641_v38  ;;  %v9644_v11 = vsel %vm7804_vm1, %v10476_v12, 0 }
 0x7b8   : > { %v8752_v4 = vadd.f32 %v8751_v62, %v8652_v51 }
 0x7b9   : > { %v11758_v24 = vpop.f32.mrf.mxu1  ;;  %v11772_v33 = vpop.f32.mrf.mxu0 }
 0x7ba   : > { %v8844_v23 = vadd.f32 %v11758_v24, %v8745_v45 }
 0x7bb   : > { %v8835_v27 = vpop.f32.mrf.mxu1  ;;  %v8942_v34 = vpop.f32.mrf.mxu0 }
 0x7bc   : > { %v8949_v47 = vadd.f32 %v11772_v33, %v8844_v23  ;;  %v8836_v8 = vadd.f32 %v8835_v27, %v8738_v31  ;;  %v9647_v33 = vsel %vm7804_vm1, %v10477_v25, 0 }
 0x7bd   : > { %v11775_v35 = vpop.f32.mrf.mxu0 }
 0x7be   : > { %v8943_v0 = vadd.f32 %v8942_v34, %v8836_v8  ;;  %v11761_v48 = vpop.f32.mrf.mxu1 }
 0x7bf   : > { %v8860_v43 = vadd.f32 %v11761_v48, %v8759_v32  ;;  %v8954_v46 = vpop.f32.mrf.mxu0 }
 0x7c0   : > { %v8851_v14 = vpop.f32.mrf.mxu1 }
 0x7c1   : > { %v8961_v42 = vadd.f32 %v11775_v35, %v8860_v43  ;;  %v8852_v17 = vadd.f32 %v8851_v14, %v8752_v4  ;;  %v13510_v35 = vsub.f32 %v9641_v38, %v13503_v50  ;;  %v13512_v43 = vand.u32 4294901760, %v9647_v33 }
 0x7c2   : > { %v11786_v49 = vpop.f32.mrf.mxu1  ;;  %v11794_v41 = vpop.f32.mrf.mxu0 }
 0x7c3   : > { %v8955_v22 = vadd.f32 %v8954_v46, %v8852_v17  ;;  %v13485_v52 = vadd.f32 %v11786_v49, %v8949_v47  ;;  %v13507_v47 = vand.u32 4294901760, %v9644_v11 }
 0x7c4   : > { %v9035_v16 = vpop.f32.mrf.mxu1  ;;  %v9129_v1 = vpop.f32.mrf.mxu0 }
 0x7c5   : > { %v13487_v53 = vadd.f32 %v9035_v16, %v8943_v0 }
 0x7c6   : > { %v11789_v10 = vpop.f32.mrf.mxu1  ;;  %v11797_v26 = vpop.f32.mrf.mxu0 }
 0x7c7   : > { %v13489_v59 = vadd.f32 %v11789_v10, %v8961_v42 }
 0x7c8   : > { %v9047_v29 = vpop.f32.mrf.mxu1  ;;  %v9149_v58 = vpop.f32.mrf.mxu0 }
 0x7c9   : > { %v13491_v20 = vadd.f32 %v9047_v29, %v8955_v22  ;;  %v13525_v29 = vsub.f32 %v9647_v33, %v13512_v43 }
 0x7ca   : > { %v11802_v2 = vpop.f32.mrf.mxu1  ;;  %v11810_v30 = vpop.f32.mrf.mxu0 }
 0x7cb   : > { %v9242_v3 = vadd.f32 %v11802_v2, %v11794_v41  ;;  %v13517_v41 = vsub.f32 %v9644_v11, %v13507_v47 }
 0x7cc   : > { %v9235_v54 = vpop.f32.mrf.mxu1  ;;  %v9327_v37 = vpop.f32.mrf.mxu0 }
 0x7cd   : > { %v9236_v13 = vadd.f32 %v9235_v54, %v9129_v1  ;;  %v9335_v44 = vadd.f32 %v11810_v30, %v9242_v3  ;;  %v9730_v1 = vand.u32 4294901760, %v13510_v35  ;;  %v9740_v54 = vand.u32 4294901760, %v13517_v41 }
 0x7ce   : > { %v11805_v28 = vpop.f32.mrf.mxu1  ;;  %v11813_v63 = vpop.f32.mrf.mxu0 }
 0x7cf   : > { %v9254_v55 = vadd.f32 %v11805_v28, %v11797_v26  ;;  %v9328_v57 = vadd.f32 %v9327_v37, %v9236_v13  ;;  %v9731_v28 = vsub.f32 %v13510_v35, %v9730_v1 }
 0x7d0   : > { %v9247_v56 = vpop.f32.mrf.mxu1  ;;  %v9341_v6 = vpop.f32.mrf.mxu0 }
 0x7d1   : > { %v9248_v15 = vadd.f32 %v9247_v56, %v9149_v58  ;;  %v9349_v36 = vadd.f32 %v11813_v63, %v9254_v55  ;;  %v9750_v56 = vand.u32 4294901760, %v13525_v29  ;;  %v9732_v5 = vand.u32 4294901760, %v9731_v28 }
 0x7d2   : > { %v11818_v7 = vpop.f32.mrf.mxu1  ;;  %v11826_v60 = vpop.f32.mrf.mxu0 }
 0x7d3   : > { %v9431_v40 = vadd.f32 %v11818_v7, %v9335_v44  ;;  %v9342_v62 = vadd.f32 %v9341_v6, %v9248_v15 }
 0x7d4   : > { %v9422_v61 = vpop.f32.mrf.mxu1  ;;  %v9520_v18 = vpop.f32.mrf.mxu0 }
 0x7d5   : > { %v9423_v31 = vadd.f32 %v9422_v61, %v9328_v57  ;;  %v9527_v32 = vadd.f32 %v11826_v60, %v9431_v40  ;;  %v9741_v60 = vsub.f32 %v13517_v41, %v9740_v54  ;;  %v9751_v57 = vsub.f32 %v13525_v29, %v9750_v56 }
 0x7d6   : > { %v11821_v45 = vpop.f32.mrf.mxu1  ;;  %v11829_v4 = vpop.f32.mrf.mxu0 }
 0x7d7   : > { %v9447_v51 = vadd.f32 %v11821_v45, %v9349_v36  ;;  %v9521_v23 = vadd.f32 %v9520_v18, %v9423_v31  ;;  %v9742_v38 = vand.u32 4294901760, %v9741_v60  ;;  %v9752_v18 = vand.u32 4294901760, %v9751_v57 }
 0x7d8   : > { %v9438_v39 = vpop.f32.mrf.mxu1  ;;  %v9532_v46 = vpop.f32.mrf.mxu0 }
 0x7d9   : > { %v9439_v27 = vadd.f32 %v9438_v39, %v9342_v62  ;;  %v9539_v0 = vadd.f32 %v11829_v4, %v9447_v51 }
 0x7da   : > { %v11834_v24 = vpop.f32.mrf.mxu1 }
 0x7db   : > { %v9617_v34 = vadd.f32 %v11834_v24, %v9527_v32  ;;  %v9533_v17 = vadd.f32 %v9532_v46, %v9439_v27 }
 0x7dc   : > { %v9610_v8 = vpop.f32.mrf.mxu1 }
 0x7dd   : > { %v9611_v48 = vadd.f32 %v9610_v8, %v9521_v23  ;;  %v13514_v14 = vand.u32 4294901760, %v9617_v34 }
 0x7de   : > { %v11837_v42 = vpop.f32.mrf.mxu1 }
 0x7df   : > { %v9629_v49 = vadd.f32 %v11837_v42, %v9539_v0  ;;  %v13519_v22 = vand.u32 4294901760, %v9611_v48  ;;  %v9798_v58 = vsub.f32 %v9617_v34, %v13514_v14 }
 0x7e0   : > { %v9622_v16 = vpop.f32.mrf.mxu1 }
 0x7e1   : > { %v13522_v10 = vand.u32 4294901760, %v9629_v49  ;;  %v9623_v26 = vadd.f32 %v9622_v16, %v9533_v17  ;;  %v9805_v37 = vsub.f32 %v9611_v48, %v13519_v22  ;;  %v9799_v6 = vand.u32 4294901760, %v9798_v58 }
 0x7e3   : > { %v9784_v2 = vsub.f32 %v9629_v49, %v13522_v10  ;;  %v13529_v30 = vand.u32 4294901760, %v9623_v26  ;;  %11838 = vmatprep.subr.mxu0 %v13522_v10  ;;  %v9806_v44 = vand.u32 4294901760, %v9805_v37  ;;  %v9800_v15 = vsub.f32 %v9798_v58, %v9799_v6 }
 0x7e4   : > { %11839 = vmatpush3.msra.mxu0 %v13522_v10 }
 0x7e5   : > { %v9791_v63 = vsub.f32 %v9623_v26, %v13529_v30  ;;  %11840 = vmatprep.subr.mxu0 %v13529_v30  ;;  %v9785_v3 = vand.u32 4294901760, %v9784_v2  ;;  %v9807_v12 = vsub.f32 %v9805_v37, %v9806_v44  ;;  %v9801_v45 = vand.u32 4294901760, %v9800_v15 }
 0x7e6   : > { %11841 = vmatpush3.msra.mxu0 %v13529_v30 }
 0x7e7   : > { %11842 = vmatprep.subr.mxu0 %v13514_v14  ;;  %v9786_v13 = vsub.f32 %v9784_v2, %v9785_v3  ;;  %v9792_v7 = vand.u32 4294901760, %v9791_v63  ;;  %v9808_v36 = vand.u32 4294901760, %v9807_v12 }
 0x7e8   : > { %11843 = vmatpush3.msra.mxu0 %v13514_v14 }
 0x7e9   : > { %11844 = vmatprep.subr.mxu0 %v13519_v22  ;;  %v9787_v55 = vand.u32 4294901760, %v9786_v13  ;;  %v9793_v61 = vsub.f32 %v9791_v63, %v9792_v7 }
 0x7ea   : > { %11845 = vmatpush3.msra.mxu0 %v13519_v22 }
 0x7eb   : > { %11852 = vmatprep.subr.mxu1 %v9787_v55  ;;  %11866 = vmatprep.subr.mxu0 %v9784_v2  ;;  %v9794_v40 = vand.u32 4294901760, %v9793_v61 }
 0x7ec   : > { %11847 = vmatmul.mubr.f32.vlgmr.msra.gmra.mxu0 %v9732_v5  ;;  %11853 = vmatpush3.msra.mxu1 %v9787_v55 }
 0x7ed   : > { %11867 = vmatpush3.msra.mxu0 %v9784_v2  ;;  %11854 = vmatprep.subr.mxu1 %v9794_v40 }
 0x7ee   : > { %11868 = vmatprep.subr.mxu0 %v9791_v63  ;;  %11855 = vmatpush3.msra.mxu1 %v9794_v40 }
 0x7ef   : > { %11869 = vmatpush3.msra.mxu0 %v9791_v63  ;;  %11849 = vmatprep.mubr.f32.mxu0 %v9742_v38  ;;  %v10274_v63 = vpop.permute.xlu0 %10273 }
 0x7f0   : > { %11856 = vmatprep.subr.mxu1 %v9801_v45  ;;  %11870 = vmatprep.subr.mxu0 %v9798_v58 }
 0x7f1   : > { %11850 = vmatmul.mubr.f32.gmra.mxu0 %v9752_v18  ;;  %11857 = vmatpush3.msra.mxu1 %v9801_v45 }
 0x7f2   : > { %11871 = vmatpush3.msra.mxu0 %v9798_v58  ;;  %11858 = vmatprep.subr.mxu1 %v9808_v36 }
 0x7f3   : > { %11872 = vmatprep.subr.mxu0 %v9805_v37  ;;  %11859 = vmatpush3.msra.mxu1 %v9808_v36 }
 0x7f4   : > { %11873 = vmatpush3.msra.mxu0 %v9805_v37  ;;  %11861 = vmatmul.mubr.f32.vlgmr.msra.gmra.mxu1 %v13503_v50 }
 0x7f5   : > { %11874 = vmatprep.mubr.f32.mxu0 %v13478_v19  ;;  %11880 = vmatprep.subr.mxu1 %v13522_v10 }
 0x7f6   : > { %11894 = vmatprep.subr.mxu0 %v9785_v3  ;;  %11875 = vmatmul.mubr.f32.vlgmr.msra.gmra.mxu0 %v13510_v35 }
 0x7f7   : > { %11881 = vmatpush3.msra.mxu1 %v13522_v10  ;;  %11895 = vmatpush3.msra.mxu0 %v9785_v3 }
 0x7f8   : > { %11882 = vmatprep.subr.mxu1 %v13529_v30  ;;  %11896 = vmatprep.subr.mxu0 %v9792_v7 }
 0x7f9   : > { %11863 = vmatprep.mubr.f32.mxu1 %v13507_v47  ;;  %11883 = vmatpush3.msra.mxu1 %v13529_v30 }
 0x7fa   : > { %11897 = vmatpush3.msra.mxu0 %v9792_v7  ;;  %11864 = vmatmul.mubr.f32.gmra.mxu1 %v13512_v43 }
 0x7fb   : > { %11884 = vmatprep.subr.mxu1 %v13514_v14  ;;  %11898 = vmatprep.subr.mxu0 %v9799_v6 }
 0x7fc   : > { %11877 = vmatprep.mubr.f32.mxu0 %v13517_v41  ;;  %11885 = vmatpush3.msra.mxu1 %v13514_v14 }
 0x7fd   : > { %11899 = vmatpush3.msra.mxu0 %v9799_v6  ;;  %11886 = vmatprep.subr.mxu1 %v13519_v22 }
 0x7fe   : > { %11878 = vmatmul.mubr.f32.gmra.mxu0 %v13525_v29  ;;  %11900 = vmatprep.subr.mxu0 %v9806_v44 }
 0x7ff   : > { %11887 = vmatpush3.msra.mxu1 %v13519_v22  ;;  %11888 = vmatprep.mubr.f32.mxu1 %v9720_v9 }
 0x800   : > { %11901 = vmatpush3.msra.mxu0 %v9806_v44  ;;  %11889 = vmatmul.mubr.f32.vlgmr.msra.gmra.mxu1 %v9730_v1 }
 0x801   : > { %11908 = vmatprep.subr.mxu1 %v13522_v10  ;;  %11902 = vmatprep.mubr.f32.mxu0 %v13475_v21 }
 0x802   : > { %11909 = vmatpush3.msra.mxu1 %v13522_v10  ;;  %11903 = vmatmul.mubr.f32.vlgmr.msra.gmra.mxu0 %v13503_v50  ;;  %v10279_v10 = vpop.permute.xlu1 %10278 }
 0x803   : > { %11910 = vmatprep.subr.mxu1 %v13529_v30  ;;  %11891 = vmatprep.mubr.f32.mxu1 %v9740_v54 }
 0x804   : > { %11911 = vmatpush3.msra.mxu1 %v13529_v30  ;;  %11905 = vmatprep.mubr.f32.mxu0 %v13507_v47 }
 0x805   : > { %11892 = vmatmul.mubr.f32.gmra.mxu1 %v9750_v56  ;;  %11912 = vmatprep.subr.mxu1 %v13514_v14 }
 0x806   : > { %11913 = vmatpush3.msra.mxu1 %v13514_v14  ;;  %11906 = vmatmul.mubr.f32.gmra.mxu0 %v13512_v43 }
 0x807   : > { %11914 = vmatprep.subr.mxu1 %v13519_v22  ;;  %11916 = vmatprep.mubr.f32.mxu1 %v13475_v21 }
 0x808   : > { %11915 = vmatpush3.msra.mxu1 %v13519_v22 }
 0x809   : > { %11917 = vmatmul.mubr.f32.vlgmr.msra.gmra.mxu1 %v13503_v50 }
 0x80a   : > { %11919 = vmatprep.mubr.f32.mxu1 %v13507_v47 }
 0x80d   : > { %11920 = vmatmul.mubr.f32.gmra.mxu1 %v13512_v43 }
 0x8ac   : > { %v11848_v19 = vpop.f32.mrf.mxu0 }
 0x8ae   : > { %v9724_v9 = vpop.f32.mrf.mxu0 }
 0x8b1   : > { %v11851_v31 = vpop.f32.mrf.mxu0 }
 0x8b3   : > { %v9744_v25 = vpop.f32.mrf.mxu0 }
 0x8b4   : > { %v11862_v39 = vpop.f32.mrf.mxu1 }
 0x8b5   : > { %v9852_v24 = vadd.f32 %v11862_v39, %v11848_v19 }
 0x8b6   : > { %v9845_v11 = vpop.f32.mrf.mxu1  ;;  %v11876_v62 = vpop.f32.mrf.mxu0 }
 0x8b7   : > { %v9846_v33 = vadd.f32 %v9845_v11, %v9724_v9  ;;  %v9951_v50 = vadd.f32 %v11876_v62, %v9852_v24 }
 0x8b8   : > { %v9943_v51 = vpop.f32.mrf.mxu0 }
 0x8b9   : > { %v9944_v35 = vadd.f32 %v9943_v51, %v9846_v33 }
 0x8ba   : > { %v11865_v32 = vpop.f32.mrf.mxu1 }
 0x8bb   : > { %v9864_v34 = vadd.f32 %v11865_v32, %v11851_v31 }
 0x8bc   : > { %v9857_v4 = vpop.f32.mrf.mxu1 }
 0x8bd   : > { %v9858_v0 = vadd.f32 %v9857_v4, %v9744_v25 }
 0x8be   : > { %v11879_v21 = vpop.f32.mrf.mxu0 }
 0x8bf   : > { %v9965_v14 = vadd.f32 %v11879_v21, %v9864_v34 }
 0x8c0   : > { %v9957_v23 = vpop.f32.mrf.mxu0  ;;  %v11890_v27 = vpop.f32.mrf.mxu1 }
 0x8c1   : > { %v10050_v48 = vadd.f32 %v11890_v27, %v9951_v50  ;;  %v9958_v41 = vadd.f32 %v9957_v23, %v9858_v0 }
 0x8c2   : > { %v10041_v47 = vpop.f32.mrf.mxu1  ;;  %v11904_v8 = vpop.f32.mrf.mxu0 }
 0x8c3   : > { %v10042_v42 = vadd.f32 %v10041_v47, %v9944_v35  ;;  %v10155_v22 = vadd.f32 %v11904_v8, %v10050_v48 }
 0x8c4   : > { %v10148_v43 = vpop.f32.mrf.mxu0 }
 0x8c5   : > { %v11893_v46 = vpop.f32.mrf.mxu1  ;;  %v10149_v26 = vadd.f32 %v10148_v43, %v10042_v42 }
 0x8c6   : > { %v11907_v49 = vpop.f32.mrf.mxu0  ;;  %v10066_v16 = vadd.f32 %v11893_v46, %v9965_v14 }
 0x8c7   : > { %v10057_v17 = vpop.f32.mrf.mxu1 }
 0x8c8   : > { %v10058_v29 = vadd.f32 %v10057_v17, %v9958_v41  ;;  %v10160_v2 = vpop.f32.mrf.mxu0  ;;  %v10167_v54 = vadd.f32 %v11907_v49, %v10066_v16 }
 0x8c9   : > { %v11918_v1 = vpop.f32.mrf.mxu1 }
 0x8ca   : > { %v10248_v58 = vadd.f32 %v11918_v1, %v10155_v22  ;;  %v10161_v56 = vadd.f32 %v10160_v2, %v10058_v29 }
 0x8cb   : > { %v10241_v30 = vpop.f32.mrf.mxu1 }
 0x8cc   : > { %v10264_v37 = vadd.f32 %v10248_v58, %v13485_v52  ;;  %v10242_v28 = vadd.f32 %v10241_v30, %v10149_v26  ;;  %v10289_v52 = vpop.permute.xlu1 %10288 }
 0x8cd   : > { %v11921_v3 = vpop.f32.mrf.mxu1 }
 0x8ce   : > { %v10292_v6 = vadd.f32 %v10279_v10, %v10264_v37  ;;  %v10263_v13 = vadd.f32 %v10242_v28, %v13487_v53  ;;  %v10260_v7 = vadd.f32 %v11921_v3, %v10167_v54  ;;  %v10284_v53 = vpop.permute.xlu0 %10283 }
 0x8cf   : > { %v10253_v60 = vpop.f32.mrf.mxu1 }
 0x8d0   : > { %v10296_v5 = vmax.f32 %v10292_v6, 0.0  ;;  %v10291_v44 = vadd.f32 %v10274_v63, %v10263_v13  ;;  %v10266_v55 = vadd.f32 %v10260_v7, %v13489_v59  ;;  %v10254_v61 = vadd.f32 %v10253_v60, %v10161_v56 }
 0x8d2   : > { %10300 = vst.msk [vmem:[%s315_s18 + $0x8] sm:$0xff] %vm1262_vm6, %v10296_v5  ;;  %v10295_v57 = vmax.f32 %v10291_v44, 0.0  ;;  %v10294_v15 = vadd.f32 %v10289_v52, %v10266_v55  ;;  %v10265_v40 = vadd.f32 %v10254_v61, %v13491_v20 }
 0x8d4   : > { %10299 = vst.msk [vmem:[%s315_s18] sm:$0xff] %vm1262_vm6, %v10295_v57  ;;  %v10298_v38 = vmax.f32 %v10294_v15, 0.0  ;;  %v10293_v12 = vadd.f32 %v10284_v53, %v10265_v40 }
 0x8d6   : > { %10302 = vst.msk [vmem:[%s315_s18 + $0x18] sm:$0xff] %vm1262_vm6, %v10298_v38  ;;  %v10297_v18 = vmax.f32 %v10293_v12, 0.0 }
 0x8d8   : > { %10301 = vst.msk [vmem:[%s315_s18 + $0x10] sm:$0xff] %vm1262_vm6, %v10297_v18 }
 0x8d9 PF: > { %s19_s27 = sadd.s32 1, %s11942_s27  }
 0x8da   : > { %p16_p4 = scmp.ge.s32.totalorder %s19_s27, 4  }
 0x8dc   :  { %18 = sbr.rel (!%p16_p4) target bundleno = 1 (0x1), region = 96 }

</bundles_post_ra>
